<compile_context>
chip_gen: v6e
topology: v6e:2x2x1
jax: 0.10.0
libtpu: 0.0.40
codegen_flags: <defaults>
</compile_context>

<pallas_src>
import jax
import jax.numpy as jnp
from jax import lax
from jax.experimental import pallas as pl
from jax.experimental.pallas import tpu as pltpu


# --------------------------------------------------------------------------
# Fused Pallas kernel: the entire DownSample3 graph, one image per grid step.
# --------------------------------------------------------------------------

def _make_kernel(M_img, Ho, Wo, C, n_blocks, pad_rows):
    """M_img = Ho*Wo rows of one image, C = 128 resblock channels."""

    def mish(y):
        # y * tanh(softplus(y)) with torch's softplus threshold of 20, via a
        # single clamped exp: tanh(log(1+e^y)) = ((1+e^y)^2 - 1)/((1+e^y)^2 + 1).
        ey = jnp.exp(jnp.minimum(y, 20.0))
        t2 = (1.0 + ey) * (1.0 + ey)
        tanh_sp = jnp.where(y > 20.0, 1.0,
                            (t2 - 1.0) * pl.reciprocal(t2 + 1.0, approx=True))
        return y * tanh_sp

    def dot32(a, b):
        return jnp.dot(a, b, preferred_element_type=jnp.float32)

    def bf16(v):
        return v.astype(jnp.bfloat16)

    def kernel(p1_ref, w1_ref, b1_ref, w2_ref, b2_ref, w3_ref, b3_ref,
               wr1_ref, br1_ref, wr2_ref, br2_ref,
               w4_ref, b4_ref, w5_ref, b5_ref,
               o_ref,
               r_ref, hpad_ref, patch_ref):
        # ---- c1: 3x3 stride-2 conv (pre-im2col'd) + folded BN + Mish ------
        x1b = bf16(mish(dot32(p1_ref[...], w1_ref[...]) + b1_ref[...]))   # (M,256)

        # ---- c2 / c3: 1x1 convs off the same x1 ---------------------------
        # x2 is only ever consumed (by c5) in bf16: keep just the bf16 copy.
        x2b = bf16(mish(dot32(x1b, w2_ref[...]) + b2_ref[...]))          # (M,128)
        r_ref[...] = mish(dot32(x1b, w3_ref[...]) + b3_ref[...])         # (M,128) f32

        # Zero the padded slab once; only its interior is rewritten per
        # block, so the top/bottom zero borders give the 3x3 conv's row
        # zero-padding for free on every iteration.
        hpad_ref[...] = jnp.zeros(hpad_ref.shape, hpad_ref.dtype)

        # ---- ResBlock(128, 8): [1x1 conv, 3x3 conv] + shortcut ------------
        def blk_body(blk, carry):
            r = r_ref[...]                                               # (M,128) f32
            h = mish(dot32(bf16(r), wr1_ref[blk]) + br1_ref[blk])        # (M,128) f32
            hpad_ref[pad_rows:pad_rows + M_img, :] = h                   # aligned store

            # column (j) validity: the flat +-1 shift wraps across image
            # rows, which the zero pad cannot express -> mask those rows.
            m_idx = lax.broadcasted_iota(jnp.int32, (M_img, C), 0)
            j_idx = m_idx % Wo

            for k in range(9):                                           # k = kh*3 + kw
                kh, kw = k // 3, k % 3
                di, dj = kh - 1, kw - 1
                d = di * Wo + dj                                         # flat row shift
                win = hpad_ref[pad_rows + d:pad_rows + d + M_img, :]     # (M,128) f32
                if dj == 1:
                    win = jnp.where(j_idx < Wo - 1, win, 0.0)
                elif dj == -1:
                    win = jnp.where(j_idx > 0, win, 0.0)
                patch_ref[:, k * C:(k + 1) * C] = bf16(win)

            # One deep K = 9*128 dot against the whole 3x3 weight slab.
            y = dot32(patch_ref[...], wr2_ref[blk]) + br2_ref[blk]       # (M,128) f32
            r_ref[...] = mish(y) + r
            return carry

        lax.fori_loop(0, n_blocks, blk_body, 0)

        # ---- c4 (1x1), then c5 over the in-VMEM concat([x4, x2]) ----------
        x4b = bf16(mish(dot32(bf16(r_ref[...]), w4_ref[...]) + b4_ref[...]))
        cat = jnp.concatenate([x4b, x2b], axis=-1)                       # (M,256) bf16
        o_ref[...] = mish(dot32(cat, w5_ref[...]) + b5_ref[...]).astype(o_ref.dtype)

    return kernel


# --------------------------- glue (plain JAX) -------------------------------

def im2col(x_nhwc, ksize, stride, pad):
    """x: (N,H,W,C) -> patches (N*Ho*Wo, ksize*ksize*C) in [kh][kw][c] order."""
    N, H, W, C = x_nhwc.shape
    xp = jnp.pad(x_nhwc, ((0, 0), (pad, pad), (pad, pad), (0, 0)))
    Ho = (H + 2 * pad - ksize) // stride + 1
    Wo = (W + 2 * pad - ksize) // stride + 1
    cols = []
    for kh in range(ksize):
        for kw in range(ksize):
            cols.append(xp[:, kh:kh + Ho * stride:stride,
                           kw:kw + Wo * stride:stride, :])
    patches = jnp.concatenate(cols, axis=-1)
    return patches.reshape(N * Ho * Wo, ksize * ksize * C), (N, Ho, Wo)


# ------------------------------ parameters ----------------------------------

def _make_conv_w(key, cout, cin, ksize):
    # PyTorch layout (Cout, Cin, KH, KW) -> (KH*KW*Cin, Cout) matching im2col.
    w = jax.random.normal(key, (cout, cin, ksize, ksize), jnp.float32)
    w = w * (1.0 / jnp.sqrt(float(cin * ksize * ksize)))
    return jnp.transpose(w, (2, 3, 1, 0)).reshape(ksize * ksize * cin, cout)


def _make_bn(key, c, eps=1e-5):
    k1, k2, k3, k4 = jax.random.split(key, 4)
    gamma = 1.0 + 0.1 * jax.random.normal(k1, (c,), jnp.float32)
    beta = 0.1 * jax.random.normal(k2, (c,), jnp.float32)
    mean = 0.1 * jax.random.normal(k3, (c,), jnp.float32)
    var = jnp.abs(1.0 + 0.1 * jax.random.normal(k4, (c,), jnp.float32))
    scale = gamma / jnp.sqrt(var + eps)
    bias = beta - mean * scale
    return scale, bias


def init_params(key):
    keys = jax.random.split(key, 64)
    ki = iter(range(64))

    def conv_bn(cout, cin, ksize):
        w = _make_conv_w(keys[next(ki)], cout, cin, ksize)
        s, b = _make_bn(keys[next(ki)], cout)
        return (w, s, b)

    return {
        "c1": conv_bn(256, 128, 3),
        "c2": conv_bn(128, 256, 1),
        "c3": conv_bn(128, 256, 1),
        "c4": conv_bn(128, 128, 1),
        "c5": conv_bn(256, 256, 1),
        "res": [(conv_bn(128, 128, 1), conv_bn(128, 128, 3)) for _ in range(8)],
    }


def prepare_params(params):
    """Fold BN scale into the weights, cast weights to bf16, biases stay f32."""
    def fold(p):
        w, s, b = p
        return ((w * s[None, :]).astype(jnp.bfloat16),
                b.reshape(1, -1).astype(jnp.float32))

    w1, b1 = fold(params["c1"])
    w2, b2 = fold(params["c2"])
    w3, b3 = fold(params["c3"])
    w4, b4 = fold(params["c4"])
    w5, b5 = fold(params["c5"])
    r1 = [fold(a) for a, _ in params["res"]]
    r2 = [fold(b) for _, b in params["res"]]
    return {
        "w1": w1, "b1": b1, "w2": w2, "b2": b2, "w3": w3, "b3": b3,
        "wr1": jnp.stack([w for w, _ in r1]),        # (8, 128, 128)  bf16
        "br1": jnp.stack([b for _, b in r1]),        # (8, 1, 128)    f32
        "wr2_flat": jnp.stack([w for w, _ in r2]),   # (8, 1152, 128) bf16
        "br2": jnp.stack([b for _, b in r2]),        # (8, 1, 128)    f32
        "w4": w4, "b4": b4, "w5": w5, "b5": b5,
    }


# ------------------------------- forward ------------------------------------

def downsample3_pallas(x_nchw, prep):
    C = 128
    x = jnp.transpose(x_nchw, (0, 2, 3, 1))          # NCHW -> NHWC
    p1, (N, Ho, Wo) = im2col(x, 3, 2, 1)             # (N*Ho*Wo, 9*128), once
    M_img = Ho * Wo
    assert M_img % 8 == 0
    pad_rows = -(-(Wo + 1) // 8) * 8                 # >= Wo+1, 8-aligned

    args = (p1.astype(jnp.bfloat16),
            prep["w1"], prep["b1"], prep["w2"], prep["b2"],
            prep["w3"], prep["b3"],
            prep["wr1"], prep["br1"], prep["wr2_flat"], prep["br2"],
            prep["w4"], prep["b4"], prep["w5"], prep["b5"])

    def resident(a):
        zeros = (0,) * a.ndim                        # constant block -> stays in VMEM
        return pl.BlockSpec(a.shape, lambda n: zeros)

    in_specs = [pl.BlockSpec((M_img, 9 * C), lambda n: (n, 0))]
    in_specs += [resident(a) for a in args[1:]]

    out = pl.pallas_call(
        _make_kernel(M_img, Ho, Wo, C, 8, pad_rows),
        out_shape=jax.ShapeDtypeStruct((N * M_img, 2 * C), jnp.float32),
        grid=(N,),
        in_specs=in_specs,
        out_specs=pl.BlockSpec((M_img, 2 * C), lambda n: (n, 0)),
        scratch_shapes=[
            pltpu.VMEM((M_img, C), jnp.float32),                 # resblock carry r
            pltpu.VMEM((M_img + 2 * pad_rows, C), jnp.float32),  # zero-padded map
            pltpu.VMEM((M_img, 9 * C), jnp.bfloat16),            # 3x3 patch slab
        ],
        compiler_params=pltpu.CompilerParams(
            dimension_semantics=("parallel",),
            vmem_limit_bytes=32 * 1024 * 1024),
    )(*args)

    out = out.reshape(N, Ho, Wo, 2 * C)
    return jnp.transpose(out, (0, 3, 1, 2))          # NHWC -> NCHW


# ----------------------- pure-JAX reference (same numerics) ------------------

def _mish_ref(y):
    sp = jnp.where(y > 20.0, y, jnp.log1p(jnp.exp(jnp.minimum(y, 20.0))))
    return y * jnp.tanh(sp)


def downsample3_ref(x_nchw, prep):
    """Plain-JAX reference with the same numerics policy as the kernel
    (bf16 matmul operands, f32 accumulation, BN folded into the weights)."""
    x = jnp.transpose(x_nchw, (0, 2, 3, 1))

    def cbm(a, w_bf, b):
        y = jnp.dot(a.astype(jnp.bfloat16), w_bf,
                    preferred_element_type=jnp.float32) + b
        return _mish_ref(y)

    p1, (N, Ho, Wo) = im2col(x, 3, 2, 1)
    x1 = cbm(p1, prep["w1"], prep["b1"])
    x2 = cbm(x1, prep["w2"], prep["b2"])
    x3 = cbm(x1, prep["w3"], prep["b3"])
    r = x3
    for blk in range(8):
        h = cbm(r, prep["wr1"][blk], prep["br1"][blk])
        hp, _ = im2col(h.reshape(N, Ho, Wo, 128), 3, 1, 1)
        r = cbm(hp, prep["wr2_flat"][blk], prep["br2"][blk]) + r
    x4 = cbm(r, prep["w4"], prep["b4"])
    x4c = jnp.concatenate([x4, x2], axis=-1)
    x5 = cbm(x4c, prep["w5"], prep["b5"])
    return jnp.transpose(x5.reshape(N, Ho, Wo, 256), (0, 3, 1, 2))


# --------------------------------- main --------------------------------------

if __name__ == "__main__":
    key = jax.random.PRNGKey(0)
    kx, kp = jax.random.split(key)

    # PyTorch-style NCHW input (input channels fixed at 128 by the module).
    x = jax.random.normal(kx, (2, 128, 16, 16), jnp.float32)
    params = init_params(kp)
    prep = prepare_params(params)

    fwd = jax.jit(downsample3_pallas)
    out = jax.block_until_ready(fwd(x, prep))
    assert out.shape == (2, 256, 8, 8), out.shape

    ref = jax.block_until_ready(jax.jit(downsample3_ref)(x, prep))
    err = float(jnp.max(jnp.abs(out - ref)))
    assert jnp.allclose(out, ref, rtol=3e-2, atol=3e-2), err
    print("KERNEL_OK")
</pallas_src>

<mosaic_0001>
module attributes {stable_mosaic.version = 11 : i64} {
  func.func @kernel(%arg0: i32, %arg1: memref<64x1152xbf16, #tpu.memory_space<vmem>>, %arg2: memref<1152x256xbf16, #tpu.memory_space<vmem>>, %arg3: memref<1x256xf32, #tpu.memory_space<vmem>>, %arg4: memref<256x128xbf16, #tpu.memory_space<vmem>>, %arg5: memref<1x128xf32, #tpu.memory_space<vmem>>, %arg6: memref<256x128xbf16, #tpu.memory_space<vmem>>, %arg7: memref<1x128xf32, #tpu.memory_space<vmem>>, %arg8: memref<8x128x128xbf16, #tpu.memory_space<vmem>>, %arg9: memref<8x1x128xf32, #tpu.memory_space<vmem>>, %arg10: memref<8x1152x128xbf16, #tpu.memory_space<vmem>>, %arg11: memref<8x1x128xf32, #tpu.memory_space<vmem>>, %arg12: memref<128x128xbf16, #tpu.memory_space<vmem>>, %arg13: memref<1x128xf32, #tpu.memory_space<vmem>>, %arg14: memref<256x256xbf16, #tpu.memory_space<vmem>>, %arg15: memref<1x256xf32, #tpu.memory_space<vmem>>, %arg16: memref<64x256xf32, #tpu.memory_space<vmem>>, %arg17: memref<64x128xf32, #tpu.memory_space<vmem>>, %arg18: memref<96x128xf32, #tpu.memory_space<vmem>>, %arg19: memref<64x1152xbf16, #tpu.memory_space<vmem>>) attributes {dimension_semantics = [#tpu.dimension_semantics<parallel>], iteration_bounds = array<i64: 2>, scalar_prefetch = 0 : i64, scratch_operands = 3 : i64, tpu.core_type = #tpu.core_type<tc>, window_params = [{transform_indices = @transform_0, window_bounds = array<i64: 64, 1152>}, {pipeline_mode = #tpu.pipeline_mode<synchronous>, transform_indices = @transform_1, window_bounds = array<i64: 1152, 256>}, {pipeline_mode = #tpu.pipeline_mode<synchronous>, transform_indices = @transform_2, window_bounds = array<i64: 1, 256>}, {pipeline_mode = #tpu.pipeline_mode<synchronous>, transform_indices = @transform_3, window_bounds = array<i64: 256, 128>}, {pipeline_mode = #tpu.pipeline_mode<synchronous>, transform_indices = @transform_4, window_bounds = array<i64: 1, 128>}, {pipeline_mode = #tpu.pipeline_mode<synchronous>, transform_indices = @transform_5, window_bounds = array<i64: 256, 128>}, {pipeline_mode = #tpu.pipeline_mode<synchronous>, transform_indices = @transform_6, window_bounds = array<i64: 1, 128>}, {pipeline_mode = #tpu.pipeline_mode<synchronous>, transform_indices = @transform_7, window_bounds = array<i64: 8, 128, 128>}, {pipeline_mode = #tpu.pipeline_mode<synchronous>, transform_indices = @transform_8, window_bounds = array<i64: 8, 1, 128>}, {pipeline_mode = #tpu.pipeline_mode<synchronous>, transform_indices = @transform_9, window_bounds = array<i64: 8, 1152, 128>}, {pipeline_mode = #tpu.pipeline_mode<synchronous>, transform_indices = @transform_10, window_bounds = array<i64: 8, 1, 128>}, {pipeline_mode = #tpu.pipeline_mode<synchronous>, transform_indices = @transform_11, window_bounds = array<i64: 128, 128>}, {pipeline_mode = #tpu.pipeline_mode<synchronous>, transform_indices = @transform_12, window_bounds = array<i64: 1, 128>}, {pipeline_mode = #tpu.pipeline_mode<synchronous>, transform_indices = @transform_13, window_bounds = array<i64: 256, 256>}, {pipeline_mode = #tpu.pipeline_mode<synchronous>, transform_indices = @transform_14, window_bounds = array<i64: 1, 256>}, {transform_indices = @transform_15, window_bounds = array<i64: 64, 256>}]} {
    %c0 = arith.constant 0 : index
    %c0_0 = arith.constant 0 : index
    %0 = vector.load %arg1[%c0, %c0_0] : memref<64x1152xbf16, #tpu.memory_space<vmem>>, vector<64x1152xbf16>
    %c0_1 = arith.constant 0 : index
    %c0_2 = arith.constant 0 : index
    %1 = vector.load %arg2[%c0_1, %c0_2] : memref<1152x256xbf16, #tpu.memory_space<vmem>>, vector<1152x256xbf16>
    %cst = arith.constant dense<0.000000e+00> : vector<64x256xf32>
    %2 = tpu.matmul %0, %1, %cst {dimension_numbers = #tpu.dot_dimension_numbers<[1], [0], [0], [1], [0, 0, 1, 1], [], []>} : vector<64x1152xbf16>, vector<1152x256xbf16>, vector<64x256xf32> -> vector<64x256xf32>
    %c0_3 = arith.constant 0 : index
    %c0_4 = arith.constant 0 : index
    %3 = vector.load %arg3[%c0_3, %c0_4] : memref<1x256xf32, #tpu.memory_space<vmem>>, vector<1x256xf32>
    %4 = vector.broadcast %3 : vector<1x256xf32> to vector<64x256xf32>
    %5 = arith.addf %2, %4 : vector<64x256xf32>
    %cst_5 = arith.constant 2.000000e+01 : f32
    %6 = vector.broadcast %cst_5 : f32 to vector<64x256xf32>
    %7 = arith.minimumf %5, %6 : vector<64x256xf32>
    %8 = math.exp %7 : vector<64x256xf32>
    %cst_6 = arith.constant 1.000000e+00 : f32
    %9 = vector.broadcast %cst_6 : f32 to vector<64x256xf32>
    %10 = arith.addf %9, %8 : vector<64x256xf32>
    %cst_7 = arith.constant 1.000000e+00 : f32
    %11 = vector.broadcast %cst_7 : f32 to vector<64x256xf32>
    %12 = arith.addf %11, %8 : vector<64x256xf32>
    %13 = arith.mulf %10, %12 : vector<64x256xf32>
    %cst_8 = arith.constant 2.000000e+01 : f32
    %14 = vector.broadcast %cst_8 : f32 to vector<64x256xf32>
    %15 = arith.cmpf ogt, %5, %14 : vector<64x256xf32>
    %cst_9 = arith.constant 1.000000e+00 : f32
    %16 = vector.broadcast %cst_9 : f32 to vector<64x256xf32>
    %17 = arith.subf %13, %16 : vector<64x256xf32>
    %cst_10 = arith.constant 1.000000e+00 : f32
    %18 = vector.broadcast %cst_10 : f32 to vector<64x256xf32>
    %19 = arith.addf %13, %18 : vector<64x256xf32>
    %20 = tpu.reciprocal %19 {approx = true} : vector<64x256xf32> -> vector<64x256xf32>
    %21 = arith.mulf %17, %20 : vector<64x256xf32>
    %cst_11 = arith.constant 1.000000e+00 : f32
    %22 = vector.broadcast %cst_11 : f32 to vector<64x256xf32>
    %23 = arith.select %15, %22, %21 : vector<64x256xi1>, vector<64x256xf32>
    %24 = arith.mulf %5, %23 : vector<64x256xf32>
    %25 = arith.truncf %24 : vector<64x256xf32> to vector<64x256xbf16>
    %c0_12 = arith.constant 0 : index
    %c0_13 = arith.constant 0 : index
    %26 = vector.load %arg4[%c0_12, %c0_13] : memref<256x128xbf16, #tpu.memory_space<vmem>>, vector<256x128xbf16>
    %cst_14 = arith.constant dense<0.000000e+00> : vector<64x128xf32>
    %27 = tpu.matmul %25, %26, %cst_14 {dimension_numbers = #tpu.dot_dimension_numbers<[1], [0], [0], [1], [0, 0, 1, 1], [], []>} : vector<64x256xbf16>, vector<256x128xbf16>, vector<64x128xf32> -> vector<64x128xf32>
    %c0_15 = arith.constant 0 : index
    %c0_16 = arith.constant 0 : index
    %28 = vector.load %arg5[%c0_15, %c0_16] : memref<1x128xf32, #tpu.memory_space<vmem>>, vector<1x128xf32>
    %29 = vector.broadcast %28 : vector<1x128xf32> to vector<64x128xf32>
    %30 = arith.addf %27, %29 : vector<64x128xf32>
    %cst_17 = arith.constant 2.000000e+01 : f32
    %31 = vector.broadcast %cst_17 : f32 to vector<64x128xf32>
    %32 = arith.minimumf %30, %31 : vector<64x128xf32>
    %33 = math.exp %32 : vector<64x128xf32>
    %cst_18 = arith.constant 1.000000e+00 : f32
    %34 = vector.broadcast %cst_18 : f32 to vector<64x128xf32>
    %35 = arith.addf %34, %33 : vector<64x128xf32>
    %cst_19 = arith.constant 1.000000e+00 : f32
    %36 = vector.broadcast %cst_19 : f32 to vector<64x128xf32>
    %37 = arith.addf %36, %33 : vector<64x128xf32>
    %38 = arith.mulf %35, %37 : vector<64x128xf32>
    %cst_20 = arith.constant 2.000000e+01 : f32
    %39 = vector.broadcast %cst_20 : f32 to vector<64x128xf32>
    %40 = arith.cmpf ogt, %30, %39 : vector<64x128xf32>
    %cst_21 = arith.constant 1.000000e+00 : f32
    %41 = vector.broadcast %cst_21 : f32 to vector<64x128xf32>
    %42 = arith.subf %38, %41 : vector<64x128xf32>
    %cst_22 = arith.constant 1.000000e+00 : f32
    %43 = vector.broadcast %cst_22 : f32 to vector<64x128xf32>
    %44 = arith.addf %38, %43 : vector<64x128xf32>
    %45 = tpu.reciprocal %44 {approx = true} : vector<64x128xf32> -> vector<64x128xf32>
    %46 = arith.mulf %42, %45 : vector<64x128xf32>
    %cst_23 = arith.constant 1.000000e+00 : f32
    %47 = vector.broadcast %cst_23 : f32 to vector<64x128xf32>
    %48 = arith.select %40, %47, %46 : vector<64x128xi1>, vector<64x128xf32>
    %49 = arith.mulf %30, %48 : vector<64x128xf32>
    %50 = arith.truncf %49 : vector<64x128xf32> to vector<64x128xbf16>
    %c0_24 = arith.constant 0 : index
    %c0_25 = arith.constant 0 : index
    %51 = vector.load %arg6[%c0_24, %c0_25] : memref<256x128xbf16, #tpu.memory_space<vmem>>, vector<256x128xbf16>
    %cst_26 = arith.constant dense<0.000000e+00> : vector<64x128xf32>
    %52 = tpu.matmul %25, %51, %cst_26 {dimension_numbers = #tpu.dot_dimension_numbers<[1], [0], [0], [1], [0, 0, 1, 1], [], []>} : vector<64x256xbf16>, vector<256x128xbf16>, vector<64x128xf32> -> vector<64x128xf32>
    %c0_27 = arith.constant 0 : index
    %c0_28 = arith.constant 0 : index
    %53 = vector.load %arg7[%c0_27, %c0_28] : memref<1x128xf32, #tpu.memory_space<vmem>>, vector<1x128xf32>
    %54 = vector.broadcast %53 : vector<1x128xf32> to vector<64x128xf32>
    %55 = arith.addf %52, %54 : vector<64x128xf32>
    %cst_29 = arith.constant 2.000000e+01 : f32
    %56 = vector.broadcast %cst_29 : f32 to vector<64x128xf32>
    %57 = arith.minimumf %55, %56 : vector<64x128xf32>
    %58 = math.exp %57 : vector<64x128xf32>
    %cst_30 = arith.constant 1.000000e+00 : f32
    %59 = vector.broadcast %cst_30 : f32 to vector<64x128xf32>
    %60 = arith.addf %59, %58 : vector<64x128xf32>
    %cst_31 = arith.constant 1.000000e+00 : f32
    %61 = vector.broadcast %cst_31 : f32 to vector<64x128xf32>
    %62 = arith.addf %61, %58 : vector<64x128xf32>
    %63 = arith.mulf %60, %62 : vector<64x128xf32>
    %cst_32 = arith.constant 2.000000e+01 : f32
    %64 = vector.broadcast %cst_32 : f32 to vector<64x128xf32>
    %65 = arith.cmpf ogt, %55, %64 : vector<64x128xf32>
    %cst_33 = arith.constant 1.000000e+00 : f32
    %66 = vector.broadcast %cst_33 : f32 to vector<64x128xf32>
    %67 = arith.subf %63, %66 : vector<64x128xf32>
    %cst_34 = arith.constant 1.000000e+00 : f32
    %68 = vector.broadcast %cst_34 : f32 to vector<64x128xf32>
    %69 = arith.addf %63, %68 : vector<64x128xf32>
    %70 = tpu.reciprocal %69 {approx = true} : vector<64x128xf32> -> vector<64x128xf32>
    %71 = arith.mulf %67, %70 : vector<64x128xf32>
    %cst_35 = arith.constant 1.000000e+00 : f32
    %72 = vector.broadcast %cst_35 : f32 to vector<64x128xf32>
    %73 = arith.select %65, %72, %71 : vector<64x128xi1>, vector<64x128xf32>
    %74 = arith.mulf %55, %73 : vector<64x128xf32>
    %c0_36 = arith.constant 0 : index
    %c0_37 = arith.constant 0 : index
    %75 = vector.load %arg17[%c0_36, %c0_37] : memref<64x128xf32, #tpu.memory_space<vmem>>, vector<64x128xf32>
    tpu.vector_store %arg17[%c0_36, %c0_37], %74 {strides = array<i32>} : memref<64x128xf32, #tpu.memory_space<vmem>>, vector<64x128xf32>,
    %cst_38 = arith.constant 0.000000e+00 : f32
    %76 = vector.broadcast %cst_38 : f32 to vector<96x128xf32>
    %c0_39 = arith.constant 0 : index
    %c0_40 = arith.constant 0 : index
    %77 = vector.load %arg18[%c0_39, %c0_40] : memref<96x128xf32, #tpu.memory_space<vmem>>, vector<96x128xf32>
    tpu.vector_store %arg18[%c0_39, %c0_40], %76 {strides = array<i32>} : memref<96x128xf32, #tpu.memory_space<vmem>>, vector<96x128xf32>,
    %c0_i32 = arith.constant 0 : i32
    %c8_i32 = arith.constant 8 : i32
    %78 = arith.addi %c0_i32, %c8_i32 : i32
    %c1_i32 = arith.constant 1 : i32
    scf.for %arg20 = %c0_i32 to %78 step %c1_i32  : i32 {
      %c0_70 = arith.constant 0 : index
      %c0_71 = arith.constant 0 : index
      %132 = vector.load %arg17[%c0_70, %c0_71] : memref<64x128xf32, #tpu.memory_space<vmem>>, vector<64x128xf32>
      %133 = arith.truncf %132 : vector<64x128xf32> to vector<64x128xbf16>
      %134 = arith.index_cast %arg20 : i32 to index
      %c0_72 = arith.constant 0 : index
      %c0_73 = arith.constant 0 : index
      %135 = vector.load %arg8[%134, %c0_72, %c0_73] : memref<8x128x128xbf16, #tpu.memory_space<vmem>>, vector<1x128x128xbf16>
      %136 = vector.shape_cast %135 : vector<1x128x128xbf16> to vector<128x128xbf16>
      %cst_74 = arith.constant dense<0.000000e+00> : vector<64x128xf32>
      %137 = tpu.matmul %133, %136, %cst_74 {dimension_numbers = #tpu.dot_dimension_numbers<[1], [0], [0], [1], [0, 0, 1, 1], [], []>} : vector<64x128xbf16>, vector<128x128xbf16>, vector<64x128xf32> -> vector<64x128xf32>
      %138 = arith.index_cast %arg20 : i32 to index
      %c0_75 = arith.constant 0 : index
      %c0_76 = arith.constant 0 : index
      %139 = vector.load %arg9[%138, %c0_75, %c0_76] : memref<8x1x128xf32, #tpu.memory_space<vmem>>, vector<1x1x128xf32>
      %140 = vector.shape_cast %139 : vector<1x1x128xf32> to vector<1x128xf32>
      %141 = vector.broadcast %140 : vector<1x128xf32> to vector<64x128xf32>
      %142 = arith.addf %137, %141 : vector<64x128xf32>
      %cst_77 = arith.constant 2.000000e+01 : f32
      %143 = vector.broadcast %cst_77 : f32 to vector<64x128xf32>
      %144 = arith.minimumf %142, %143 : vector<64x128xf32>
      %145 = math.exp %144 : vector<64x128xf32>
      %cst_78 = arith.constant 1.000000e+00 : f32
      %146 = vector.broadcast %cst_78 : f32 to vector<64x128xf32>
      %147 = arith.addf %146, %145 : vector<64x128xf32>
      %cst_79 = arith.constant 1.000000e+00 : f32
      %148 = vector.broadcast %cst_79 : f32 to vector<64x128xf32>
      %149 = arith.addf %148, %145 : vector<64x128xf32>
      %150 = arith.mulf %147, %149 : vector<64x128xf32>
      %cst_80 = arith.constant 2.000000e+01 : f32
      %151 = vector.broadcast %cst_80 : f32 to vector<64x128xf32>
      %152 = arith.cmpf ogt, %142, %151 : vector<64x128xf32>
      %cst_81 = arith.constant 1.000000e+00 : f32
      %153 = vector.broadcast %cst_81 : f32 to vector<64x128xf32>
      %154 = arith.subf %150, %153 : vector<64x128xf32>
      %cst_82 = arith.constant 1.000000e+00 : f32
      %155 = vector.broadcast %cst_82 : f32 to vector<64x128xf32>
      %156 = arith.addf %150, %155 : vector<64x128xf32>
      %157 = tpu.reciprocal %156 {approx = true} : vector<64x128xf32> -> vector<64x128xf32>
      %158 = arith.mulf %154, %157 : vector<64x128xf32>
      %cst_83 = arith.constant 1.000000e+00 : f32
      %159 = vector.broadcast %cst_83 : f32 to vector<64x128xf32>
      %160 = arith.select %152, %159, %158 : vector<64x128xi1>, vector<64x128xf32>
      %161 = arith.mulf %142, %160 : vector<64x128xf32>
      %c16 = arith.constant 16 : index
      %c0_84 = arith.constant 0 : index
      %162 = vector.load %arg18[%c16, %c0_84] : memref<96x128xf32, #tpu.memory_space<vmem>>, vector<64x128xf32>
      tpu.vector_store %arg18[%c16, %c0_84], %161 {strides = array<i32>} : memref<96x128xf32, #tpu.memory_space<vmem>>, vector<64x128xf32>,
      %163 = tpu.iota {dimensions = array<i32: 0>} : vector<64x128xi32>
      %c8_i32_85 = arith.constant 8 : i32
      %c0_i32_86 = arith.constant 0 : i32
      %164 = arith.cmpi eq, %c8_i32_85, %c0_i32_86 : i32
      %c1_i32_87 = arith.constant 1 : i32
      %165 = arith.select %164, %c1_i32_87, %c8_i32_85 : i32
      %166 = vector.broadcast %165 : i32 to vector<64x128xi32>
      %167 = arith.remsi %163, %166 : vector<64x128xi32>
      %c0_i32_88 = arith.constant 0 : i32
      %168 = vector.broadcast %c0_i32_88 : i32 to vector<64x128xi32>
      %169 = arith.cmpi ne, %167, %168 : vector<64x128xi32>
      %c0_i32_89 = arith.constant 0 : i32
      %170 = vector.broadcast %c0_i32_89 : i32 to vector<64x128xi32>
      %171 = arith.cmpi slt, %167, %170 : vector<64x128xi32>
      %c0_i32_90 = arith.constant 0 : i32
      %172 = arith.cmpi slt, %165, %c0_i32_90 : i32
      %173 = vector.broadcast %172 : i1 to vector<64x128xi1>
      %174 = vector.broadcast %173 : vector<64x128xi1> to vector<64x128xi1>
      %175 = arith.xori %171, %174 : vector<64x128xi1>
      %176 = arith.andi %175, %169 : vector<64x128xi1>
      %177 = vector.broadcast %165 : i32 to vector<64x128xi32>
      %178 = arith.addi %167, %177 : vector<64x128xi32>
      %179 = arith.select %176, %178, %167 : vector<64x128xi1>, vector<64x128xi32>
      %c7 = arith.constant 7 : index
      %c0_91 = arith.constant 0 : index
      %180 = vector.load %arg18[%c7, %c0_91] : memref<96x128xf32, #tpu.memory_space<vmem>>, vector<64x128xf32>
      %c0_i32_92 = arith.constant 0 : i32
      %181 = vector.broadcast %c0_i32_92 : i32 to vector<64x128xi32>
      %182 = arith.cmpi sgt, %179, %181 : vector<64x128xi32>
      %cst_93 = arith.constant 0.000000e+00 : f32
      %183 = vector.broadcast %cst_93 : f32 to vector<64x128xf32>
      %184 = arith.select %182, %180, %183 : vector<64x128xi1>, vector<64x128xf32>
      %185 = arith.truncf %184 : vector<64x128xf32> to vector<64x128xbf16>
      %c0_94 = arith.constant 0 : index
      %c0_95 = arith.constant 0 : index
      %186 = vector.load %arg19[%c0_94, %c0_95] : memref<64x1152xbf16, #tpu.memory_space<vmem>>, vector<64x128xbf16>
      tpu.vector_store %arg19[%c0_94, %c0_95], %185 {strides = array<i32>} : memref<64x1152xbf16, #tpu.memory_space<vmem>>, vector<64x128xbf16>,
      %c8 = arith.constant 8 : index
      %c0_96 = arith.constant 0 : index
      %187 = vector.load %arg18[%c8, %c0_96] : memref<96x128xf32, #tpu.memory_space<vmem>>, vector<64x128xf32>
      %188 = arith.truncf %187 : vector<64x128xf32> to vector<64x128xbf16>
      %c0_97 = arith.constant 0 : index
      %c128 = arith.constant 128 : index
      %189 = vector.load %arg19[%c0_97, %c128] : memref<64x1152xbf16, #tpu.memory_space<vmem>>, vector<64x128xbf16>
      tpu.vector_store %arg19[%c0_97, %c128], %188 {strides = array<i32>} : memref<64x1152xbf16, #tpu.memory_space<vmem>>, vector<64x128xbf16>,
      %c9 = arith.constant 9 : index
      %c0_98 = arith.constant 0 : index
      %190 = vector.load %arg18[%c9, %c0_98] : memref<96x128xf32, #tpu.memory_space<vmem>>, vector<64x128xf32>
      %c7_i32 = arith.constant 7 : i32
      %191 = vector.broadcast %c7_i32 : i32 to vector<64x128xi32>
      %192 = arith.cmpi slt, %179, %191 : vector<64x128xi32>
      %cst_99 = arith.constant 0.000000e+00 : f32
      %193 = vector.broadcast %cst_99 : f32 to vector<64x128xf32>
      %194 = arith.select %192, %190, %193 : vector<64x128xi1>, vector<64x128xf32>
      %195 = arith.truncf %194 : vector<64x128xf32> to vector<64x128xbf16>
      %c0_100 = arith.constant 0 : index
      %c256 = arith.constant 256 : index
      %196 = vector.load %arg19[%c0_100, %c256] : memref<64x1152xbf16, #tpu.memory_space<vmem>>, vector<64x128xbf16>
      tpu.vector_store %arg19[%c0_100, %c256], %195 {strides = array<i32>} : memref<64x1152xbf16, #tpu.memory_space<vmem>>, vector<64x128xbf16>,
      %c15 = arith.constant 15 : index
      %c0_101 = arith.constant 0 : index
      %197 = vector.load %arg18[%c15, %c0_101] : memref<96x128xf32, #tpu.memory_space<vmem>>, vector<64x128xf32>
      %c0_i32_102 = arith.constant 0 : i32
      %198 = vector.broadcast %c0_i32_102 : i32 to vector<64x128xi32>
      %199 = arith.cmpi sgt, %179, %198 : vector<64x128xi32>
      %cst_103 = arith.constant 0.000000e+00 : f32
      %200 = vector.broadcast %cst_103 : f32 to vector<64x128xf32>
      %201 = arith.select %199, %197, %200 : vector<64x128xi1>, vector<64x128xf32>
      %202 = arith.truncf %201 : vector<64x128xf32> to vector<64x128xbf16>
      %c0_104 = arith.constant 0 : index
      %c384 = arith.constant 384 : index
      %203 = vector.load %arg19[%c0_104, %c384] : memref<64x1152xbf16, #tpu.memory_space<vmem>>, vector<64x128xbf16>
      tpu.vector_store %arg19[%c0_104, %c384], %202 {strides = array<i32>} : memref<64x1152xbf16, #tpu.memory_space<vmem>>, vector<64x128xbf16>,
      %c16_105 = arith.constant 16 : index
      %c0_106 = arith.constant 0 : index
      %204 = vector.load %arg18[%c16_105, %c0_106] : memref<96x128xf32, #tpu.memory_space<vmem>>, vector<64x128xf32>
      %205 = arith.truncf %204 : vector<64x128xf32> to vector<64x128xbf16>
      %c0_107 = arith.constant 0 : index
      %c512 = arith.constant 512 : index
      %206 = vector.load %arg19[%c0_107, %c512] : memref<64x1152xbf16, #tpu.memory_space<vmem>>, vector<64x128xbf16>
      tpu.vector_store %arg19[%c0_107, %c512], %205 {strides = array<i32>} : memref<64x1152xbf16, #tpu.memory_space<vmem>>, vector<64x128xbf16>,
      %c17 = arith.constant 17 : index
      %c0_108 = arith.constant 0 : index
      %207 = vector.load %arg18[%c17, %c0_108] : memref<96x128xf32, #tpu.memory_space<vmem>>, vector<64x128xf32>
      %c7_i32_109 = arith.constant 7 : i32
      %208 = vector.broadcast %c7_i32_109 : i32 to vector<64x128xi32>
      %209 = arith.cmpi slt, %179, %208 : vector<64x128xi32>
      %cst_110 = arith.constant 0.000000e+00 : f32
      %210 = vector.broadcast %cst_110 : f32 to vector<64x128xf32>
      %211 = arith.select %209, %207, %210 : vector<64x128xi1>, vector<64x128xf32>
      %212 = arith.truncf %211 : vector<64x128xf32> to vector<64x128xbf16>
      %c0_111 = arith.constant 0 : index
      %c640 = arith.constant 640 : index
      %213 = vector.load %arg19[%c0_111, %c640] : memref<64x1152xbf16, #tpu.memory_space<vmem>>, vector<64x128xbf16>
      tpu.vector_store %arg19[%c0_111, %c640], %212 {strides = array<i32>} : memref<64x1152xbf16, #tpu.memory_space<vmem>>, vector<64x128xbf16>,
      %c23 = arith.constant 23 : index
      %c0_112 = arith.constant 0 : index
      %214 = vector.load %arg18[%c23, %c0_112] : memref<96x128xf32, #tpu.memory_space<vmem>>, vector<64x128xf32>
      %c0_i32_113 = arith.constant 0 : i32
      %215 = vector.broadcast %c0_i32_113 : i32 to vector<64x128xi32>
      %216 = arith.cmpi sgt, %179, %215 : vector<64x128xi32>
      %cst_114 = arith.constant 0.000000e+00 : f32
      %217 = vector.broadcast %cst_114 : f32 to vector<64x128xf32>
      %218 = arith.select %216, %214, %217 : vector<64x128xi1>, vector<64x128xf32>
      %219 = arith.truncf %218 : vector<64x128xf32> to vector<64x128xbf16>
      %c0_115 = arith.constant 0 : index
      %c768 = arith.constant 768 : index
      %220 = vector.load %arg19[%c0_115, %c768] : memref<64x1152xbf16, #tpu.memory_space<vmem>>, vector<64x128xbf16>
      tpu.vector_store %arg19[%c0_115, %c768], %219 {strides = array<i32>} : memref<64x1152xbf16, #tpu.memory_space<vmem>>, vector<64x128xbf16>,
      %c24 = arith.constant 24 : index
      %c0_116 = arith.constant 0 : index
      %221 = vector.load %arg18[%c24, %c0_116] : memref<96x128xf32, #tpu.memory_space<vmem>>, vector<64x128xf32>
      %222 = arith.truncf %221 : vector<64x128xf32> to vector<64x128xbf16>
      %c0_117 = arith.constant 0 : index
      %c896 = arith.constant 896 : index
      %223 = vector.load %arg19[%c0_117, %c896] : memref<64x1152xbf16, #tpu.memory_space<vmem>>, vector<64x128xbf16>
      tpu.vector_store %arg19[%c0_117, %c896], %222 {strides = array<i32>} : memref<64x1152xbf16, #tpu.memory_space<vmem>>, vector<64x128xbf16>,
      %c25 = arith.constant 25 : index
      %c0_118 = arith.constant 0 : index
      %224 = vector.load %arg18[%c25, %c0_118] : memref<96x128xf32, #tpu.memory_space<vmem>>, vector<64x128xf32>
      %c7_i32_119 = arith.constant 7 : i32
      %225 = vector.broadcast %c7_i32_119 : i32 to vector<64x128xi32>
      %226 = arith.cmpi slt, %179, %225 : vector<64x128xi32>
      %cst_120 = arith.constant 0.000000e+00 : f32
      %227 = vector.broadcast %cst_120 : f32 to vector<64x128xf32>
      %228 = arith.select %226, %224, %227 : vector<64x128xi1>, vector<64x128xf32>
      %229 = arith.truncf %228 : vector<64x128xf32> to vector<64x128xbf16>
      %c0_121 = arith.constant 0 : index
      %c1024 = arith.constant 1024 : index
      %230 = vector.load %arg19[%c0_121, %c1024] : memref<64x1152xbf16, #tpu.memory_space<vmem>>, vector<64x128xbf16>
      tpu.vector_store %arg19[%c0_121, %c1024], %229 {strides = array<i32>} : memref<64x1152xbf16, #tpu.memory_space<vmem>>, vector<64x128xbf16>,
      %c0_122 = arith.constant 0 : index
      %c0_123 = arith.constant 0 : index
      %231 = vector.load %arg19[%c0_122, %c0_123] : memref<64x1152xbf16, #tpu.memory_space<vmem>>, vector<64x1152xbf16>
      %232 = arith.index_cast %arg20 : i32 to index
      %c0_124 = arith.constant 0 : index
      %c0_125 = arith.constant 0 : index
      %233 = vector.load %arg10[%232, %c0_124, %c0_125] : memref<8x1152x128xbf16, #tpu.memory_space<vmem>>, vector<1x1152x128xbf16>
      %234 = vector.shape_cast %233 : vector<1x1152x128xbf16> to vector<1152x128xbf16>
      %cst_126 = arith.constant dense<0.000000e+00> : vector<64x128xf32>
      %235 = tpu.matmul %231, %234, %cst_126 {dimension_numbers = #tpu.dot_dimension_numbers<[1], [0], [0], [1], [0, 0, 1, 1], [], []>} : vector<64x1152xbf16>, vector<1152x128xbf16>, vector<64x128xf32> -> vector<64x128xf32>
      %236 = arith.index_cast %arg20 : i32 to index
      %c0_127 = arith.constant 0 : index
      %c0_128 = arith.constant 0 : index
      %237 = vector.load %arg11[%236, %c0_127, %c0_128] : memref<8x1x128xf32, #tpu.memory_space<vmem>>, vector<1x1x128xf32>
      %238 = vector.shape_cast %237 : vector<1x1x128xf32> to vector<1x128xf32>
      %239 = vector.broadcast %238 : vector<1x128xf32> to vector<64x128xf32>
      %240 = arith.addf %235, %239 : vector<64x128xf32>
      %cst_129 = arith.constant 2.000000e+01 : f32
      %241 = vector.broadcast %cst_129 : f32 to vector<64x128xf32>
      %242 = arith.minimumf %240, %241 : vector<64x128xf32>
      %243 = math.exp %242 : vector<64x128xf32>
      %cst_130 = arith.constant 1.000000e+00 : f32
      %244 = vector.broadcast %cst_130 : f32 to vector<64x128xf32>
      %245 = arith.addf %244, %243 : vector<64x128xf32>
      %cst_131 = arith.constant 1.000000e+00 : f32
      %246 = vector.broadcast %cst_131 : f32 to vector<64x128xf32>
      %247 = arith.addf %246, %243 : vector<64x128xf32>
      %248 = arith.mulf %245, %247 : vector<64x128xf32>
      %cst_132 = arith.constant 2.000000e+01 : f32
      %249 = vector.broadcast %cst_132 : f32 to vector<64x128xf32>
      %250 = arith.cmpf ogt, %240, %249 : vector<64x128xf32>
      %cst_133 = arith.constant 1.000000e+00 : f32
      %251 = vector.broadcast %cst_133 : f32 to vector<64x128xf32>
      %252 = arith.subf %248, %251 : vector<64x128xf32>
      %cst_134 = arith.constant 1.000000e+00 : f32
      %253 = vector.broadcast %cst_134 : f32 to vector<64x128xf32>
      %254 = arith.addf %248, %253 : vector<64x128xf32>
      %255 = tpu.reciprocal %254 {approx = true} : vector<64x128xf32> -> vector<64x128xf32>
      %256 = arith.mulf %252, %255 : vector<64x128xf32>
      %cst_135 = arith.constant 1.000000e+00 : f32
      %257 = vector.broadcast %cst_135 : f32 to vector<64x128xf32>
      %258 = arith.select %250, %257, %256 : vector<64x128xi1>, vector<64x128xf32>
      %259 = arith.mulf %240, %258 : vector<64x128xf32>
      %260 = arith.addf %259, %132 : vector<64x128xf32>
      %c0_136 = arith.constant 0 : index
      %c0_137 = arith.constant 0 : index
      %261 = vector.load %arg17[%c0_136, %c0_137] : memref<64x128xf32, #tpu.memory_space<vmem>>, vector<64x128xf32>
      tpu.vector_store %arg17[%c0_136, %c0_137], %260 {strides = array<i32>} : memref<64x128xf32, #tpu.memory_space<vmem>>, vector<64x128xf32>,
    }
    %c8_i32_41 = arith.constant 8 : i32
    %c0_42 = arith.constant 0 : index
    %c0_43 = arith.constant 0 : index
    %79 = vector.load %arg17[%c0_42, %c0_43] : memref<64x128xf32, #tpu.memory_space<vmem>>, vector<64x128xf32>
    %80 = arith.truncf %79 : vector<64x128xf32> to vector<64x128xbf16>
    %c0_44 = arith.constant 0 : index
    %c0_45 = arith.constant 0 : index
    %81 = vector.load %arg12[%c0_44, %c0_45] : memref<128x128xbf16, #tpu.memory_space<vmem>>, vector<128x128xbf16>
    %cst_46 = arith.constant dense<0.000000e+00> : vector<64x128xf32>
    %82 = tpu.matmul %80, %81, %cst_46 {dimension_numbers = #tpu.dot_dimension_numbers<[1], [0], [0], [1], [0, 0, 1, 1], [], []>} : vector<64x128xbf16>, vector<128x128xbf16>, vector<64x128xf32> -> vector<64x128xf32>
    %c0_47 = arith.constant 0 : index
    %c0_48 = arith.constant 0 : index
    %83 = vector.load %arg13[%c0_47, %c0_48] : memref<1x128xf32, #tpu.memory_space<vmem>>, vector<1x128xf32>
    %84 = vector.broadcast %83 : vector<1x128xf32> to vector<64x128xf32>
    %85 = arith.addf %82, %84 : vector<64x128xf32>
    %cst_49 = arith.constant 2.000000e+01 : f32
    %86 = vector.broadcast %cst_49 : f32 to vector<64x128xf32>
    %87 = arith.minimumf %85, %86 : vector<64x128xf32>
    %88 = math.exp %87 : vector<64x128xf32>
    %cst_50 = arith.constant 1.000000e+00 : f32
    %89 = vector.broadcast %cst_50 : f32 to vector<64x128xf32>
    %90 = arith.addf %89, %88 : vector<64x128xf32>
    %cst_51 = arith.constant 1.000000e+00 : f32
    %91 = vector.broadcast %cst_51 : f32 to vector<64x128xf32>
    %92 = arith.addf %91, %88 : vector<64x128xf32>
    %93 = arith.mulf %90, %92 : vector<64x128xf32>
    %cst_52 = arith.constant 2.000000e+01 : f32
    %94 = vector.broadcast %cst_52 : f32 to vector<64x128xf32>
    %95 = arith.cmpf ogt, %85, %94 : vector<64x128xf32>
    %cst_53 = arith.constant 1.000000e+00 : f32
    %96 = vector.broadcast %cst_53 : f32 to vector<64x128xf32>
    %97 = arith.subf %93, %96 : vector<64x128xf32>
    %cst_54 = arith.constant 1.000000e+00 : f32
    %98 = vector.broadcast %cst_54 : f32 to vector<64x128xf32>
    %99 = arith.addf %93, %98 : vector<64x128xf32>
    %100 = tpu.reciprocal %99 {approx = true} : vector<64x128xf32> -> vector<64x128xf32>
    %101 = arith.mulf %97, %100 : vector<64x128xf32>
    %cst_55 = arith.constant 1.000000e+00 : f32
    %102 = vector.broadcast %cst_55 : f32 to vector<64x128xf32>
    %103 = arith.select %95, %102, %101 : vector<64x128xi1>, vector<64x128xf32>
    %104 = arith.mulf %85, %103 : vector<64x128xf32>
    %105 = arith.truncf %104 : vector<64x128xf32> to vector<64x128xbf16>
    %106 = tpu.concatenate %105, %50 in 1 : vector<64x128xbf16>, vector<64x128xbf16> -> vector<64x256xbf16>
    %c0_56 = arith.constant 0 : index
    %c0_57 = arith.constant 0 : index
    %107 = vector.load %arg14[%c0_56, %c0_57] : memref<256x256xbf16, #tpu.memory_space<vmem>>, vector<256x256xbf16>
    %cst_58 = arith.constant dense<0.000000e+00> : vector<64x256xf32>
    %108 = tpu.matmul %106, %107, %cst_58 {dimension_numbers = #tpu.dot_dimension_numbers<[1], [0], [0], [1], [0, 0, 1, 1], [], []>} : vector<64x256xbf16>, vector<256x256xbf16>, vector<64x256xf32> -> vector<64x256xf32>
    %c0_59 = arith.constant 0 : index
    %c0_60 = arith.constant 0 : index
    %109 = vector.load %arg15[%c0_59, %c0_60] : memref<1x256xf32, #tpu.memory_space<vmem>>, vector<1x256xf32>
    %110 = vector.broadcast %109 : vector<1x256xf32> to vector<64x256xf32>
    %111 = arith.addf %108, %110 : vector<64x256xf32>
    %cst_61 = arith.constant 2.000000e+01 : f32
    %112 = vector.broadcast %cst_61 : f32 to vector<64x256xf32>
    %113 = arith.minimumf %111, %112 : vector<64x256xf32>
    %114 = math.exp %113 : vector<64x256xf32>
    %cst_62 = arith.constant 1.000000e+00 : f32
    %115 = vector.broadcast %cst_62 : f32 to vector<64x256xf32>
    %116 = arith.addf %115, %114 : vector<64x256xf32>
    %cst_63 = arith.constant 1.000000e+00 : f32
    %117 = vector.broadcast %cst_63 : f32 to vector<64x256xf32>
    %118 = arith.addf %117, %114 : vector<64x256xf32>
    %119 = arith.mulf %116, %118 : vector<64x256xf32>
    %cst_64 = arith.constant 2.000000e+01 : f32
    %120 = vector.broadcast %cst_64 : f32 to vector<64x256xf32>
    %121 = arith.cmpf ogt, %111, %120 : vector<64x256xf32>
    %cst_65 = arith.constant 1.000000e+00 : f32
    %122 = vector.broadcast %cst_65 : f32 to vector<64x256xf32>
    %123 = arith.subf %119, %122 : vector<64x256xf32>
    %cst_66 = arith.constant 1.000000e+00 : f32
    %124 = vector.broadcast %cst_66 : f32 to vector<64x256xf32>
    %125 = arith.addf %119, %124 : vector<64x256xf32>
    %126 = tpu.reciprocal %125 {approx = true} : vector<64x256xf32> -> vector<64x256xf32>
    %127 = arith.mulf %123, %126 : vector<64x256xf32>
    %cst_67 = arith.constant 1.000000e+00 : f32
    %128 = vector.broadcast %cst_67 : f32 to vector<64x256xf32>
    %129 = arith.select %121, %128, %127 : vector<64x256xi1>, vector<64x256xf32>
    %130 = arith.mulf %111, %129 : vector<64x256xf32>
    %c0_68 = arith.constant 0 : index
    %c0_69 = arith.constant 0 : index
    %131 = vector.load %arg16[%c0_68, %c0_69] : memref<64x256xf32, #tpu.memory_space<vmem>>, vector<64x256xf32>
    tpu.vector_store %arg16[%c0_68, %c0_69], %130 {strides = array<i32>} : memref<64x256xf32, #tpu.memory_space<vmem>>, vector<64x256xf32>,
    return
  }
  func.func @transform_0(%arg0: i32) -> (i32, i32) {
    %c0_i32 = arith.constant 0 : i32
    %c0_i32_0 = arith.constant 0 : i32
    return %arg0, %c0_i32 : i32, i32
  }
  func.func @transform_1(%arg0: i32) -> (i32, i32) {
    %c0_i32 = arith.constant 0 : i32
    %c0_i32_0 = arith.constant 0 : i32
    %c0_i32_1 = arith.constant 0 : i32
    return %c0_i32, %c0_i32_0 : i32, i32
  }
  func.func @transform_2(%arg0: i32) -> (i32, i32) {
    %c0_i32 = arith.constant 0 : i32
    %c0_i32_0 = arith.constant 0 : i32
    %c0_i32_1 = arith.constant 0 : i32
    return %c0_i32, %c0_i32_0 : i32, i32
  }
  func.func @transform_3(%arg0: i32) -> (i32, i32) {
    %c0_i32 = arith.constant 0 : i32
    %c0_i32_0 = arith.constant 0 : i32
    %c0_i32_1 = arith.constant 0 : i32
    return %c0_i32, %c0_i32_0 : i32, i32
  }
  func.func @transform_4(%arg0: i32) -> (i32, i32) {
    %c0_i32 = arith.constant 0 : i32
    %c0_i32_0 = arith.constant 0 : i32
    %c0_i32_1 = arith.constant 0 : i32
    return %c0_i32, %c0_i32_0 : i32, i32
  }
  func.func @transform_5(%arg0: i32) -> (i32, i32) {
    %c0_i32 = arith.constant 0 : i32
    %c0_i32_0 = arith.constant 0 : i32
    %c0_i32_1 = arith.constant 0 : i32
    return %c0_i32, %c0_i32_0 : i32, i32
  }
  func.func @transform_6(%arg0: i32) -> (i32, i32) {
    %c0_i32 = arith.constant 0 : i32
    %c0_i32_0 = arith.constant 0 : i32
    %c0_i32_1 = arith.constant 0 : i32
    return %c0_i32, %c0_i32_0 : i32, i32
  }
  func.func @transform_7(%arg0: i32) -> (i32, i32, i32) {
    %c0_i32 = arith.constant 0 : i32
    %c0_i32_0 = arith.constant 0 : i32
    %c0_i32_1 = arith.constant 0 : i32
    %c0_i32_2 = arith.constant 0 : i32
    return %c0_i32, %c0_i32_0, %c0_i32_1 : i32, i32, i32
  }
  func.func @transform_8(%arg0: i32) -> (i32, i32, i32) {
    %c0_i32 = arith.constant 0 : i32
    %c0_i32_0 = arith.constant 0 : i32
    %c0_i32_1 = arith.constant 0 : i32
    %c0_i32_2 = arith.constant 0 : i32
    return %c0_i32, %c0_i32_0, %c0_i32_1 : i32, i32, i32
  }
  func.func @transform_9(%arg0: i32) -> (i32, i32, i32) {
    %c0_i32 = arith.constant 0 : i32
    %c0_i32_0 = arith.constant 0 : i32
    %c0_i32_1 = arith.constant 0 : i32
    %c0_i32_2 = arith.constant 0 : i32
    return %c0_i32, %c0_i32_0, %c0_i32_1 : i32, i32, i32
  }
  func.func @transform_10(%arg0: i32) -> (i32, i32, i32) {
    %c0_i32 = arith.constant 0 : i32
    %c0_i32_0 = arith.constant 0 : i32
    %c0_i32_1 = arith.constant 0 : i32
    %c0_i32_2 = arith.constant 0 : i32
    return %c0_i32, %c0_i32_0, %c0_i32_1 : i32, i32, i32
  }
  func.func @transform_11(%arg0: i32) -> (i32, i32) {
    %c0_i32 = arith.constant 0 : i32
    %c0_i32_0 = arith.constant 0 : i32
    %c0_i32_1 = arith.constant 0 : i32
    return %c0_i32, %c0_i32_0 : i32, i32
  }
  func.func @transform_12(%arg0: i32) -> (i32, i32) {
    %c0_i32 = arith.constant 0 : i32
    %c0_i32_0 = arith.constant 0 : i32
    %c0_i32_1 = arith.constant 0 : i32
    return %c0_i32, %c0_i32_0 : i32, i32
  }
  func.func @transform_13(%arg0: i32) -> (i32, i32) {
    %c0_i32 = arith.constant 0 : i32
    %c0_i32_0 = arith.constant 0 : i32
    %c0_i32_1 = arith.constant 0 : i32
    return %c0_i32, %c0_i32_0 : i32, i32
  }
  func.func @transform_14(%arg0: i32) -> (i32, i32) {
    %c0_i32 = arith.constant 0 : i32
    %c0_i32_0 = arith.constant 0 : i32
    %c0_i32_1 = arith.constant 0 : i32
    return %c0_i32, %c0_i32_0 : i32, i32
  }
  func.func @transform_15(%arg0: i32) -> (i32, i32) {
    %c0_i32 = arith.constant 0 : i32
    %c0_i32_0 = arith.constant 0 : i32
    return %arg0, %c0_i32 : i32, i32
  }
}

</mosaic_0001>

<bundles_post_ra>
// kernel: downsample3_pallas.1
= control target key start
LH: loop header
LB: loop body
LE: loop exit
PB: predicated region body
PF: predicated region fallthrough
CT: control target
= control target key end

     0   :  { %s10143_s0 = inlined_call_operand.vmem [shape: bf16[128,1152], index: 0, kind: input, shape index: {}]   ;;  %s10144_s1 = inlined_call_operand.hbm [shape: bf16[1152,256], index: 1, kind: input, shape index: {}]   ;;  %s10145_s2 = inlined_call_operand.hbm [shape: f32[1,256], index: 2, kind: input, shape index: {}]   ;;  %s10146_s3 = inlined_call_operand.hbm [shape: bf16[256,128], index: 3, kind: input, shape index: {}]   ;;  %s10147_s4 = inlined_call_operand.hbm [shape: f32[1,128], index: 4, kind: input, shape index: {}]   ;;  %s10148_s5 = inlined_call_operand.hbm [shape: bf16[256,128], index: 5, kind: input, shape index: {}]   ;;  %s10149_s6 = inlined_call_operand.hbm [shape: f32[1,128], index: 6, kind: input, shape index: {}]   ;;  %s10150_s7 = inlined_call_operand.hbm [shape: bf16[8,128,128], index: 7, kind: input, shape index: {}]   ;;  %s10151_s8 = inlined_call_operand.hbm [shape: f32[8,1,128], index: 8, kind: input, shape index: {}]   ;;  %s10152_s9 = inlined_call_operand.hbm [shape: bf16[8,1152,128], index: 9, kind: input, shape index: {}]   ;;  %s10153_s10 = inlined_call_operand.hbm [shape: f32[8,1,128], index: 10, kind: input, shape index: {}]   ;;  %s10154_s11 = inlined_call_operand.hbm [shape: bf16[128,128], index: 11, kind: input, shape index: {}]   ;;  %s10155_s12 = inlined_call_operand.hbm [shape: f32[1,128], index: 12, kind: input, shape index: {}]   ;;  %s10156_s13 = inlined_call_operand.hbm [shape: bf16[256,256], index: 13, kind: input, shape index: {}]   ;;  %s10157_s14 = inlined_call_operand.hbm [shape: f32[1,256], index: 14, kind: input, shape index: {}]   ;;  %s10158_s15 = inlined_call_operand.hbm [shape: f32[128,256], index: 15, kind: output, shape index: {}]  }
   0x1   :  { %10197 = sst [smem:[#allocation67_spill]] %s10145_s2 }
   0x2   :  { %10198 = sst [smem:[#allocation68_spill]] %s10147_s4 }
   0x3   :  { %20 = vsyncpa [#allocation6], 0 }
   0x4   :  { %21 = vsyncpa [#allocation9], 0 }
   0x5   :  { %22 = vsyncpa [#allocation12], 0 }
   0x6   :  { %23 = vsyncpa [#allocation15], 0 }
   0x7   :  { %24 = vsyncpa [#allocation18], 0 }
   0x8   :  { %25 = vsyncpa [#allocation21], 0 }
   0x9   :  { %26 = vsyncpa [#allocation24], 0 }
   0xa   :  { %27 = vsyncpa [#allocation27], 0 }
   0xb   :  { %28 = vsyncpa [#allocation7], 0 }
   0xc   :  { %30 = vsyncpa [#allocation7 + $0x1], 0  ;;  %s8592_s18 = smov 0   ;;  %s8594_s19 = smov 0  }
   0xd   :  { %s8596_s20 = smov 0   ;;  %s8598_s21 = smov 0  }
   0xe LB: > { %10199 = sst [smem:[#allocation38_spill]] %s8469_s18  ;;  %s8613_s22 = sadd.s32 4294967295, %s8481_s21   ;;  %s8481_s21 = sphi %s8598_s21, %s10336_s21   ;;  %s8477_s20 = sphi %s8596_s20, %s10341_s20   ;;  %s8473_s19 = sphi %s8594_s19, %s10340_s19   ;;  %s8469_s18 = sphi %s8592_s18, %s10339_s18  }
   0xf   : > { %10200 = sst [smem:[#allocation39_spill]] %s8477_s20  ;;  %s6043_s23 = sadd.s32 4294967294, %s8481_s21  }
  0x10   : > { %10201 = sst [smem:[#allocation40_spill]] %s8481_s21  ;;  %s8617_s24 = sadd.s32 1, %s8481_s21  }
  0x11   : > { %10202 = sst [smem:[#allocation41_spill]] %s8617_s24  ;;  %s363_s25 = sadd.s32 1, %s8477_s20 }
  0x12   : > { %s360_s26 = ssub.s32 %s8481_s21, %s8617_s24  ;;  %p373_p0 = scmp.ne.s32.totalorder %s8477_s20, %s8473_s19 }
  0x13   : > { %p361_p1 = scmp.eq.s32.totalorder %s360_s26, 0  ;;  %p374_p2 = scmp.eq.s32.totalorder %s8613_s22, 1 }
  0x14   : > { %p379_p3 = scmp.ne.s32.totalorder %s8473_s19, %s8469_s18  ;;  %p380_p4 = scmp.eq.s32.totalorder %s6043_s23, 1 }
  0x15   : > { %s8628_s27 = scalar_select %p361_p1, %s8477_s20, %s363_s25  }
  0x16   : > { %p8630_p5 = por %p374_p2, %p373_p0  ;;  %p8634_p6 = por %p380_p4, %p379_p3 }
  0x17   : > { %10203 = sst [smem:[#allocation42_spill]] %s8628_s27  ;;  %p6044_p7 = scmp.ge.s32.totalorder %s8481_s21, 1 }
  0x18   : > { %s10204_s28 = scalar_select %p8630_p5, 1, 0 }
  0x19   : > { %s10205_s29 = scalar_select %p8634_p6, 1, 0 }
  0x1a   : > { %p387_p8 = scmp.lt.s32.totalorder %s8481_s21, 3  ;;  %p10163_p9 = scmp.eq.s32.totalorder %s8613_s22, 0 }
  0x1b   : > { %10206 = sst [smem:[#allocation43_spill]] %s10205_s29  ;;  %s8487_s16 = smov [#allocation8]  }
  0x1c   : > { %p8641_p10 = pnand %p6044_p7, %p387_p8  ;;  %s413_s17 = sshll.u32 %s8487_s16, 4  ;;  %s414_s17 = int_to_ptr.vmem [resolvable:$true] %s413_s17 }
  0x1d   : > { %s8488_s23 = smov [#allocation11]   ;;  %s8489_s27 = smov [#allocation14]  }
  0x1e   : > { %s10207_s30 = scalar_select %p8641_p10, 1, 0 }
  0x1f   : > { %p7103_p11 = pneg %p8641_p10  ;;  %s437_s25 = sshll.u32 %s8488_s23, 4  ;;  %s438_s25 = int_to_ptr.vmem [resolvable:$true] %s437_s25 }
  0x20   : > { %s461_s20 = sshll.u32 %s8489_s27, 4  ;;  %s8032_s16 = scalar_lea.vmem %s414_s17, 32  ;;  %s8653_s20 = int_to_ptr.vmem [resolvable:$true] %s461_s20 }
  0x21   : > { %p8649_p12 = pnand %p10163_p9, %p7103_p11  ;;  %p8033_p0 = scmp.ne.s32.totalorder %s414_s17, %s8032_s16 }
  0x22   : > { %p8040_p3 = scmp.lt.s32.totalorder %s414_s17, %s414_s17  ;;  %p8041_p4 = scmp.lt.s32.totalorder %s8032_s16, %s8032_s16 }
  0x23   : > { %p8657_p13 = pneg %p8649_p12 }
  0x24   : > { %p8042_p7 = por %p8041_p4, %p8040_p3 }
  0x25   : > { %p8035_p1 = pnand %p8033_p0, %p8657_p13 }
  0x27   : > { %p8036_p2 = pneg %p8035_p1 }
  0x29   : > { %p8043_p8 = pnand %p8042_p7, %p8036_p2 }
  0x2b   : > { %8046 = shalt.err (!%p8043_p8)
}
  0x2c   : > { %s10210_s2 = sld [smem:[#allocation67_spill]]  ;;  %s8058_s29 = scalar_lea.vmem %s438_s25, 16 }
  0x2d   : > { %p8059_p11 = scmp.ne.s32.totalorder %s438_s25, %s8058_s29  ;;  %s8065_s18 = scalar_lea.vmem %s438_s25, 32 }
  0x2e   : > { %p8066_p0 = scmp.lt.s32.totalorder %s438_s25, %s438_s25  ;;  %p8067_p1 = scmp.lt.s32.totalorder %s8065_s18, %s8058_s29 }
  0x2f   : > { %p8061_p9 = pnand %p8059_p11, %p8657_p13 }
  0x30   : > { %p8068_p5 = por %p8067_p1, %p8066_p0 }
  0x31   : > { %p8062_p6 = pneg %p8061_p9 }
  0x32   : > { %7109 = dma.hbm_to_vmem [thread:$0]  (!%p8649_p12), %s10210_s2, 32, %s414_s17, [#allocation9]  }
  0x33   : > { %p8069_p10 = pnand %p8068_p5, %p8062_p6 }
  0x35   : > { %8072 = shalt.err (!%p8069_p10)
}
  0x36   : > { %s10211_s4 = sld [smem:[#allocation68_spill]]  ;;  %s8084_s17 = scalar_lea.vmem %s8653_s20, 16 }
  0x37   : > { %p8085_p2 = scmp.ne.s32.totalorder %s8653_s20, %s8084_s17  ;;  %s8091_s18 = scalar_lea.vmem %s8653_s20, 32 }
  0x38   : > { %p8092_p5 = scmp.lt.s32.totalorder %s8653_s20, %s8653_s20  ;;  %p8093_p6 = scmp.lt.s32.totalorder %s8091_s18, %s8084_s17 }
  0x39   : > { %p8087_p9 = pnand %p8085_p2, %p8657_p13 }
  0x3a   : > { %p8094_p10 = por %p8093_p6, %p8092_p5 }
  0x3b   : > { %p8088_p3 = pneg %p8087_p9 }
  0x3c   : > { %7115 = dma.hbm_to_vmem [thread:$0]  (!%p8649_p12), %s10211_s4, 16, %s438_s25, [#allocation12]  }
  0x3d   : > { %p8095_p4 = pnand %p8094_p10, %p8088_p3 }
  0x3f   : > { %8098 = shalt.err (!%p8095_p4)
}
  0x40   : > { %7121 = dma.hbm_to_vmem [thread:$0]  (!%p8649_p12), %s10149_s6, 16, %s8653_s20, [#allocation15]  }
  0x41   : > { %s8490_s25 = smov [#allocation17]  }
  0x42   : > { %s484_s27 = sshll.u32 %s8490_s25, 4  ;;  %s485_s27 = int_to_ptr.vmem [resolvable:$true] %s484_s27 }
  0x43   : > { %s8110_s23 = scalar_lea.vmem %s485_s27, 128  ;;  %p8118_p0 = scmp.lt.s32.totalorder %s485_s27, %s485_s27 }
  0x44   : > { %p8111_p7 = scmp.ne.s32.totalorder %s485_s27, %s8110_s23  ;;  %p8119_p1 = scmp.lt.s32.totalorder %s8110_s23, %s8110_s23 }
  0x46   : > { %p8113_p8 = pnand %p8111_p7, %p8657_p13  ;;  %p8120_p2 = por %p8119_p1, %p8118_p0 }
  0x48   : > { %p8114_p11 = pneg %p8113_p8 }
  0x4a   : > { %p8121_p9 = pnand %p8120_p2, %p8114_p11 }
  0x4c   : > { %8124 = shalt.err (!%p8121_p9)
}
  0x4d   : > { %s8491_s16 = smov 16   ;;  %s8492_s17 = smov 1  }
  0x4e   : > { %7127 = dma.hbm_to_vmem [thread:$0]  (!%p8649_p12), %s10151_s8, 128, %s485_s27, [#allocation18], %s8491_s16, %s8491_s16, %s8492_s17  }
  0x4f   : > { %s8493_s21 = smov [#allocation20]   ;;  %s8494_s25 = smov [#allocation23]  }
  0x50   : > { %s510_s29 = sshll.u32 %s8493_s21, 4  ;;  %s537_s2 = sshll.u32 %s8494_s25, 4  ;;  %s511_s29 = int_to_ptr.vmem [resolvable:$true] %s510_s29  ;;  %s538_s2 = int_to_ptr.vmem [resolvable:$true] %s537_s2 }
  0x51   : > { %s8136_s4 = scalar_lea.vmem %s511_s29, 128  ;;  %p8144_p10 = scmp.lt.s32.totalorder %s511_s29, %s511_s29 }
  0x52   : > { %p8137_p3 = scmp.ne.s32.totalorder %s511_s29, %s8136_s4  ;;  %p8145_p4 = scmp.lt.s32.totalorder %s8136_s4, %s8136_s4 }
  0x54   : > { %p8139_p5 = pnand %p8137_p3, %p8657_p13  ;;  %p8146_p7 = por %p8145_p4, %p8144_p10 }
  0x56   : > { %p8140_p6 = pneg %p8139_p5 }
  0x58   : > { %p8147_p8 = pnand %p8146_p7, %p8140_p6 }
  0x5a   : > { %8150 = shalt.err (!%p8147_p8)
}
  0x5b   : > { %7133 = dma.hbm_to_vmem [thread:$0]  (!%p8649_p12), %s10153_s10, 128, %s511_s29, [#allocation21], %s8491_s16, %s8491_s16, %s8492_s17  }
  0x5c   : > { %s8162_s18 = scalar_lea.vmem %s538_s2, 16  ;;  %s8169_s20 = scalar_lea.vmem %s538_s2, 32 }
  0x5d   : > { %p8163_p11 = scmp.ne.s32.totalorder %s538_s2, %s8162_s18  ;;  %p8170_p2 = scmp.lt.s32.totalorder %s538_s2, %s538_s2 }
  0x5e   : > { %p8171_p9 = scmp.lt.s32.totalorder %s8169_s20, %s8162_s18 }
  0x5f   : > { %p8165_p0 = pnand %p8163_p11, %p8657_p13 }
  0x60   : > { %p8172_p3 = por %p8171_p9, %p8170_p2 }
  0x61   : > { %p8166_p1 = pneg %p8165_p0 }
  0x63   : > { %p8173_p5 = pnand %p8172_p3, %p8166_p1 }
  0x65   : > { %8176 = shalt.err (!%p8173_p5)
}
  0x66   : > { %7139 = dma.hbm_to_vmem [thread:$0]  (!%p8649_p12), %s10155_s12, 16, %s538_s2, [#allocation24]  }
  0x67   : > { %s8495_s25 = smov [#allocation5]  }
  0x68   : > { %s399_s16 = sshll.u32 %s8495_s25, 4  ;;  %s400_s16 = int_to_ptr.vmem [resolvable:$true] %s399_s16 }
  0x69   : > { %s8188_s17 = scalar_lea.vmem %s400_s16, 18432  ;;  %p8196_p7 = scmp.lt.s32.totalorder %s400_s16, %s400_s16 }
  0x6a   : > { %p8189_p6 = scmp.ne.s32.totalorder %s400_s16, %s8188_s17  ;;  %p8197_p8 = scmp.lt.s32.totalorder %s8188_s17, %s8188_s17 }
  0x6c   : > { %p8191_p10 = pnand %p8189_p6, %p8657_p13  ;;  %p8198_p11 = por %p8197_p8, %p8196_p7 }
  0x6e   : > { %p8192_p4 = pneg %p8191_p10 }
  0x70   : > { %p8199_p0 = pnand %p8198_p11, %p8192_p4 }
  0x72   : > { %8202 = shalt.err (!%p8199_p0)
}
  0x73   : > { %s10168_s29 = smov 128   ;;  %s8497_s23 = smov 8  }
  0x74   : > { %7106 = dma.hbm_to_vmem [thread:$0]  (!%p8649_p12), %s10144_s1, 18432, %s400_s16, [#allocation6], %s10168_s29, %s10168_s29, %s8497_s23  }
  0x75   : > { %s8498_s18 = smov [#allocation10]  }
  0x76   : > { %s423_s20 = sshll.u32 %s8498_s18, 4  ;;  %s424_s20 = int_to_ptr.vmem [resolvable:$true] %s423_s20 }
  0x77   : > { %s8214_s4 = scalar_lea.vmem %s424_s20, 2048  ;;  %p8222_p3 = scmp.lt.s32.totalorder %s424_s20, %s424_s20 }
  0x78   : > { %p8215_p1 = scmp.ne.s32.totalorder %s424_s20, %s8214_s4  ;;  %p8223_p5 = scmp.lt.s32.totalorder %s8214_s4, %s8214_s4 }
  0x7a   : > { %p8217_p2 = pnand %p8215_p1, %p8657_p13  ;;  %p8224_p6 = por %p8223_p5, %p8222_p3 }
  0x7c   : > { %p8218_p9 = pneg %p8217_p2 }
  0x7e   : > { %p8225_p10 = pnand %p8224_p6, %p8218_p9 }
  0x80   : > { %8228 = shalt.err (!%p8225_p10)
}
  0x81   : > { %s8499_s21 = smov 64   ;;  %s8500_s25 = smov 4  }
  0x82   : > { %7112 = dma.hbm_to_vmem [thread:$0]  (!%p8649_p12), %s10146_s3, 2048, %s424_s20, [#allocation9], %s8499_s21, %s8499_s21, %s8500_s25  }
  0x83   : > { %s8501_s2 = smov [#allocation13]   ;;  %s8502_s18 = smov [#allocation16]  }
  0x84   : > { %s447_s27 = sshll.u32 %s8501_s2, 4  ;;  %s471_s29 = sshll.u32 %s8502_s18, 4  ;;  %s448_s27 = int_to_ptr.vmem [resolvable:$true] %s447_s27  ;;  %s472_s29 = int_to_ptr.vmem [resolvable:$true] %s471_s29 }
  0x85   : > { %s8240_s4 = scalar_lea.vmem %s448_s27, 2048  ;;  %p8248_p11 = scmp.lt.s32.totalorder %s448_s27, %s448_s27 }
  0x86   : > { %p8241_p4 = scmp.ne.s32.totalorder %s448_s27, %s8240_s4  ;;  %p8249_p0 = scmp.lt.s32.totalorder %s8240_s4, %s8240_s4 }
  0x88   : > { %p8243_p7 = pnand %p8241_p4, %p8657_p13  ;;  %p8250_p1 = por %p8249_p0, %p8248_p11 }
  0x8a   : > { %p8244_p8 = pneg %p8243_p7 }
  0x8c   : > { %p8251_p2 = pnand %p8250_p1, %p8244_p8 }
  0x8e   : > { %8254 = shalt.err (!%p8251_p2)
}
  0x8f   : > { %7118 = dma.hbm_to_vmem [thread:$0]  (!%p8649_p12), %s10148_s5, 2048, %s448_s27, [#allocation12], %s8499_s21, %s8499_s21, %s8500_s25  }
  0x90   : > { %s8266_s17 = scalar_lea.vmem %s472_s29, 8192  ;;  %p8274_p6 = scmp.lt.s32.totalorder %s472_s29, %s472_s29 }
  0x91   : > { %p8267_p9 = scmp.ne.s32.totalorder %s472_s29, %s8266_s17  ;;  %p8275_p10 = scmp.lt.s32.totalorder %s8266_s17, %s8266_s17 }
  0x93   : > { %p8269_p3 = pnand %p8267_p9, %p8657_p13  ;;  %p8276_p4 = por %p8275_p10, %p8274_p6 }
  0x95   : > { %p8270_p5 = pneg %p8269_p3 }
  0x97   : > { %p8277_p7 = pnand %p8276_p4, %p8270_p5 }
  0x99   : > { %8280 = shalt.err (!%p8277_p7)
}
  0x9a   : > { %7124 = dma.hbm_to_vmem [thread:$0]  (!%p8649_p12), %s10150_s7, 8192, %s472_s29, [#allocation15], %s8499_s21, %s8499_s21, %s8500_s25  }
  0x9b   : > { %s8503_s27 = smov [#allocation19]   ;;  %s8504_s20 = smov [#allocation22]  }
  0x9c   : > { %s497_s4 = sshll.u32 %s8503_s27, 4  ;;  %s523_s16 = sshll.u32 %s8504_s20, 4  ;;  %s498_s4 = int_to_ptr.vmem [resolvable:$true] %s497_s4  ;;  %s524_s16 = int_to_ptr.vmem [resolvable:$true] %s523_s16 }
  0x9d   : > { %s8292_s17 = scalar_lea.vmem %s498_s4, 73728  ;;  %p8300_p1 = scmp.lt.s32.totalorder %s498_s4, %s498_s4 }
  0x9e   : > { %p8293_p8 = scmp.ne.s32.totalorder %s498_s4, %s8292_s17  ;;  %p8301_p2 = scmp.lt.s32.totalorder %s8292_s17, %s8292_s17 }
  0xa0   : > { %p8295_p11 = pnand %p8293_p8, %p8657_p13  ;;  %p8302_p9 = por %p8301_p2, %p8300_p1 }
  0xa2   : > { %p8296_p0 = pneg %p8295_p11 }
  0xa4   : > { %p8303_p3 = pnand %p8302_p9, %p8296_p0 }
  0xa6   : > { %8306 = shalt.err (!%p8303_p3)
}
  0xa7   : > { %7130 = dma.hbm_to_vmem [thread:$0]  (!%p8649_p12), %s10152_s9, 73728, %s498_s4, [#allocation18], %s8499_s21, %s8499_s21, %s8500_s25  }
  0xa8   : > { %s8318_s18 = scalar_lea.vmem %s524_s16, 1024  ;;  %p8326_p4 = scmp.lt.s32.totalorder %s524_s16, %s524_s16 }
  0xa9   : > { %p8319_p5 = scmp.ne.s32.totalorder %s524_s16, %s8318_s18  ;;  %p8327_p7 = scmp.lt.s32.totalorder %s8318_s18, %s8318_s18 }
  0xab   : > { %p8321_p6 = pnand %p8319_p5, %p8657_p13  ;;  %p8328_p8 = por %p8327_p7, %p8326_p4 }
  0xad   : > { %p8322_p10 = pneg %p8321_p6 }
  0xaf   : > { %p8329_p11 = pnand %p8328_p8, %p8322_p10 }
  0xb1   : > { %8332 = shalt.err (!%p8329_p11)
}
  0xb2   : > { %7136 = dma.hbm_to_vmem [thread:$0]  (!%p8649_p12), %s10154_s11, 1024, %s524_s16, [#allocation21], %s8499_s21, %s8499_s21, %s8500_s25  }
  0xb3   : > { %s8505_s4 = smov [#allocation25]   ;;  %s8506_s29 = smov [#allocation26]  }
  0xb4   : > { %s547_s17 = sshll.u32 %s8505_s4, 4  ;;  %s561_s2 = sshll.u32 %s8506_s29, 4  ;;  %s548_s17 = int_to_ptr.vmem [resolvable:$true] %s547_s17  ;;  %s562_s2 = int_to_ptr.vmem [resolvable:$true] %s561_s2 }
  0xb5   : > { %s8344_s18 = scalar_lea.vmem %s548_s17, 4096  ;;  %p8352_p9 = scmp.lt.s32.totalorder %s548_s17, %s548_s17 }
  0xb6   : > { %p8345_p0 = scmp.ne.s32.totalorder %s548_s17, %s8344_s18  ;;  %p8353_p3 = scmp.lt.s32.totalorder %s8344_s18, %s8344_s18 }
  0xb8   : > { %p8347_p1 = pnand %p8345_p0, %p8657_p13  ;;  %p8354_p5 = por %p8353_p3, %p8352_p9 }
  0xba   : > { %p8348_p2 = pneg %p8347_p1 }
  0xbc   : > { %p8355_p6 = pnand %p8354_p5, %p8348_p2 }
  0xbe   : > { %8358 = shalt.err (!%p8355_p6)
}
  0xbf   : > { %s10212_s21 = smov 128   ;;  %s8370_s27 = scalar_lea.vmem %s562_s2, 32 }
  0xc0   : > { %7142 = dma.hbm_to_vmem [thread:$0]  (!%p8649_p12), %s10156_s13, 4096, %s548_s17, [#allocation24], %s10212_s21, %s10212_s21, %s8497_s23  }
  0xc1   : > { %p8371_p10 = scmp.ne.s32.totalorder %s562_s2, %s8370_s27  ;;  %p8378_p8 = scmp.lt.s32.totalorder %s562_s2, %s562_s2 }
  0xc2   : > { %p8379_p11 = scmp.lt.s32.totalorder %s8370_s27, %s8370_s27 }
  0xc3   : > { %p8373_p4 = pnand %p8371_p10, %p8657_p13 }
  0xc4   : > { %p8380_p0 = por %p8379_p11, %p8378_p8 }
  0xc5   : > { %p8374_p7 = pneg %p8373_p4 }
  0xc7   : > { %p8381_p1 = pnand %p8380_p0, %p8374_p7 }
  0xc9   : > { %8384 = shalt.err (!%p8381_p1)
}
  0xca   : > { %7145 = dma.hbm_to_vmem [thread:$0]  (!%p8649_p12), %s10157_s14, 32, %s562_s2, [#allocation27]  }
  0xcb   : > { %p10213_p2 = scmp.ne.s32.totalorder %s10207_s30, 0 }
  0xcd   : > { %584 = sbr.rel (%p10213_p2) target bundleno = 2123 (0x84b), region = 80 }
  0xd2   : > { %p10214_p9 = scmp.eq.s32.totalorder %s8613_s22, 0 }
  0xd4   : > { %8432 = dma.done.wait (%p10214_p9), [#allocation6], 18432   ;;  %p10215_p13 = pmov %p10214_p9 }
  0xd5   : > { %p10216_p3 = pmov %p10214_p9 }
  0xd6   : > { %8434 = vsyncadd (%p10215_p13), [#allocation6], 4294948864 }
  0xd7   : > { %8436 = dma.done.wait (%p10216_p3), [#allocation9], 2080   ;;  %p10217_p5 = pmov %p10216_p3 }
  0xd8   : > { %p10218_p6 = pmov %p10216_p3 }
  0xd9   : > { %8438 = vsyncadd (%p10217_p5), [#allocation9], 4294965216 }
  0xda   : > { %8440 = dma.done.wait (%p10218_p6), [#allocation12], 2064   ;;  %p10219_p12 = pmov %p10216_p3 }
  0xdb   : > { %p10220_p10 = pmov %p10216_p3 }
  0xdc   : > { %8442 = vsyncadd (%p10219_p12), [#allocation12], 4294965232 }
  0xdd   : > { %8444 = dma.done.wait (%p10220_p10), [#allocation15], 8208   ;;  %p10221_p4 = pmov %p10216_p3 }
  0xde   : > { %p10222_p7 = pmov %p10216_p3 }
  0xdf   : > { %8446 = vsyncadd (%p10221_p4), [#allocation15], 4294959088 }
  0xe0   : > { %8448 = dma.done.wait (%p10222_p7), [#allocation18], 73856   ;;  %p10223_p8 = pmov %p10216_p3 }
  0xe1   : > { %p10224_p11 = pmov %p10216_p3 }
  0xe2   : > { %8450 = vsyncadd (%p10223_p8), [#allocation18], 4294893440 }
  0xe3   : > { %8452 = dma.done.wait (%p10224_p11), [#allocation21], 1152   ;;  %p10225_p0 = pmov %p10216_p3 }
  0xe5   : > { %8454 = vsyncadd (%p10225_p0), [#allocation21], 4294966144  ;;  %p10226_p1 = pmov %p10225_p0 }
  0xe6   : > { %p10227_p2 = pmov %p10225_p0 }
  0xe7   : > { %8456 = dma.done.wait (%p10226_p1), [#allocation24], 4112  }
  0xe8   : > { %8458 = vsyncadd (%p10227_p2), [#allocation24], 4294963184  ;;  %p10228_p9 = pmov %p10225_p0 }
  0xe9   : > { %p10229_p13 = pmov %p10225_p0 }
  0xea   : > { %8460 = dma.done.wait (%p10228_p9), [#allocation27], 32  }
  0xeb   : > { %8462 = vsyncadd (%p10229_p13), [#allocation27], 4294967264  ;;  %s682_s24 = sand.u32 1, %s8473_s19   ;;  %v8507_v0 = vmov 0.0   ;;  %v7243_v1 = vld [vmem:[#allocation5 + $0x74] ss:$8 sps:$4 sm:$0xff]  }
  0xec   : > { %2963 = vst [vmem:[#allocation3] sm:$0xff] %v8507_v0  ;;  %2964 = vst [vmem:[#allocation3 + $0x8] sm:$0xff] %v8507_v0  ;;  %s8823_s30 = sshll.u32 %s682_s24, 7  ;;  %v7245_v2 = vld [vmem:[#allocation5 + $0x70] ss:$8 sps:$4 sm:$0xff]   ;;  %1794 = vmatprep.subr.bf16.mxu0 %v7243_v1  ;;  %s6076_s26 = sshll.u32 %s8613_s22, 3 }
  0xed   : > { %2965 = vst [vmem:[#allocation3 + $0x10] sm:$0xff] %v8507_v0  ;;  %2966 = vst [vmem:[#allocation3 + $0x18] sm:$0xff] %v8507_v0  ;;  %v7246_v3 = vld [vmem:[#allocation5 + $0x174] ss:$8 sps:$4 sm:$0xff]   ;;  %v7248_v4 = vld [vmem:[#allocation5 + $0x170] ss:$8 sps:$4 sm:$0xff]   ;;  %1795 = vmatpush1.bf16.msra.mxu0 %v7245_v2 }
  0xee   : > { %2967 = vst [vmem:[#allocation3 + $0x20] sm:$0xff] %v8507_v0  ;;  %2968 = vst [vmem:[#allocation3 + $0x28] sm:$0xff] %v8507_v0  ;;  %v7249_v5 = vld [vmem:[#allocation5 + $0x64] ss:$8 sps:$4 sm:$0xff]   ;;  %v7251_v6 = vld [vmem:[#allocation5 + $0x60] ss:$8 sps:$4 sm:$0xff]   ;;  %1867 = vmatprep.subr.bf16.mxu1 %v7246_v3 }
  0xef   : > { %2969 = vst [vmem:[#allocation3 + $0x30] sm:$0xff] %v8507_v0  ;;  %2970 = vst [vmem:[#allocation3 + $0x38] sm:$0xff] %v8507_v0  ;;  %v7252_v7 = vld [vmem:[#allocation5 + $0x164] ss:$8 sps:$4 sm:$0xff]   ;;  %1868 = vmatpush1.bf16.msra.mxu1 %v7248_v4  ;;  %1796 = vmatprep.subr.bf16.mxu0 %v7249_v5  ;;  %v7254_v8 = vld [vmem:[#allocation5 + $0x160] ss:$8 sps:$4 sm:$0xff]  }
  0xf0   : > { %2971 = vst [vmem:[#allocation3 + $0x40] sm:$0xff] %v8507_v0  ;;  %2972 = vst [vmem:[#allocation3 + $0x48] sm:$0xff] %v8507_v0  ;;  %1869 = vmatprep.subr.bf16.mxu1 %v7252_v7  ;;  %v7255_v9 = vld [vmem:[#allocation5 + $0x54] ss:$8 sps:$4 sm:$0xff]   ;;  %v7257_v10 = vld [vmem:[#allocation5 + $0x50] ss:$8 sps:$4 sm:$0xff]  }
  0xf1   : > { %2973 = vst [vmem:[#allocation3 + $0x50] sm:$0xff] %v8507_v0  ;;  %2974 = vst [vmem:[#allocation3 + $0x58] sm:$0xff] %v8507_v0  ;;  %1797 = vmatpush1.bf16.msra.mxu0 %v7251_v6  ;;  %v7258_v11 = vld [vmem:[#allocation5 + $0x154] ss:$8 sps:$4 sm:$0xff]   ;;  %v7261_v12 = vld [vmem:[#allocation5 + $0x44] ss:$8 sps:$4 sm:$0xff]  }
  0xf2   : > { %1798 = vmatprep.subr.bf16.mxu0 %v7255_v9  ;;  %v7260_v13 = vld [vmem:[#allocation5 + $0x150] ss:$8 sps:$4 sm:$0xff]   ;;  %v7264_v14 = vld [vmem:[#allocation5 + $0x144] ss:$8 sps:$4 sm:$0xff]   ;;  %v7263_v15 = vld [vmem:[#allocation5 + $0x40] ss:$8 sps:$4 sm:$0xff]  }
  0xf3   : > { %1870 = vmatpush1.bf16.msra.mxu1 %v7254_v8  ;;  %v7267_v16 = vld [vmem:[#allocation5 + $0x34] ss:$8 sps:$4 sm:$0xff]   ;;  %v7266_v17 = vld [vmem:[#allocation5 + $0x140] ss:$8 sps:$4 sm:$0xff]   ;;  %v7269_v19 = vld [vmem:[#allocation5 + $0x30] ss:$8 sps:$4 sm:$0xff]  }
  0xf4   : > { %1871 = vmatprep.subr.bf16.mxu1 %v7258_v11  ;;  %v7270_v18 = vld [vmem:[#allocation5 + $0x134] ss:$8 sps:$4 sm:$0xff]   ;;  %v7273_v20 = vld [vmem:[#allocation5 + $0x24] ss:$8 sps:$4 sm:$0xff]   ;;  %v7272_v21 = vld [vmem:[#allocation5 + $0x130] ss:$8 sps:$4 sm:$0xff]  }
  0xf5   : > { %1799 = vmatpush1.bf16.msra.mxu0 %v7257_v10  ;;  %v7276_v22 = vld [vmem:[#allocation5 + $0x124] ss:$8 sps:$4 sm:$0xff]   ;;  %v7275_v23 = vld [vmem:[#allocation5 + $0x20] ss:$8 sps:$4 sm:$0xff]   ;;  %v7279_v24 = vld [vmem:[#allocation5 + $0x14] ss:$8 sps:$4 sm:$0xff]  }
  0xf6   : > { %1800 = vmatprep.subr.bf16.mxu0 %v7261_v12  ;;  %v7278_v25 = vld [vmem:[#allocation5 + $0x120] ss:$8 sps:$4 sm:$0xff]   ;;  %v7282_v26 = vld [vmem:[#allocation5 + $0x114] ss:$8 sps:$4 sm:$0xff]   ;;  %v7281_v27 = vld [vmem:[#allocation5 + $0x10] ss:$8 sps:$4 sm:$0xff]  }
  0xf7   : > { %1872 = vmatpush1.bf16.msra.mxu1 %v7260_v13  ;;  %v7285_v28 = vld [vmem:[#allocation5 + $0x4] ss:$8 sps:$4 sm:$0xff]   ;;  %v7284_v29 = vld [vmem:[#allocation5 + $0x110] ss:$8 sps:$4 sm:$0xff]   ;;  %v7287_v31 = vld [vmem:[#allocation5] ss:$8 sps:$4 sm:$0xff]  }
  0xf8   : > { %1873 = vmatprep.subr.bf16.mxu1 %v7264_v14  ;;  %v7288_v30 = vld [vmem:[#allocation5 + $0x104] ss:$8 sps:$4 sm:$0xff]   ;;  %v7291_v32 = vld [vmem:[#allocation5 + $0xf4] ss:$8 sps:$4 sm:$0xff]   ;;  %p686_p3 = scmp.lt.s32.totalorder %s6076_s26, 15  ;;  %s9377_s18 = scalar_lea.vmem [#allocation28], %s8823_s30 }
  0xf9   : > { %1801 = vmatpush1.bf16.msra.mxu0 %v7263_v15  ;;  %v7290_v33 = vld [vmem:[#allocation5 + $0x100] ss:$8 sps:$4 sm:$0xff]   ;;  %v7294_v34 = vld [vmem:[#allocation5 + $0x1f4] ss:$8 sps:$4 sm:$0xff]   ;;  %v7293_v35 = vld [vmem:[#allocation5 + $0xf0] ss:$8 sps:$4 sm:$0xff]  }
  0xfa   : > { %1802 = vmatprep.subr.bf16.mxu0 %v7267_v16  ;;  %v7297_v36 = vld [vmem:[#allocation5 + $0xe4] ss:$8 sps:$4 sm:$0xff]   ;;  %s10343_s26 = smov (!%p686_p3, %s6076_s26), 15  ;;  %v7296_v37 = vld [vmem:[#allocation5 + $0x1f0] ss:$8 sps:$4 sm:$0xff]   ;;  %s9379_s21 = smov 0  }
  0xfb   : > { %1874 = vmatpush1.bf16.msra.mxu1 %v7266_v17  ;;  %v7300_v38 = vld [vmem:[#allocation5 + $0x1e4] ss:$8 sps:$4 sm:$0xff]   ;;  %v7299_v39 = vld [vmem:[#allocation5 + $0xe0] ss:$8 sps:$4 sm:$0xff]   ;;  %v7303_v40 = vld [vmem:[#allocation5 + $0xd4] ss:$8 sps:$4 sm:$0xff]  }
  0xfc   : > { %1875 = vmatprep.subr.bf16.mxu1 %v7270_v18  ;;  %s7044_s23 = smul.u32 36, %s10343_s26  ;;  %v7302_v41 = vld [vmem:[#allocation5 + $0x1e0] ss:$8 sps:$4 sm:$0xff]   ;;  %v7306_v42 = vld [vmem:[#allocation5 + $0x1d4] ss:$8 sps:$4 sm:$0xff]  }
  0xfd   : > { %1803 = vmatpush1.bf16.msra.mxu0 %v7269_v19  ;;  %v7305_v43 = vld [vmem:[#allocation5 + $0xd0] ss:$8 sps:$4 sm:$0xff]   ;;  %v7309_v44 = vld [vmem:[#allocation5 + $0xc4] ss:$8 sps:$4 sm:$0xff]   ;;  %v7311_v47 = vld [vmem:[#allocation5 + $0xc0] ss:$8 sps:$4 sm:$0xff]  }
  0xfe   : > { %1804 = vmatprep.subr.bf16.mxu0 %v7273_v20  ;;  %s8829_s2 = scalar_lea.vmem %s10143_s0, %s7044_s23  ;;  %v7308_v45 = vld [vmem:[#allocation5 + $0x1d0] ss:$8 sps:$4 sm:$0xff]   ;;  %v7312_v46 = vld [vmem:[#allocation5 + $0x1c4] ss:$8 sps:$4 sm:$0xff]   ;;  %v7315_v49 = vld [vmem:[#allocation5 + $0xb4] ss:$8 sps:$4 sm:$0xff]  }
  0xff   : > { %1876 = vmatpush1.bf16.msra.mxu1 %v7272_v21  ;;  %v7340_v48 = vld [vmem:[%s8829_s2 + $0x4] ss:$36 sps:$4 sm:$0xff]   ;;  %v7318_v51 = vld [vmem:[#allocation5 + $0x1b4] ss:$8 sps:$4 sm:$0xff]   ;;  %v7347_v52 = vld [vmem:[%s8829_s2 + $0xc] ss:$36 sps:$4 sm:$0xff]  }
 0x100   : > { %1877 = vmatprep.subr.bf16.mxu1 %v7276_v22  ;;  %v7314_v50 = vld [vmem:[#allocation5 + $0x1c0] ss:$8 sps:$4 sm:$0xff]   ;;  %1826 = vmatprep.mubr.bf16.mxu0 %v7340_v48  ;;  %v7317_v53 = vld [vmem:[#allocation5 + $0xb0] ss:$8 sps:$4 sm:$0xff]   ;;  %v7321_v54 = vld [vmem:[#allocation5 + $0xa4] ss:$8 sps:$4 sm:$0xff]  }
 0x101   : > { %1805 = vmatpush1.bf16.msra.mxu0 %v7275_v23  ;;  %1899 = vmatprep.mubr.bf16.mxu1 %v7347_v52  ;;  %v7320_v55 = vld [vmem:[#allocation5 + $0x1b0] ss:$8 sps:$4 sm:$0xff]   ;;  %v7324_v56 = vld [vmem:[#allocation5 + $0x1a4] ss:$8 sps:$4 sm:$0xff]   ;;  %v7323_v57 = vld [vmem:[#allocation5 + $0xa0] ss:$8 sps:$4 sm:$0xff]  }
 0x102   : > { %1806 = vmatprep.subr.bf16.mxu0 %v7279_v24  ;;  %v7327_v58 = vld [vmem:[#allocation5 + $0x94] ss:$8 sps:$4 sm:$0xff]   ;;  %v7326_v59 = vld [vmem:[#allocation5 + $0x1a0] ss:$8 sps:$4 sm:$0xff]   ;;  %v7329_v61 = vld [vmem:[#allocation5 + $0x90] ss:$8 sps:$4 sm:$0xff]  }
 0x103   : > { %1878 = vmatpush1.bf16.msra.mxu1 %v7278_v25  ;;  %v7330_v60 = vld [vmem:[#allocation5 + $0x194] ss:$8 sps:$4 sm:$0xff]   ;;  %v7333_v62 = vld [vmem:[#allocation5 + $0x84] ss:$8 sps:$4 sm:$0xff]   ;;  %v7332_v63 = vld [vmem:[#allocation5 + $0x190] ss:$8 sps:$4 sm:$0xff]  }
 0x104   : > { %1879 = vmatprep.subr.bf16.mxu1 %v7282_v26  ;;  %v7336_v0 = vld [vmem:[#allocation5 + $0x184] ss:$8 sps:$4 sm:$0xff]   ;;  %v7335_v1 = vld [vmem:[#allocation5 + $0x80] ss:$8 sps:$4 sm:$0xff]   ;;  %v7344_v2 = vld [vmem:[#allocation5 + $0x274] ss:$8 sps:$4 sm:$0xff]  }
 0x105   : > { %1807 = vmatpush1.bf16.msra.mxu0 %v7281_v27  ;;  %v7341_v3 = vld [vmem:[#allocation5 + $0x180] ss:$8 sps:$4 sm:$0xff]   ;;  %v7350_v5 = vld [vmem:[#allocation5 + $0x374] ss:$8 sps:$4 sm:$0xff]   ;;  %v7342_v6 = vld [vmem:[#allocation5 + $0x270] ss:$8 sps:$4 sm:$0xff]  }
 0x106   : > { %1808 = vmatprep.subr.bf16.mxu0 %v7285_v28  ;;  %v7338_v4 = vld [vmem:[%s8829_s2] ss:$36 sps:$4 sm:$0xff]   ;;  %v7345_v7 = vld [vmem:[%s8829_s2 + $0x8] ss:$36 sps:$4 sm:$0xff]   ;;  %v7348_v9 = vld [vmem:[#allocation5 + $0x370] ss:$8 sps:$4 sm:$0xff]  }
 0x107   : > { %1880 = vmatpush1.bf16.msra.mxu1 %v7284_v29  ;;  %v7353_v8 = vld [vmem:[#allocation5 + $0x264] ss:$8 sps:$4 sm:$0xff]   ;;  %v7351_v10 = vld [vmem:[#allocation5 + $0x260] ss:$8 sps:$4 sm:$0xff]   ;;  %v7359_v13 = vld [vmem:[#allocation5 + $0x254] ss:$8 sps:$4 sm:$0xff]  }
 0x108   : > { %1881 = vmatprep.subr.bf16.mxu1 %v7288_v30  ;;  %v7356_v11 = vld [vmem:[#allocation5 + $0x364] ss:$8 sps:$4 sm:$0xff]   ;;  %v7354_v12 = vld [vmem:[#allocation5 + $0x360] ss:$8 sps:$4 sm:$0xff]   ;;  %v7357_v15 = vld [vmem:[#allocation5 + $0x250] ss:$8 sps:$4 sm:$0xff]  }
 0x109   : > { %1809 = vmatpush1.bf16.msra.mxu0 %v7287_v31  ;;  %v7396_v14 = vld [vmem:[%s8829_s2 + $0x4c] ss:$36 sps:$4 sm:$0xff]   ;;  %v7362_v16 = vld [vmem:[#allocation5 + $0x354] ss:$8 sps:$4 sm:$0xff]   ;;  %v7363_v22 = vld [vmem:[#allocation5 + $0x240] ss:$8 sps:$4 sm:$0xff]  }
 0x10a   : > { %1810 = vmatprep.subr.bf16.mxu0 %v7291_v32  ;;  %v7401_v17 = vld [vmem:[%s8829_s2 + $0x48] ss:$36 sps:$4 sm:$0xff]   ;;  %v7402_v18 = vld [vmem:[%s8829_s2 + $0x54] ss:$36 sps:$4 sm:$0xff]   ;;  %v7420_v30 = vld [vmem:[%s8829_s2 + $0x9c] ss:$36 sps:$4 sm:$0xff]  }
 0x10b   : > { %1882 = vmatpush1.bf16.msra.mxu1 %v7290_v33  ;;  %v7360_v19 = vld [vmem:[#allocation5 + $0x350] ss:$8 sps:$4 sm:$0xff]   ;;  %v7365_v20 = vld [vmem:[#allocation5 + $0x244] ss:$8 sps:$4 sm:$0xff]   ;;  %v7366_v24 = vld [vmem:[#allocation5 + $0x340] ss:$8 sps:$4 sm:$0xff]  }
 0x10c   : > { %1883 = vmatprep.subr.bf16.mxu1 %v7294_v34  ;;  %v7407_v21 = vld [vmem:[%s8829_s2 + $0x50] ss:$36 sps:$4 sm:$0xff]   ;;  %v7368_v23 = vld [vmem:[#allocation5 + $0x344] ss:$8 sps:$4 sm:$0xff]   ;;  %v7425_v33 = vld [vmem:[%s8829_s2 + $0x98] ss:$36 sps:$4 sm:$0xff]  }
 0x10d   : > { %1811 = vmatpush2.bf16.msra.mxu0 %v7293_v35  ;;  %v7371_v25 = vld [vmem:[#allocation5 + $0x234] ss:$8 sps:$4 sm:$0xff]   ;;  %v7369_v27 = vld [vmem:[#allocation5 + $0x230] ss:$8 sps:$4 sm:$0xff]   ;;  %v7377_v32 = vld [vmem:[#allocation5 + $0x224] ss:$8 sps:$4 sm:$0xff]  }
 0x10e   : > { %1812 = vmatprep.subr.bf16.mxu0 %v7297_v36  ;;  %v7414_v26 = vld [vmem:[%s8829_s2 + $0x94] ss:$36 sps:$4 sm:$0xff]   ;;  %v7375_v34 = vld [vmem:[#allocation5 + $0x220] ss:$8 sps:$4 sm:$0xff]   ;;  %v7380_v35 = vld [vmem:[#allocation5 + $0x324] ss:$8 sps:$4 sm:$0xff]  }
 0x10f   : > { %1884 = vmatpush2.bf16.msra.mxu1 %v7296_v37  ;;  %v7374_v28 = vld [vmem:[#allocation5 + $0x334] ss:$8 sps:$4 sm:$0xff]   ;;  %v7372_v31 = vld [vmem:[#allocation5 + $0x330] ss:$8 sps:$4 sm:$0xff]   ;;  %v7378_v36 = vld [vmem:[#allocation5 + $0x320] ss:$8 sps:$4 sm:$0xff]  }
 0x110   : > { %1885 = vmatprep.subr.bf16.mxu1 %v7300_v38  ;;  %v7419_v29 = vld [vmem:[%s8829_s2 + $0x90] ss:$36 sps:$4 sm:$0xff]   ;;  %v7432_v38 = vld [vmem:[%s8829_s2 + $0xdc] ss:$36 sps:$4 sm:$0xff]  }
 0x111   : > { %1813 = vmatpush2.bf16.msra.mxu0 %v7299_v39  ;;  %v7383_v37 = vld [vmem:[#allocation5 + $0x214] ss:$8 sps:$4 sm:$0xff]   ;;  %v7381_v39 = vld [vmem:[#allocation5 + $0x210] ss:$8 sps:$4 sm:$0xff]  }
 0x112   : > { %1814 = vmatprep.subr.bf16.mxu0 %v7303_v40  ;;  %v7386_v40 = vld [vmem:[#allocation5 + $0x314] ss:$8 sps:$4 sm:$0xff]   ;;  %v7398_v52 = vld [vmem:[#allocation5 + $0x3f0] ss:$8 sps:$4 sm:$0xff]  }
 0x113   : > { %1886 = vmatpush2.bf16.msra.mxu1 %v7302_v41  ;;  %v7437_v41 = vld [vmem:[%s8829_s2 + $0xd8] ss:$36 sps:$4 sm:$0xff]  }
 0x114   : > { %1887 = vmatprep.subr.bf16.mxu1 %v7306_v42  ;;  %v7438_v42 = vld [vmem:[%s8829_s2 + $0xe4] ss:$36 sps:$4 sm:$0xff]   ;;  %v7395_v48 = vld [vmem:[#allocation5 + $0x2f4] ss:$8 sps:$4 sm:$0xff]  }
 0x115   : > { %1815 = vmatpush2.bf16.msra.mxu0 %v7305_v43  ;;  %v7384_v43 = vld [vmem:[#allocation5 + $0x310] ss:$8 sps:$4 sm:$0xff]  }
 0x116   : > { %1816 = vmatprep.subr.bf16.mxu0 %v7309_v44  ;;  %v7389_v44 = vld [vmem:[#allocation5 + $0x204] ss:$8 sps:$4 sm:$0xff]  }
 0x117   : > { %1888 = vmatpush2.bf16.msra.mxu1 %v7308_v45  ;;  %v7443_v45 = vld [vmem:[%s8829_s2 + $0xe0] ss:$36 sps:$4 sm:$0xff]  }
 0x118   : > { %1889 = vmatprep.subr.bf16.mxu1 %v7312_v46  ;;  %v7392_v46 = vld [vmem:[#allocation5 + $0x304] ss:$8 sps:$4 sm:$0xff]  }
 0x119   : > { %1817 = vmatpush2.bf16.msra.mxu0 %v7311_v47  ;;  %v7387_v47 = vld [vmem:[#allocation5 + $0x200] ss:$8 sps:$4 sm:$0xff]  }
 0x11a   : > { %1818 = vmatprep.subr.bf16.mxu0 %v7315_v49  ;;  %v7390_v49 = vld [vmem:[#allocation5 + $0x300] ss:$8 sps:$4 sm:$0xff]  }
 0x11b   : > { %1890 = vmatpush2.bf16.msra.mxu1 %v7314_v50  ;;  %v7400_v50 = vld [vmem:[#allocation5 + $0x3f4] ss:$8 sps:$4 sm:$0xff]  }
 0x11c   : > { %1891 = vmatprep.subr.bf16.mxu1 %v7318_v51  ;;  %v7393_v51 = vld [vmem:[#allocation5 + $0x2f0] ss:$8 sps:$4 sm:$0xff]  }
 0x11d   : > { %1819 = vmatpush2.bf16.msra.mxu0 %v7317_v53  ;;  %v7406_v53 = vld [vmem:[#allocation5 + $0x2e4] ss:$8 sps:$4 sm:$0xff]  }
 0x11e   : > { %1820 = vmatprep.subr.bf16.mxu0 %v7321_v54  ;;  %v7461_v54 = vld [vmem:[%s8829_s2 + $0x14] ss:$36 sps:$4 sm:$0xff]  }
 0x11f   : > { %1892 = vmatpush2.bf16.msra.mxu1 %v7320_v55  ;;  %v7410_v55 = vld [vmem:[#allocation5 + $0x3e4] ss:$8 sps:$4 sm:$0xff]  }
 0x120   : > { %1893 = vmatprep.subr.bf16.mxu1 %v7324_v56  ;;  %v7404_v56 = vld [vmem:[#allocation5 + $0x2e0] ss:$8 sps:$4 sm:$0xff]  }
 0x121   : > { %1821 = vmatpush2.bf16.msra.mxu0 %v7323_v57  ;;  %v7467_v57 = vld [vmem:[%s8829_s2 + $0x1c] ss:$36 sps:$4 sm:$0xff]  }
 0x122   : > { %1822 = vmatprep.subr.bf16.mxu0 %v7327_v58  ;;  %v7413_v58 = vld [vmem:[#allocation5 + $0x2d4] ss:$8 sps:$4 sm:$0xff]  }
 0x123   : > { %1894 = vmatpush2.bf16.msra.mxu1 %v7326_v59  ;;  %v7408_v59 = vld [vmem:[#allocation5 + $0x3e0] ss:$8 sps:$4 sm:$0xff]  }
 0x124   : > { %1895 = vmatprep.subr.bf16.mxu1 %v7330_v60  ;;  %v7418_v60 = vld [vmem:[#allocation5 + $0x3d4] ss:$8 sps:$4 sm:$0xff]  }
 0x125   : > { %1823 = vmatpush2.bf16.msra.mxu0 %v7329_v61  ;;  %v7411_v61 = vld [vmem:[#allocation5 + $0x2d0] ss:$8 sps:$4 sm:$0xff]  }
 0x126   : > { %1824 = vmatprep.subr.bf16.mxu0 %v7333_v62  ;;  %v7424_v62 = vld [vmem:[#allocation5 + $0x2c4] ss:$8 sps:$4 sm:$0xff]  }
 0x127   : > { %1896 = vmatpush2.bf16.msra.mxu1 %v7332_v63  ;;  %v7416_v63 = vld [vmem:[#allocation5 + $0x3d0] ss:$8 sps:$4 sm:$0xff]  }
 0x128   : > { %1897 = vmatprep.subr.bf16.mxu1 %v7336_v0  ;;  %v7428_v0 = vld [vmem:[#allocation5 + $0x3c4] ss:$8 sps:$4 sm:$0xff]  }
 0x129   : > { %1825 = vmatpush2.bf16.msra.mxu0 %v7335_v1  ;;  %v7422_v1 = vld [vmem:[#allocation5 + $0x2c0] ss:$8 sps:$4 sm:$0xff]  }
 0x12a   : > { %1940 = vmatprep.subr.bf16.mxu0 %v7344_v2  ;;  %v7431_v2 = vld [vmem:[#allocation5 + $0x2b4] ss:$8 sps:$4 sm:$0xff]  }
 0x12b   : > { %1898 = vmatpush2.bf16.msra.mxu1 %v7341_v3  ;;  %v7426_v3 = vld [vmem:[#allocation5 + $0x3c0] ss:$8 sps:$4 sm:$0xff]  }
 0x12c   : > { %1827 = vmatmul.mubr.bf16.vlgmr.msra.gmra.mxu0 %v7338_v4  ;;  %2013 = vmatprep.subr.bf16.mxu1 %v7350_v5  ;;  %v7436_v4 = vld [vmem:[#allocation5 + $0x3b4] ss:$8 sps:$4 sm:$0xff]   ;;  %v7429_v5 = vld [vmem:[#allocation5 + $0x2b0] ss:$8 sps:$4 sm:$0xff]  }
 0x12d   : > { %1941 = vmatpush1.bf16.msra.mxu0 %v7342_v6  ;;  %1836 = vmatprep.mubr.bf16.mxu0 %v7396_v14  ;;  %v7442_v6 = vld [vmem:[#allocation5 + $0x2a4] ss:$8 sps:$4 sm:$0xff]   ;;  %v7450_v14 = vld [vmem:[#allocation5 + $0x390] ss:$8 sps:$4 sm:$0xff]  }
 0x12e   : > { %1900 = vmatmul.mubr.bf16.vlgmr.msra.gmra.mxu1 %v7345_v7  ;;  %1942 = vmatprep.subr.bf16.mxu0 %v7353_v8  ;;  %v7434_v7 = vld [vmem:[#allocation5 + $0x3b0] ss:$8 sps:$4 sm:$0xff]   ;;  %v7446_v8 = vld [vmem:[#allocation5 + $0x3a4] ss:$8 sps:$4 sm:$0xff]  }
 0x12f   : > { %2014 = vmatpush1.bf16.msra.mxu1 %v7348_v9  ;;  %1909 = vmatprep.mubr.bf16.mxu1 %v7402_v18  ;;  %v7440_v9 = vld [vmem:[#allocation5 + $0x2a0] ss:$8 sps:$4 sm:$0xff]   ;;  %v7464_v18 = vld [vmem:[#allocation5 + $0x474] ss:$8 sps:$4 sm:$0xff]  }
 0x130   : > { %2015 = vmatprep.subr.bf16.mxu1 %v7356_v11  ;;  %v7449_v11 = vld [vmem:[#allocation5 + $0x294] ss:$8 sps:$4 sm:$0xff]  }
 0x131   : > { %1943 = vmatpush1.bf16.msra.mxu0 %v7351_v10  ;;  %v7444_v10 = vld [vmem:[#allocation5 + $0x3a0] ss:$8 sps:$4 sm:$0xff]  }
 0x132   : > { %1944 = vmatprep.subr.bf16.mxu0 %v7359_v13  ;;  %v7452_v13 = vld [vmem:[#allocation5 + $0x394] ss:$8 sps:$4 sm:$0xff]  }
 0x133   : > { %2016 = vmatpush1.bf16.msra.mxu1 %v7354_v12  ;;  %v7447_v12 = vld [vmem:[#allocation5 + $0x290] ss:$8 sps:$4 sm:$0xff]  }
 0x134   : > { %2017 = vmatprep.subr.bf16.mxu1 %v7362_v16  ;;  %1837 = vmatmul.mubr.bf16.gmra.mxu0 %v7401_v17  ;;  %v7453_v16 = vld [vmem:[#allocation5 + $0x280] ss:$8 sps:$4 sm:$0xff]   ;;  %v7458_v17 = vld [vmem:[#allocation5 + $0x384] ss:$8 sps:$4 sm:$0xff]  }
 0x135   : > { %1945 = vmatpush1.bf16.msra.mxu0 %v7357_v15  ;;  %1846 = vmatprep.mubr.bf16.mxu0 %v7414_v26  ;;  %v7455_v15 = vld [vmem:[#allocation5 + $0x284] ss:$8 sps:$4 sm:$0xff]  }
 0x136   : > { %1946 = vmatprep.subr.bf16.mxu0 %v7365_v20  ;;  %1910 = vmatmul.mubr.bf16.gmra.mxu1 %v7407_v21  ;;  %v7459_v20 = vld [vmem:[%s8829_s2 + $0x10] ss:$36 sps:$4 sm:$0xff]   ;;  %v7477_v26 = vld [vmem:[%s8829_s2 + $0x64] ss:$36 sps:$4 sm:$0xff]  }
 0x137   : > { %2018 = vmatpush1.bf16.msra.mxu1 %v7360_v19  ;;  %1919 = vmatprep.mubr.bf16.mxu1 %v7420_v30  ;;  %v7456_v19 = vld [vmem:[#allocation5 + $0x380] ss:$8 sps:$4 sm:$0xff]   ;;  %v7462_v21 = vld [vmem:[#allocation5 + $0x470] ss:$8 sps:$4 sm:$0xff]  }
 0x138   : > { %2019 = vmatprep.subr.bf16.mxu1 %v7368_v23  ;;  %v7465_v23 = vld [vmem:[%s8829_s2 + $0x18] ss:$36 sps:$4 sm:$0xff]   ;;  %v7483_v30 = vld [vmem:[%s8829_s2 + $0xa4] ss:$36 sps:$4 sm:$0xff]  }
 0x139   : > { %1947 = vmatpush1.bf16.msra.mxu0 %v7363_v22  ;;  %v7471_v22 = vld [vmem:[%s8829_s2 + $0x5c] ss:$36 sps:$4 sm:$0xff]  }
 0x13a   : > { %1948 = vmatprep.subr.bf16.mxu0 %v7371_v25  ;;  %v7468_v25 = vld [vmem:[#allocation5 + $0x460] ss:$8 sps:$4 sm:$0xff]  }
 0x13b   : > { %2020 = vmatpush1.bf16.msra.mxu1 %v7366_v24  ;;  %v7470_v24 = vld [vmem:[#allocation5 + $0x464] ss:$8 sps:$4 sm:$0xff]  }
 0x13c   : > { %2021 = vmatprep.subr.bf16.mxu1 %v7374_v28  ;;  %1847 = vmatmul.mubr.bf16.gmra.mxu0 %v7419_v29  ;;  %v7473_v28 = vld [vmem:[%s8829_s2 + $0x58] ss:$36 sps:$4 sm:$0xff]  }
 0x13d   : > { %1949 = vmatpush1.bf16.msra.mxu0 %v7369_v27  ;;  %1856 = vmatprep.mubr.bf16.mxu0 %v7432_v38  ;;  %v7476_v27 = vld [vmem:[#allocation5 + $0x454] ss:$8 sps:$4 sm:$0xff]   ;;  %v7474_v29 = vld [vmem:[#allocation5 + $0x450] ss:$8 sps:$4 sm:$0xff]  }
 0x13e   : > { %1950 = vmatprep.subr.bf16.mxu0 %v7377_v32  ;;  %1920 = vmatmul.mubr.bf16.gmra.mxu1 %v7425_v33  ;;  %v7482_v32 = vld [vmem:[#allocation5 + $0x444] ss:$8 sps:$4 sm:$0xff]  }
 0x13f   : > { %2022 = vmatpush1.bf16.msra.mxu1 %v7372_v31  ;;  %1929 = vmatprep.mubr.bf16.mxu1 %v7438_v42  ;;  %v7479_v31 = vld [vmem:[%s8829_s2 + $0x60] ss:$36 sps:$4 sm:$0xff]   ;;  %v7489_v33 = vld [vmem:[%s8829_s2 + $0xac] ss:$36 sps:$4 sm:$0xff]  }
 0x140   : > { %2023 = vmatprep.subr.bf16.mxu1 %v7380_v35  ;;  %v7488_v35 = vld [vmem:[#allocation5 + $0x434] ss:$8 sps:$4 sm:$0xff]   ;;  %v7495_v38 = vld [vmem:[%s8829_s2 + $0xec] ss:$36 sps:$4 sm:$0xff]   ;;  %v7492_v42 = vld [vmem:[#allocation5 + $0x420] ss:$8 sps:$4 sm:$0xff]  }
 0x141   : > { %1951 = vmatpush1.bf16.msra.mxu0 %v7375_v34  ;;  %v7480_v34 = vld [vmem:[#allocation5 + $0x440] ss:$8 sps:$4 sm:$0xff]  }
 0x142   : > { %1952 = vmatprep.subr.bf16.mxu0 %v7383_v37  ;;  %v7486_v37 = vld [vmem:[#allocation5 + $0x430] ss:$8 sps:$4 sm:$0xff]  }
 0x143   : > { %2024 = vmatpush1.bf16.msra.mxu1 %v7378_v36  ;;  %v7485_v36 = vld [vmem:[%s8829_s2 + $0xa0] ss:$36 sps:$4 sm:$0xff]  }
 0x144   : > { %2025 = vmatprep.subr.bf16.mxu1 %v7386_v40  ;;  %1857 = vmatmul.mubr.bf16.gmra.mxu0 %v7437_v41  ;;  %v7494_v40 = vld [vmem:[#allocation5 + $0x424] ss:$8 sps:$4 sm:$0xff]   ;;  %v7501_v41 = vld [vmem:[%s8829_s2 + $0xf4] ss:$36 sps:$4 sm:$0xff]  }
 0x145   : > { %1953 = vmatpush1.bf16.msra.mxu0 %v7381_v39  ;;  %1972 = vmatprep.mubr.bf16.mxu0 %v7461_v54  ;;  %v7491_v39 = vld [vmem:[%s8829_s2 + $0xa8] ss:$36 sps:$4 sm:$0xff]   ;;  %v7511_v54 = vld [vmem:[#allocation10 + $0x78] sm:$0xff]  }
 0x146   : > { %1954 = vmatprep.subr.bf16.mxu0 %v7389_v44  ;;  %1930 = vmatmul.mubr.bf16.gmra.mxu1 %v7443_v45  ;;  %v7497_v44 = vld [vmem:[%s8829_s2 + $0xe8] ss:$36 sps:$4 sm:$0xff]   ;;  %v7498_v45 = vld [vmem:[#allocation5 + $0x410] ss:$8 sps:$4 sm:$0xff]  }
 0x147   : > { %2026 = vmatpush1.bf16.msra.mxu1 %v7384_v43  ;;  %2045 = vmatprep.mubr.bf16.mxu1 %v7467_v57  ;;  %v7500_v43 = vld [vmem:[#allocation5 + $0x414] ss:$8 sps:$4 sm:$0xff]  }
 0x148   : > { %2027 = vmatprep.subr.bf16.mxu1 %v7392_v46  ;;  %v7503_v46 = vld [vmem:[%s8829_s2 + $0xf0] ss:$36 sps:$4 sm:$0xff]   ;;  %v8870_v57 = vld [vmem:[#allocation13 + $0x38] sm:$0xff]  }
 0x149   : > { %1955 = vmatpush1.bf16.msra.mxu0 %v7387_v47  ;;  %v7506_v47 = vld [vmem:[#allocation5 + $0x404] ss:$8 sps:$4 sm:$0xff]   ;;  %10230 = vst [vmem:[#allocation44_spill] sm:$0xff] %v8870_v57 }
 0x14a   : > { %1956 = vmatprep.subr.bf16.mxu0 %v7395_v48  ;;  %v7504_v48 = vld [vmem:[#allocation5 + $0x400] ss:$8 sps:$4 sm:$0xff]  }
 0x14b   : > { %2028 = vmatpush1.bf16.msra.mxu1 %v7390_v49  ;;  %v8508_v49 = vmov 0  }
 0x14c   : > { %2029 = vmatprep.subr.bf16.mxu1 %v7400_v50  ;;  %v7507_v50 = vld [vmem:[%s8829_s2 + $0x20] ss:$36 sps:$4 sm:$0xff]  }
 0x14d   : > { %1957 = vmatpush2.bf16.msra.mxu0 %v7393_v51  ;;  %v7508_v51 = vld [vmem:[%s8829_s2 + $0x68] ss:$36 sps:$4 sm:$0xff]  }
 0x14e   : > { %1958 = vmatprep.subr.bf16.mxu0 %v7406_v53  ;;  %v7510_v53 = vld [vmem:[%s8829_s2 + $0xf8] ss:$36 sps:$4 sm:$0xff]  }
 0x14f   : > { %2030 = vmatpush2.bf16.msra.mxu1 %v7398_v52  ;;  %v7509_v52 = vld [vmem:[%s8829_s2 + $0xb0] ss:$36 sps:$4 sm:$0xff]  }
 0x150   : > { %2031 = vmatprep.subr.bf16.mxu1 %v7410_v55  ;;  %v8867_v55 = vld [vmem:[#allocation13 + $0x78] sm:$0xff]  }
 0x151   : > { %1959 = vmatpush2.bf16.msra.mxu0 %v7404_v56  ;;  %v7513_v56 = vld [vmem:[#allocation10 + $0x38] sm:$0xff]  }
 0x152   : > { %1960 = vmatprep.subr.bf16.mxu0 %v7413_v58  ;;  %v7515_v58 = vld [vmem:[#allocation10 + $0x70] sm:$0xff]  }
 0x153   : > { %2032 = vmatpush2.bf16.msra.mxu1 %v7408_v59  ;;  %v8873_v59 = vld [vmem:[#allocation13 + $0x70] sm:$0xff]  }
 0x154   : > { %2033 = vmatprep.subr.bf16.mxu1 %v7418_v60  ;;  %10231 = vst [vmem:[#allocation45_spill] sm:$0xff] %v8873_v59  ;;  %v7517_v60 = vld [vmem:[#allocation10 + $0x30] sm:$0xff]  }
 0x155   : > { %1961 = vmatpush2.bf16.msra.mxu0 %v7411_v61  ;;  %v8876_v61 = vld [vmem:[#allocation13 + $0x30] sm:$0xff]  }
 0x156   : > { %1962 = vmatprep.subr.bf16.mxu0 %v7424_v62  ;;  %10232 = vst [vmem:[#allocation46_spill] sm:$0xff] %v8876_v61 }
 0x157   : > { %2034 = vmatpush2.bf16.msra.mxu1 %v7416_v63  ;;  %v7519_v63 = vld [vmem:[#allocation10 + $0x68] sm:$0xff]  }
 0x158   : > { %2035 = vmatprep.subr.bf16.mxu1 %v7428_v0  ;;  %v8881_v0 = vld [vmem:[#allocation13 + $0x68] sm:$0xff]  }
 0x159   : > { %1963 = vmatpush2.bf16.msra.mxu0 %v7422_v1  ;;  %10233 = vst [vmem:[#allocation47_spill] sm:$0xff] %v8881_v0 }
 0x15a   : > { %1964 = vmatprep.subr.bf16.mxu0 %v7431_v2  ;;  %v7521_v2 = vld [vmem:[#allocation10 + $0x28] sm:$0xff]  }
 0x15b   : > { %2036 = vmatpush2.bf16.msra.mxu1 %v7426_v3  ;;  %v8885_v3 = vld [vmem:[#allocation13 + $0x28] sm:$0xff]  }
 0x15c   : > { %2037 = vmatprep.subr.bf16.mxu1 %v7436_v4  ;;  %10234 = vst [vmem:[#allocation48_spill] sm:$0xff] %v8885_v3 }
 0x15d   : > { %1965 = vmatpush2.bf16.msra.mxu0 %v7429_v5  ;;  %v7523_v5 = vld [vmem:[#allocation10 + $0x60] sm:$0xff]  }
 0x15e   : > { %1966 = vmatprep.subr.bf16.mxu0 %v7442_v6  ;;  %v8891_v6 = vld [vmem:[#allocation13 + $0x60] sm:$0xff]  }
 0x15f   : > { %2038 = vmatpush2.bf16.msra.mxu1 %v7434_v7  ;;  %10235 = vst [vmem:[#allocation49_spill] sm:$0xff] %v8891_v6 }
 0x160   : > { %2039 = vmatprep.subr.bf16.mxu1 %v7446_v8  ;;  %v7525_v8 = vld [vmem:[#allocation10 + $0x20] sm:$0xff]  }
 0x161   : > { %1967 = vmatpush2.bf16.msra.mxu0 %v7440_v9  ;;  %v8895_v9 = vld [vmem:[#allocation13 + $0x20] sm:$0xff]  }
 0x162   : > { %1968 = vmatprep.subr.bf16.mxu0 %v7449_v11  ;;  %10236 = vst [vmem:[#allocation50_spill] sm:$0xff] %v8895_v9  ;;  %v7527_v11 = vld [vmem:[#allocation10 + $0x58] sm:$0xff]  }
 0x163   : > { %2040 = vmatpush2.bf16.msra.mxu1 %v7444_v10 }
 0x164   : > { %2041 = vmatprep.subr.bf16.mxu1 %v7452_v13 }
 0x165   : > { %1969 = vmatpush2.bf16.msra.mxu0 %v7447_v12  ;;  %v8901_v12 = vld [vmem:[#allocation13 + $0x58] sm:$0xff]  }
 0x166   : > { %1970 = vmatprep.subr.bf16.mxu0 %v7455_v15  ;;  %10237 = vst [vmem:[#allocation51_spill] sm:$0xff] %v8901_v12  ;;  %v8905_v15 = vld [vmem:[#allocation13 + $0x18] sm:$0xff]  }
 0x167   : > { %2042 = vmatpush2.bf16.msra.mxu1 %v7450_v14  ;;  %v7529_v14 = vld [vmem:[#allocation10 + $0x18] sm:$0xff]   ;;  %10238 = vst [vmem:[#allocation52_spill] sm:$0xff] %v8905_v15 }
 0x168   : > { %2043 = vmatprep.subr.bf16.mxu1 %v7458_v17 }
 0x169   : > { %1971 = vmatpush2.bf16.msra.mxu0 %v7453_v16 }
 0x16a   : > { %2086 = vmatprep.subr.bf16.mxu0 %v7464_v18  ;;  %v7531_v18 = vld [vmem:[#allocation10 + $0x50] sm:$0xff]  }
 0x16b   : > { %2044 = vmatpush2.bf16.msra.mxu1 %v7456_v19  ;;  %v8913_v19 = vld [vmem:[#allocation13 + $0x50] sm:$0xff]  }
 0x16c   : > { %1973 = vmatmul.mubr.bf16.vlgmr.msra.gmra.mxu0 %v7459_v20  ;;  %6680 = vmatprep.subr.bf16.mxu1 %v7511_v54  ;;  %10239 = vst [vmem:[#allocation53_spill] sm:$0xff] %v8913_v19 }
 0x16d   : > { %2087 = vmatpush1.bf16.msra.mxu0 %v7462_v21  ;;  %1982 = vmatprep.mubr.bf16.mxu0 %v7471_v22  ;;  %v7533_v21 = vld [vmem:[#allocation10 + $0x10] sm:$0xff]  }
 0x16e   : > { %2046 = vmatmul.mubr.bf16.vlgmr.msra.gmra.mxu1 %v7465_v23  ;;  %2088 = vmatprep.subr.bf16.mxu0 %v7470_v24  ;;  %v8917_v22 = vld [vmem:[#allocation13 + $0x10] sm:$0xff]  }
 0x16f   : > { %2055 = vmatprep.mubr.bf16.mxu1 %v7477_v26  ;;  %6681 = vmatpush3.bf16.msra.mxu1 %v7513_v56  ;;  %10240 = vst [vmem:[#allocation54_spill] sm:$0xff] %v8917_v22  ;;  %v8925_v26 = vld [vmem:[#allocation13 + $0x48] sm:$0xff]  }
 0x170   : > { %6682 = vmatprep.subr.bf16.mxu1 %v7515_v58  ;;  %10241 = vst [vmem:[#allocation55_spill] sm:$0xff] %v8925_v26 }
 0x171   : > { %2089 = vmatpush1.bf16.msra.mxu0 %v7468_v25  ;;  %v7535_v25 = vld [vmem:[#allocation10 + $0x48] sm:$0xff]  }
 0x172   : > { %2090 = vmatprep.subr.bf16.mxu0 %v7476_v27  ;;  %v7537_v27 = vld [vmem:[#allocation10 + $0x8] sm:$0xff]  }
 0x173   : > { %6683 = vmatpush3.bf16.msra.mxu1 %v7517_v60  ;;  %v880_v60 = vlaneseq }
 0x174   : > { %1983 = vmatmul.mubr.bf16.gmra.mxu0 %v7473_v28  ;;  %6684 = vmatprep.subr.bf16.mxu1 %v7519_v63  ;;  %v8927_v28 = vld [vmem:[#allocation13 + $0x8] sm:$0xff]  }
 0x175   : > { %2091 = vmatpush1.bf16.msra.mxu0 %v7474_v29  ;;  %1992 = vmatprep.mubr.bf16.mxu0 %v7483_v30  ;;  %10242 = vst [vmem:[#allocation56_spill] sm:$0xff] %v8927_v28 }
 0x176   : > { %2056 = vmatmul.mubr.bf16.gmra.mxu1 %v7479_v31  ;;  %2092 = vmatprep.subr.bf16.mxu0 %v7482_v32  ;;  %v7539_v31 = vld [vmem:[#allocation10 + $0x40] sm:$0xff]  }
 0x177   : > { %2065 = vmatprep.mubr.bf16.mxu1 %v7489_v33  ;;  %6685 = vmatpush3.bf16.msra.mxu1 %v7521_v2  ;;  %v8935_v32 = vld [vmem:[#allocation13 + $0x40] sm:$0xff]  }
 0x178   : > { %6686 = vmatprep.subr.bf16.mxu1 %v7523_v5  ;;  %10243 = vst [vmem:[#allocation57_spill] sm:$0xff] %v8935_v32  ;;  %v7541_v33 = vld [vmem:[#allocation10] sm:$0xff]  }
 0x179   : > { %2093 = vmatpush1.bf16.msra.mxu0 %v7480_v34  ;;  %v8937_v34 = vld [vmem:[#allocation13] sm:$0xff]  }
 0x17a   : > { %2094 = vmatprep.subr.bf16.mxu0 %v7488_v35  ;;  %10244 = vst [vmem:[#allocation58_spill] sm:$0xff] %v8937_v34 }
 0x17b   : > { %6687 = vmatpush3.bf16.msra.mxu1 %v7525_v8  ;;  %v8980_v8 = vshrl.u32 %v880_v60, 7 }
 0x17c   : > { %1993 = vmatmul.mubr.bf16.gmra.mxu0 %v7485_v36  ;;  %6688 = vmatprep.subr.bf16.mxu1 %v7527_v11 }
 0x17d   : > { %2095 = vmatpush1.bf16.msra.mxu0 %v7486_v37  ;;  %2002 = vmatprep.mubr.bf16.mxu0 %v7495_v38  ;;  %10245 = vst [vmem:[#allocation59_spill] sm:$0xff] %v8980_v8 }
 0x17e   : > { %2066 = vmatmul.mubr.bf16.gmra.mxu1 %v7491_v39  ;;  %2096 = vmatprep.subr.bf16.mxu0 %v7494_v40 }
 0x17f   : > { %2075 = vmatprep.mubr.bf16.mxu1 %v7501_v41  ;;  %6689 = vmatpush3.bf16.msra.mxu1 %v7529_v14 }
 0x180   : > { %6690 = vmatprep.subr.bf16.mxu1 %v7531_v18 }
 0x181   : > { %2097 = vmatpush1.bf16.msra.mxu0 %v7492_v42 }
 0x182   : > { %2098 = vmatprep.subr.bf16.mxu0 %v7500_v43 }
 0x183   : > { %6691 = vmatpush3.bf16.msra.mxu1 %v7533_v21  ;;  %v10178_v21 = vsub.s32 0, %v8980_v8 }
 0x184   : > { %2003 = vmatmul.mubr.bf16.gmra.mxu0 %v7497_v44  ;;  %6692 = vmatprep.subr.bf16.mxu1 %v7535_v25  ;;  %v878_v25 = vld [vmem:[#allocation8] sm:$0x3] }
 0x185   : > { %2099 = vmatpush1.bf16.msra.mxu0 %v7498_v45  ;;  %2118 = vmatprep.mubr.bf16.mxu0 %v8508_v49 }
 0x186   : > { %2076 = vmatmul.mubr.bf16.gmra.mxu1 %v7503_v46  ;;  %2100 = vmatprep.subr.bf16.mxu0 %v7506_v47 }
 0x187   : > { %6693 = vmatpush3.bf16.msra.mxu1 %v7537_v27 }
 0x188   : > { %6694 = vmatprep.subr.bf16.mxu1 %v7539_v31  ;;  %v10180_v31 = vsub.s32 1, %v8980_v8 }
 0x189   : > { %2101 = vmatpush1.bf16.msra.mxu0 %v7504_v48 }
 0x18a   : > { %6720 = vmatprep.subr.bf16.mxu0 %v8867_v55  ;;  %v8996_v60 = vrot.slane %v878_v25, %v10180_v31 }
 0x18b   : > { %6695 = vmatpush3.bf16.msra.mxu1 %v7541_v33 }
 0x18c   : > { %2119 = vmatmul.mubr.bf16.vlgmr.msra.gmra.mxu0 %v7507_v50  ;;  %7028 = vmatprep.subr.bf16.mxu1 %v8867_v55 }
 0x18d   : > { %2128 = vmatprep.mubr.bf16.mxu0 %v8508_v49  ;;  %6721 = vmatpush3.bf16.msra.mxu0 %v8870_v57 }
 0x18e   : > { %6722 = vmatprep.subr.bf16.mxu0 %v8873_v59 }
 0x191   : > { %6723 = vmatpush3.bf16.msra.mxu0 %v8876_v61 }
 0x192   : > { %6724 = vmatprep.subr.bf16.mxu0 %v8881_v0 }
 0x194   : > { %2129 = vmatmul.mubr.bf16.gmra.mxu0 %v7508_v51 }
 0x195   : > { %2138 = vmatprep.mubr.bf16.mxu0 %v8508_v49  ;;  %6725 = vmatpush3.bf16.msra.mxu0 %v8885_v3 }
 0x196   : > { %6726 = vmatprep.subr.bf16.mxu0 %v8891_v6 }
 0x199   : > { %6727 = vmatpush3.bf16.msra.mxu0 %v8895_v9 }
 0x19a   : > { %6728 = vmatprep.subr.bf16.mxu0 %v8901_v12 }
 0x19c   : > { %2139 = vmatmul.mubr.bf16.gmra.mxu0 %v7509_v52 }
 0x19d   : > { %2148 = vmatprep.mubr.bf16.mxu0 %v8508_v49  ;;  %6729 = vmatpush3.bf16.msra.mxu0 %v8905_v15 }
 0x19e   : > { %6730 = vmatprep.subr.bf16.mxu0 %v8913_v19 }
 0x1a1   : > { %6731 = vmatpush3.bf16.msra.mxu0 %v8917_v22 }
 0x1a2   : > { %6732 = vmatprep.subr.bf16.mxu0 %v8925_v26 }
 0x1a4   : > { %2149 = vmatmul.mubr.bf16.gmra.mxu0 %v7510_v53 }
 0x1a5   : > { %6733 = vmatpush3.bf16.msra.mxu0 %v8927_v28 }
 0x1a6   : > { %6734 = vmatprep.subr.bf16.mxu0 %v8935_v32  ;;  %v8990_v32 = vrot.slane %v878_v25, %v10178_v21 }
 0x1a9   : > { %6735 = vmatpush3.bf16.msra.mxu0 %v8937_v34 }
 0x1ec   : > { %v8879_v62 = vpop.f32.mrf.mxu0 }
 0x1ed   : > { %v1829_v19 = vadd.f32 %v8879_v62, %v8990_v32 }
 0x1ee   : > { %v8883_v1 = vpop.f32.mrf.mxu1  ;;  %v8887_v4 = vpop.f32.mrf.mxu0 }
 0x1ef   : > { %v1831_v12 = vadd.f32 %v8887_v4, %v8996_v60  ;;  %v1902_v6 = vadd.f32 %v8883_v1, %v1829_v19 }
 0x1f0   : > { %v8893_v7 = vpop.f32.mrf.mxu1  ;;  %v8897_v10 = vpop.f32.mrf.mxu0 }
 0x1f1   : > { %v1833_v25 = vadd.f32 %v8897_v10, %v8990_v32  ;;  %v1904_v8 = vadd.f32 %v8893_v7, %v1831_v12 }
 0x1f2   : > { %v8903_v13 = vpop.f32.mrf.mxu1  ;;  %v8907_v16 = vpop.f32.mrf.mxu0 }
 0x1f3   : > { %v1835_v62 = vadd.f32 %v8907_v16, %v8996_v60  ;;  %v1906_v4 = vadd.f32 %v8903_v13, %v1833_v25 }
 0x1f4   : > { %v8911_v17 = vpop.f32.mrf.mxu0  ;;  %v8915_v20 = vpop.f32.mrf.mxu1 }
 0x1f5   : > { %v1839_v59 = vadd.f32 %v8911_v17, %v8990_v32  ;;  %v1908_v12 = vadd.f32 %v8915_v20, %v1835_v62 }
 0x1f6   : > { %v8920_v23 = vpop.f32.mrf.mxu1  ;;  %v8923_v24 = vpop.f32.mrf.mxu0 }
 0x1f7   : > { %v1841_v10 = vadd.f32 %v8923_v24, %v8996_v60  ;;  %v1912_v13 = vadd.f32 %v8920_v23, %v1839_v59 }
 0x1f8   : > { %v8930_v29 = vpop.f32.mrf.mxu1  ;;  %v8933_v30 = vpop.f32.mrf.mxu0 }
 0x1f9   : > { %v1843_v16 = vadd.f32 %v8933_v30, %v8990_v32  ;;  %v1914_v17 = vadd.f32 %v8930_v29, %v1841_v10 }
 0x1fa   : > { %v8940_v35 = vpop.f32.mrf.mxu1  ;;  %v8943_v36 = vpop.f32.mrf.mxu0 }
 0x1fb   : > { %v1845_v20 = vadd.f32 %v8943_v36, %v8996_v60  ;;  %v1916_v30 = vadd.f32 %v8940_v35, %v1843_v16 }
 0x1fc   : > { %v8946_v37 = vpop.f32.mrf.mxu1  ;;  %v8948_v38 = vpop.f32.mrf.mxu0 }
 0x1fe   : > { %v8950_v39 = vpop.f32.mrf.mxu1  ;;  %v8952_v40 = vpop.f32.mrf.mxu0 }
 0x200   : > { %v8954_v41 = vpop.f32.mrf.mxu1  ;;  %v8956_v42 = vpop.f32.mrf.mxu0 }
 0x202   : > { %v8958_v43 = vpop.f32.mrf.mxu1  ;;  %v8960_v44 = vpop.f32.mrf.mxu0 }
 0x204   : > { %v8962_v45 = vpop.f32.mrf.mxu1  ;;  %v8964_v46 = vpop.f32.mrf.mxu0 }
 0x206   : > { %v8966_v47 = vpop.f32.mrf.mxu1  ;;  %v8968_v48 = vpop.f32.mrf.mxu0 }
 0x208   : > { %v8970_v49 = vpop.f32.mrf.mxu1  ;;  %v8972_v50 = vpop.f32.mrf.mxu0 }
 0x20a   : > { %v8974_v51 = vpop.f32.mrf.mxu1  ;;  %v8976_v52 = vpop.f32.mrf.mxu0 }
 0x20c   : > { %v8978_v54 = vpop.f32.mrf.mxu1 }
 0x22c   : > { %v1974_v53 = vpop.f32.mrf.mxu0 }
 0x22d   : > { %v1975_v3 = vadd.f32 %v1974_v53, %v1902_v6 }
 0x22e   : > { %v1976_v55 = vpop.f32.mrf.mxu0  ;;  %v2047_v56 = vpop.f32.mrf.mxu1 }
 0x22f   : > { %v1977_v1 = vadd.f32 %v1976_v55, %v1904_v8  ;;  %v2048_v57 = vadd.f32 %v2047_v56, %v1975_v3 }
 0x230   : > { %v1978_v58 = vpop.f32.mrf.mxu0  ;;  %v2049_v2 = vpop.f32.mrf.mxu1 }
 0x231   : > { %v1979_v7 = vadd.f32 %v1978_v58, %v1906_v4  ;;  %v2050_v25 = vadd.f32 %v2049_v2, %v1977_v1 }
 0x232   : > { %v1980_v63 = vpop.f32.mrf.mxu0  ;;  %v2051_v14 = vpop.f32.mrf.mxu1 }
 0x233   : > { %v1981_v55 = vadd.f32 %v1980_v63, %v1908_v12  ;;  %v2052_v8 = vadd.f32 %v2051_v14, %v1979_v7  ;;  %v1853_v7 = vadd.f32 %v8956_v42, %v8990_v32 }
 0x234   : > { %v1984_v5 = vpop.f32.mrf.mxu0  ;;  %v2053_v33 = vpop.f32.mrf.mxu1 }
 0x235   : > { %v2054_v14 = vadd.f32 %v2053_v33, %v1981_v55 }
 0x236   : > { %v1986_v11 = vpop.f32.mrf.mxu0  ;;  %v2057_v26 = vpop.f32.mrf.mxu1 }
 0x237   : > { %v1987_v23 = vadd.f32 %v1986_v11, %v1914_v17 }
 0x238   : > { %v1988_v18 = vpop.f32.mrf.mxu0  ;;  %v2059_v9 = vpop.f32.mrf.mxu1 }
 0x239   : > { %v1989_v62 = vadd.f32 %v1988_v18, %v1916_v30 }
 0x23a   : > { %v8983_v27 = vpop.f32.mrf.mxu0  ;;  %v2061_v0 = vpop.f32.mrf.mxu1 }
 0x23c   : > { %v8986_v34 = vpop.f32.mrf.mxu0  ;;  %v2063_v6 = vpop.f32.mrf.mxu1 }
 0x23e   : > { %v8992_v28 = vpop.f32.mrf.mxu0  ;;  %v2067_v3 = vpop.f32.mrf.mxu1 }
 0x240   : > { %v8998_v22 = vpop.f32.mrf.mxu0  ;;  %v2069_v36 = vpop.f32.mrf.mxu1 }
 0x242   : > { %v9002_v15 = vpop.f32.mrf.mxu0 }
 0x244   : > { %v9006_v21 = vpop.f32.mrf.mxu0 }
 0x246   : > { %v9011_v31 = vpop.f32.mrf.mxu0 }
 0x248   : > { %v9016_v61 = vpop.f32.mrf.mxu0 }
 0x249   : > { %10246 = vst [vmem:[#allocation60_spill] sm:$0xff] %v9016_v61 }
 0x24a   : > { %v9023_v19 = vpop.f32.mrf.mxu0 }
 0x24b   : > { %10247 = vst [vmem:[#allocation61_spill] sm:$0xff] %v9023_v19  ;;  %v1985_v19 = vadd.f32 %v1984_v5, %v1912_v13  ;;  %v1851_v5 = vadd.f32 %v8952_v40, %v8996_v60  ;;  %v2060_v40 = vadd.f32 %v2059_v9, %v1987_v23  ;;  %v1855_v9 = vadd.f32 %v8960_v44, %v8996_v60 }
 0x24c   : > { %v2120_v53 = vpop.f32.mrf.mxu0 }
 0x24d   : > { %v9029_v61 = vadd.f32 %v2120_v53, %v2048_v57  ;;  %v1849_v57 = vadd.f32 %v8948_v38, %v8990_v32  ;;  %v2058_v1 = vadd.f32 %v2057_v26, %v1985_v19  ;;  %v1918_v38 = vadd.f32 %v8946_v37, %v1845_v20 }
 0x24e   : > { %v2122_v24 = vpop.f32.mrf.mxu0  ;;  %v1924_v26 = vadd.f32 %v8954_v41, %v1851_v5  ;;  %v2062_v53 = vadd.f32 %v2061_v0, %v1989_v62 }
 0x24f   : > { %v2159_v56 = vmin.f32 %v9029_v61, 20.0  ;;  %v9033_v58 = vadd.f32 %v2122_v24, %v2050_v25  ;;  %v1922_v11 = vadd.f32 %v8950_v39, %v1849_v57  ;;  %v1991_v19 = vadd.f32 %v8983_v27, %v1918_v38  ;;  %v2071_v25 = vpop.f32.mrf.mxu1 }
 0x250   : > { %v2124_v59 = vpop.f32.mrf.mxu0  ;;  %v1997_v41 = vadd.f32 %v8992_v28, %v1924_v26  ;;  %v1928_v28 = vadd.f32 %v8962_v45, %v1855_v9  ;;  %vm2239_vm2 = vcmp.gt.f32.partialorder %v9029_v61, 20.0 }
 0x251   : > { %v2175_v29 = vmul.f32 1.442695, %v2159_v56  ;;  %v2160_v63 = vmin.f32 %v9033_v58, 20.0  ;;  %v9041_v2 = vadd.f32 %v2124_v59, %v2052_v8  ;;  %v1995_v39 = vadd.f32 %v8986_v34, %v1922_v11  ;;  %v2073_v59 = vpop.f32.mrf.mxu1 }
 0x252   : > { %v2126_v4 = vpop.f32.mrf.mxu0  ;;  %v1926_v34 = vadd.f32 %v8958_v43, %v1853_v7  ;;  %v1859_v56 = vadd.f32 %v8964_v46, %v8990_v32  ;;  %v2064_v20 = vadd.f32 %v2063_v6, %v1991_v19  ;;  %v2070_v46 = vadd.f32 %v2069_v36, %v1997_v41 }
 0x253   : > { %7543 = vpow2.f32 %v2175_v29  ;;  %v2177_v35 = vmul.f32 1.442695, %v2160_v63  ;;  %v2161_v10 = vmin.f32 %v9041_v2, 20.0  ;;  %v9050_v12 = vadd.f32 %v2126_v4, %v2054_v14 }
 0x254   : > { %v2130_v16 = vpop.f32.mrf.mxu0  ;;  %v2068_v57 = vadd.f32 %v2067_v3, %v1995_v39  ;;  %v1861_v29 = vadd.f32 %v8968_v48, %v8996_v60  ;;  %v1999_v63 = vadd.f32 %v8998_v22, %v1926_v34  ;;  %v1932_v3 = vadd.f32 %v8966_v47, %v1859_v56 }
 0x255   : > { %7545 = vpow2.f32 %v2177_v35  ;;  %v2179_v18 = vmul.f32 1.442695, %v2161_v10  ;;  %v9052_v33 = vadd.f32 %v2130_v16, %v2058_v1  ;;  %v2162_v37 = vmin.f32 %v9050_v12, 20.0  ;;  %v2077_v1 = vpop.f32.mrf.mxu1 }
 0x256   : > { %v2132_v13 = vpop.f32.mrf.mxu0  ;;  %v2001_v62 = vadd.f32 %v9002_v15, %v1928_v28  ;;  %v1863_v48 = vadd.f32 %v8972_v50, %v8990_v32  ;;  %v1934_v10 = vadd.f32 %v8970_v49, %v1861_v29  ;;  %v1865_v47 = vadd.f32 %v8976_v52, %v8996_v60 }
 0x257   : > { %7547 = vpow2.f32 %v2179_v18  ;;  %v2163_v42 = vmin.f32 %v9052_v33, 20.0  ;;  %v9059_v17 = vadd.f32 %v2132_v13, %v2060_v40  ;;  %v2181_v55 = vmul.f32 1.442695, %v2162_v37 }
 0x258   : > { %v2134_v24 = vpop.f32.mrf.mxu0  ;;  %v2072_v38 = vadd.f32 %v2071_v25, %v1999_v63  ;;  %v2005_v7 = vadd.f32 %v9006_v21, %v1932_v3  ;;  %v2074_v18 = vadd.f32 %v2073_v59, %v2001_v62  ;;  %v2007_v26 = vadd.f32 %v9011_v31, %v1934_v10  ;;  %v10249_v63 = vld [vmem:[#allocation61_spill] sm:$0xff] }
 0x259   : > { %v2183_v27 = vmul.f32 1.442695, %v2163_v42  ;;  %v2164_v0 = vmin.f32 %v9059_v17, 20.0  ;;  %v9065_v8 = vadd.f32 %v2134_v24, %v2062_v53  ;;  %7549 = vpow2.f32 %v2181_v55  ;;  %v2079_v53 = vpop.f32.mrf.mxu1 }
 0x25a   : > { %v2136_v30 = vpop.f32.mrf.mxu0  ;;  %v1936_v21 = vadd.f32 %v8974_v51, %v1863_v48  ;;  %v1938_v39 = vadd.f32 %v8978_v54, %v1865_v47  ;;  %v2078_v9 = vadd.f32 %v2077_v1, %v2005_v7  ;;  %v2080_v54 = vadd.f32 %v2079_v53, %v2007_v26 }
 0x25b   : > { %7551 = vpow2.f32 %v2183_v27  ;;  %v2185_v44 = vmul.f32 1.442695, %v2164_v0  ;;  %v2165_v23 = vmin.f32 %v9065_v8, 20.0  ;;  %v9075_v43 = vadd.f32 %v2136_v30, %v2064_v20  ;;  %v10248_v27 = vld [vmem:[#allocation60_spill] sm:$0xff]  ;;  %v2081_v30 = vpop.f32.mrf.mxu1 }
 0x25c   : > { %v2140_v5 = vpop.f32.mrf.mxu0  ;;  %v2009_v0 = vadd.f32 %v10248_v27, %v1936_v21  ;;  %vm2241_vm0 = vcmp.gt.f32.partialorder %v9041_v2, 20.0  ;;  %vm2240_vm1 = vcmp.gt.f32.partialorder %v9033_v58, 20.0  ;;  %vm2242_vm3 = vcmp.gt.f32.partialorder %v9050_v12, 20.0 }
 0x25d   : > { %7553 = vpow2.f32 %v2185_v44  ;;  %v2187_v6 = vmul.f32 1.442695, %v2165_v23  ;;  %v9077_v14 = vadd.f32 %v2140_v5, %v2068_v57  ;;  %v2166_v4 = vmin.f32 %v9075_v43, 20.0  ;;  %v2083_v47 = vpop.f32.mrf.mxu1 }
 0x25e   : > { %v2142_v45 = vpop.f32.mrf.mxu0  ;;  %v2011_v5 = vadd.f32 %v10249_v63, %v1938_v39  ;;  %vm2245_vm4 = vcmp.gt.f32.partialorder %v9065_v8, 20.0  ;;  %vm2244_vm5 = vcmp.gt.f32.partialorder %v9059_v17, 20.0  ;;  %vm2243_vm6 = vcmp.gt.f32.partialorder %v9052_v33, 20.0 }
 0x25f   : > { %7555 = vpow2.f32 %v2187_v6  ;;  %v2167_v22 = vmin.f32 %v9077_v14, 20.0  ;;  %v9085_v35 = vadd.f32 %v2142_v45, %v2070_v46  ;;  %v2189_v15 = vmul.f32 1.442695, %v2166_v4 }
 0x260   : > { %v7544_v36 = vpop.eup %7543  ;;  %v2144_v11 = vpop.f32.mrf.mxu0  ;;  %v2082_v4 = vadd.f32 %v2081_v30, %v2009_v0  ;;  %v2084_v26 = vadd.f32 %v2083_v47, %v2011_v5  ;;  %vm2246_vm7 = vcmp.gt.f32.partialorder %v9075_v43, 20.0  ;;  %vm2247_vm10 = vcmp.gt.f32.partialorder %v9077_v14, 20.0 }
 0x261   : > { %v2207_v16 = vadd.f32 1.0, %v7544_v36  ;;  %v2191_v40 = vmul.f32 1.442695, %v2167_v22  ;;  %v2168_v32 = vmin.f32 %v9085_v35, 20.0  ;;  %7557 = vpow2.f32 %v2189_v15 }
 0x262   : > { %v7546_v50 = vpop.eup %7545  ;;  %v9093_v19 = vadd.f32 %v2144_v11, %v2072_v38  ;;  %v2146_v49 = vpop.f32.mrf.mxu0  ;;  %vm2248_vm9 = vcmp.gt.f32.partialorder %v9085_v35, 20.0 }
 0x263   : > { %v9095_v37 = vmul.f32 %v2207_v16, %v2207_v16  ;;  %v2208_v52 = vadd.f32 1.0, %v7546_v50  ;;  %7559 = vpow2.f32 %v2191_v40  ;;  %v2193_v60 = vmul.f32 1.442695, %v2168_v32 }
 0x264   : > { %v7548_v13 = vpop.eup %7547  ;;  %v2169_v25 = vmin.f32 %v9093_v19, 20.0  ;;  %v9100_v42 = vadd.f32 %v2146_v49, %v2074_v18  ;;  %v2150_v31 = vpop.f32.mrf.mxu0  ;;  %vm2249_vm8 = vcmp.gt.f32.partialorder %v9093_v19, 20.0 }
 0x265   : > { %v2271_v55 = vadd.f32 1.0, %v9095_v37  ;;  %v9103_v24 = vmul.f32 %v2208_v52, %v2208_v52  ;;  %v2209_v41 = vadd.f32 1.0, %v7548_v13  ;;  %7561 = vpow2.f32 %v2193_v60 }
 0x266   : > { %v2195_v34 = vmul.f32 1.442695, %v2169_v25  ;;  %v2170_v56 = vmin.f32 %v9100_v42, 20.0  ;;  %v2152_v51 = vpop.f32.mrf.mxu0  ;;  %v7550_v20 = vpop.eup %7549  ;;  %v9110_v29 = vadd.f32 %v2150_v31, %v2078_v9  ;;  %v6258_v63 = vadd.f32 -1.0, %v9095_v37 }
 0x267   : > { %7563 = vrcp.f32 %v2271_v55  ;;  %v2272_v57 = vadd.f32 1.0, %v9103_v24  ;;  %v9108_v59 = vmul.f32 %v2209_v41, %v2209_v41  ;;  %v2210_v23 = vadd.f32 1.0, %v7550_v20 }
 0x268   : > { %v7552_v44 = vpop.eup %7551  ;;  %7565 = vpow2.f32 %v2195_v34  ;;  %v2197_v28 = vmul.f32 1.442695, %v2170_v56  ;;  %v2154_v3 = vpop.f32.mrf.mxu0  ;;  %v2171_v48 = vmin.f32 %v9110_v29, 20.0  ;;  %v9119_v36 = vadd.f32 %v2152_v51, %v2080_v54 }
 0x269   : > { %7567 = vrcp.f32 %v2272_v57  ;;  %v2273_v46 = vadd.f32 1.0, %v9108_v59  ;;  %v2211_v6 = vadd.f32 1.0, %v7552_v44  ;;  %v9114_v45 = vmul.f32 %v2210_v23, %v2210_v23 }
 0x26a   : > { %v7554_v62 = vpop.eup %7553  ;;  %7569 = vpow2.f32 %v2197_v28  ;;  %v2199_v15 = vmul.f32 1.442695, %v2171_v48  ;;  %v9122_v11 = vadd.f32 %v2154_v3, %v2082_v4  ;;  %v2172_v32 = vmin.f32 %v9119_v36, 20.0  ;;  %v2156_v52 = vpop.f32.mrf.mxu0 }
 0x26b   : > { %7571 = vrcp.f32 %v2273_v46  ;;  %v9117_v1 = vmul.f32 %v2211_v6, %v2211_v6  ;;  %v2212_v22 = vadd.f32 1.0, %v7554_v62  ;;  %v2274_v38 = vadd.f32 1.0, %v9114_v45 }
 0x26c   : > { %v7556_v10 = vpop.eup %7555  ;;  %v2173_v50 = vmin.f32 %v9122_v11, 20.0  ;;  %v2201_v21 = vmul.f32 1.442695, %v2172_v32  ;;  %v9135_v55 = vadd.f32 %v2156_v52, %v2084_v26  ;;  %v6259_v57 = vadd.f32 -1.0, %v9103_v24 }
 0x26d   : > { %v2275_v7 = vadd.f32 1.0, %v9117_v1  ;;  %v9125_v16 = vmul.f32 %v2212_v22, %v2212_v22  ;;  %v2213_v40 = vadd.f32 1.0, %v7556_v10  ;;  %7573 = vrcp.f32 %v2274_v38 }
 0x26e   : > { %v7558_v18 = vpop.eup %7557  ;;  %v2203_v39 = vmul.f32 1.442695, %v2173_v50  ;;  %v2174_v54 = vmin.f32 %v9135_v55, 20.0  ;;  %v6260_v5 = vadd.f32 -1.0, %v9108_v59  ;;  %v6261_v10 = vadd.f32 -1.0, %v9114_v45 }
 0x26f   : > { %7575 = vrcp.f32 %v2275_v7  ;;  %v2276_v49 = vadd.f32 1.0, %v9125_v16  ;;  %v9130_v53 = vmul.f32 %v2213_v40, %v2213_v40  ;;  %v2214_v13 = vadd.f32 1.0, %v7558_v18 }
 0x270   : > { %v7560_v60 = vpop.eup %7559  ;;  %7577 = vpow2.f32 %v2199_v15  ;;  %v2205_v46 = vmul.f32 1.442695, %v2174_v54  ;;  %v6262_v45 = vadd.f32 -1.0, %v9117_v1  ;;  %vm2250_vm11 = vcmp.gt.f32.partialorder %v9100_v42, 20.0 }
 0x271   : > { %7579 = vrcp.f32 %v2276_v49  ;;  %v2277_v25 = vadd.f32 1.0, %v9130_v53  ;;  %v2215_v31 = vadd.f32 1.0, %v7560_v60  ;;  %v9133_v9 = vmul.f32 %v2214_v13, %v2214_v13 }
 0x272   : > { %7581 = vpow2.f32 %v2201_v21  ;;  %v7562_v41 = vpop.eup %7561  ;;  %v6263_v60 = vadd.f32 -1.0, %v9125_v16  ;;  %vm2251_vm12 = vcmp.gt.f32.partialorder %v9110_v29, 20.0  ;;  %vm2253_vm13 = vcmp.gt.f32.partialorder %v9122_v11, 20.0 }
 0x273   : > { %7583 = vrcp.f32 %v2277_v25  ;;  %v9137_v27 = vmul.f32 %v2215_v31, %v2215_v31  ;;  %v2278_v34 = vadd.f32 1.0, %v9133_v9  ;;  %v2216_v56 = vadd.f32 1.0, %v7562_v41 }
 0x274   : > { %v7564_v0 = vpop.eup %7563  ;;  %7585 = vpow2.f32 %v2203_v39  ;;  %v6264_v31 = vadd.f32 -1.0, %v9130_v53  ;;  %vm2252_vm14 = vcmp.gt.f32.partialorder %v9119_v36, 20.0  ;;  %vm2254_vm15 = vcmp.gt.f32.partialorder %v9135_v55, 20.0 }
 0x275   : > { %v7566_v51 = vpop.eup %7565  ;;  %v2279_v20 = vadd.f32 1.0, %v9137_v27  ;;  %7587 = vrcp.f32 %v2278_v34  ;;  %v9143_v44 = vmul.f32 %v2216_v56, %v2216_v56  ;;  %v2303_v48 = vmul.f32 %v7564_v0, %v6258_v63 }
 0x276   : > { %v7568_v30 = vpop.eup %7567  ;;  %v2217_v23 = vadd.f32 1.0, %v7566_v51 }
 0x277   : > { %v7570_v28 = vpop.eup %7569  ;;  %v2304_v3 = vmul.f32 %v7568_v30, %v6259_v57  ;;  %7589 = vrcp.f32 %v2279_v20  ;;  %v2280_v62 = vadd.f32 1.0, %v9143_v44  ;;  %v2319_v50 = vsel %vm2239_vm2, 1.0, %v2303_v48 }
 0x278   : > { %v7572_v6 = vpop.eup %7571  ;;  %v9148_v4 = vmul.f32 %v2217_v23, %v2217_v23  ;;  %v2218_v24 = vadd.f32 1.0, %v7570_v28  ;;  %7591 = vpow2.f32 %v2205_v46  ;;  %v2335_v1 = vmul.f32 %v2319_v50, %v9029_v61 }
 0x279   : > { %v2305_v22 = vmul.f32 %v7572_v6, %v6260_v5  ;;  %7593 = vrcp.f32 %v2280_v62  ;;  %v2320_v7 = vsel %vm2240_vm1, 1.0, %v2304_v3  ;;  %v10250_v6 = vld [vmem:[#allocation44_spill] sm:$0xff] }
 0x27a   : > { %v2281_v37 = vadd.f32 1.0, %v9148_v4  ;;  %v7574_v59 = vpop.eup %7573  ;;  %v9154_v38 = vmul.f32 %v2218_v24, %v2218_v24  ;;  %v2336_v39 = vmul.f32 %v2320_v7, %v9033_v58  ;;  %v6265_v58 = vadd.f32 -1.0, %v9133_v9  ;;  %v10251_v24 = vld [vmem:[#allocation45_spill] sm:$0xff] }
 0x27b   : > { %v2321_v47 = vsel %vm2241_vm0, 1.0, %v2305_v22  ;;  %v2306_v40 = vmul.f32 %v7574_v59, %v6261_v10  ;;  %v6266_v22 = vadd.f32 -1.0, %v9137_v27  ;;  %v10252_v27 = vld [vmem:[#allocation46_spill] sm:$0xff] }
 0x27c   : > { %v7576_v15 = vpop.eup %7575  ;;  %7595 = vrcp.f32 %v2281_v37  ;;  %v2282_v18 = vadd.f32 1.0, %v9154_v38  ;;  %v2337_v49 = vmul.f32 %v2321_v47, %v9041_v2  ;;  %v6267_v47 = vadd.f32 -1.0, %v9143_v44 }
 0x27d   : > { %v7578_v32 = vpop.eup %7577  ;;  %v2322_v52 = vsel %vm2242_vm3, 1.0, %v2306_v40  ;;  %v2307_v51 = vmul.f32 %v7576_v15, %v6262_v45  ;;  %v6268_v15 = vadd.f32 -1.0, %v9148_v4  ;;  %v6269_v44 = vadd.f32 -1.0, %v9154_v38  ;;  %v10255_v38 = vld [vmem:[#allocation49_spill] sm:$0xff] }
 0x27e   : > { %v7580_v26 = vpop.eup %7579  ;;  %v2219_v13 = vadd.f32 1.0, %v7578_v32  ;;  %v2338_v25 = vmul.f32 %v2322_v52, %v9050_v12  ;;  %7597 = vrcp.f32 %v2282_v18  ;;  %v2351_v54 = vpack.c.bf16 %v2337_v49, %v2335_v1 }
 0x27f   : > { %v7582_v21 = vpop.eup %7581  ;;  %v2308_v0 = vmul.f32 %v7580_v26, %v6263_v60  ;;  %v2323_v9 = vsel %vm2243_vm6, 1.0, %v2307_v51 }
 0x280   : > { %v7584_v41 = vpop.eup %7583  ;;  %v9166_v34 = vmul.f32 %v2219_v13, %v2219_v13  ;;  %v2220_v56 = vadd.f32 1.0, %v7582_v21  ;;  %v2352_v20 = vpack.c.bf16 %v2338_v25, %v2336_v39  ;;  %v2339_v7 = vmul.f32 %v2323_v9, %v9052_v33  ;;  %v10254_v21 = vld [vmem:[#allocation48_spill] sm:$0xff] }
 0x281   : > { %v7586_v2 = vpop.eup %7585  ;;  %v2309_v16 = vmul.f32 %v7584_v41, %v6264_v31  ;;  %v2324_v23 = vsel %vm2244_vm5, 1.0, %v2308_v0 }
 0x282   : > { %v2283_v12 = vadd.f32 1.0, %v9166_v34  ;;  %v9171_v53 = vmul.f32 %v2220_v56, %v2220_v56  ;;  %v7588_v30 = vpop.eup %7587  ;;  %v2221_v57 = vadd.f32 1.0, %v7586_v2  ;;  %2526 = vmatprep.mubr.bf16.mxu1 %v2352_v20  ;;  %2826 = vmatprep.mubr.bf16.mxu0 %v2352_v20  ;;  %v2340_v37 = vmul.f32 %v2324_v23, %v9059_v17  ;;  %v10256_v2 = vld [vmem:[#allocation50_spill] sm:$0xff]  ;;  %v10257_v20 = vld [vmem:[#allocation51_spill] sm:$0xff] }
 0x283   : > { %v2325_v61 = vsel %vm2245_vm4, 1.0, %v2309_v16  ;;  %v2310_v28 = vmul.f32 %v7588_v30, %v6265_v58  ;;  %2527 = vmatmul.mubr.bf16.vlgmr.msra.gmra.mxu1 %v2351_v54  ;;  %2827 = vmatmul.mubr.bf16.vlgmr.msra.gmra.mxu0 %v2351_v54  ;;  %v6270_v51 = vadd.f32 -1.0, %v9166_v34  ;;  %v10258_v30 = vld [vmem:[#allocation52_spill] sm:$0xff] }
 0x284   : > { %7599 = vrcp.f32 %v2283_v12  ;;  %v7590_v63 = vpop.eup %7589  ;;  %v2284_v5 = vadd.f32 1.0, %v9171_v53  ;;  %v2237_v46 = vmul.f32 %v2221_v57, %v2221_v57  ;;  %7036 = vmatpush3.bf16.msra.mxu1 %v10250_v6  ;;  %v2341_v62 = vmul.f32 %v2325_v61, %v9065_v8 }
 0x285   : > { %v7592_v3 = vpop.eup %7591  ;;  %v2326_v48 = vsel %vm2246_vm7, 1.0, %v2310_v28  ;;  %7029 = vmatprep.subr.bf16.mxu1 %v10251_v24  ;;  %v2311_v50 = vmul.f32 %v7590_v63, %v6266_v22  ;;  %v10260_v63 = vld [vmem:[#allocation54_spill] sm:$0xff]  ;;  %v10262_v22 = vld [vmem:[#allocation56_spill] sm:$0xff] }
 0x286   : > { %v7594_v10 = vpop.eup %7593  ;;  %v2342_v59 = vmul.f32 %v2326_v48, %v9075_v43  ;;  %7601 = vrcp.f32 %v2284_v5  ;;  %v2285_v40 = vadd.f32 1.0, %v2237_v46  ;;  %v2222_v32 = vadd.f32 1.0, %v7592_v3  ;;  %v10253_v43 = vld [vmem:[#allocation47_spill] sm:$0xff] }
 0x287   : > { %v2312_v45 = vmul.f32 %v7594_v10, %v6267_v47  ;;  %v2353_v49 = vpack.c.bf16 %v2341_v62, %v2339_v7  ;;  %v2327_v39 = vsel %vm2247_vm10, 1.0, %v2311_v50 }
 0x288   : > { %7037 = vmatpush3.bf16.msra.mxu1 %v10252_v27  ;;  %v2354_v18 = vpack.c.bf16 %v2342_v59, %v2340_v37  ;;  %7603 = vrcp.f32 %v2285_v40  ;;  %v2238_v17 = vmul.f32 %v2222_v32, %v2222_v32  ;;  %v2343_v56 = vmul.f32 %v2327_v39, %v9077_v14  ;;  %v10259_v14 = vld [vmem:[#allocation53_spill] sm:$0xff]  ;;  %v10264_v59 = vld [vmem:[#allocation58_spill] sm:$0xff] }
 0x289   : > { %v7596_v8 = vpop.eup %7595  ;;  %7030 = vmatprep.subr.bf16.mxu1 %v10253_v43  ;;  %v2328_v60 = vsel %vm2248_vm9, 1.0, %v2312_v45  ;;  %v10263_v37 = vld [vmem:[#allocation57_spill] sm:$0xff] }
 0x28a   : > { %v2313_v26 = vmul.f32 %v7596_v8, %v6268_v15  ;;  %2534 = vmatprep.mubr.bf16.mxu1 %v2354_v18  ;;  %2834 = vmatprep.mubr.bf16.mxu0 %v2354_v18  ;;  %v2286_v52 = vadd.f32 1.0, %v2238_v17  ;;  %v2344_v41 = vmul.f32 %v2328_v60, %v9085_v35  ;;  %v6272_v35 = vadd.f32 -1.0, %v2237_v46  ;;  %v10261_v46 = vld [vmem:[#allocation55_spill] sm:$0xff]  ;;  %v9218_v15 = vld [vmem:[#allocation11] ss:$0 sm:$0xff] }
 0x28b   : > { %v7598_v33 = vpop.eup %7597  ;;  %2535 = vmatmul.mubr.bf16.gmra.mxu1 %v2353_v49  ;;  %2835 = vmatmul.mubr.bf16.gmra.mxu0 %v2353_v49  ;;  %v6273_v28 = vadd.f32 -1.0, %v2238_v17  ;;  %v9220_v40 = vld [vmem:[#allocation14] ss:$0 sm:$0xff] }
 0x28c   : > { %v2329_v4 = vsel %vm2249_vm8, 1.0, %v2313_v26  ;;  %v2314_v13 = vmul.f32 %v7598_v33, %v6269_v44  ;;  %7038 = vmatpush3.bf16.msra.mxu1 %v10254_v21  ;;  %7605 = vrcp.f32 %v2286_v52 }
 0x28d   : > { %7031 = vmatprep.subr.bf16.mxu1 %v10255_v38  ;;  %v2345_v25 = vmul.f32 %v2329_v4, %v9093_v19  ;;  %v6271_v19 = vadd.f32 -1.0, %v9171_v53 }
 0x28e   : > { %v2330_v31 = vsel %vm2250_vm11, 1.0, %v2314_v13 }
 0x28f   : > { %v2346_v1 = vmul.f32 %v2330_v31, %v9100_v42  ;;  %v2355_v54 = vpack.c.bf16 %v2345_v25, %v2343_v56 }
 0x290   : > { %7039 = vmatpush3.bf16.msra.mxu1 %v10256_v2 }
 0x291   : > { %v7600_v0 = vpop.eup %7599  ;;  %v2356_v16 = vpack.c.bf16 %v2346_v1, %v2344_v41  ;;  %7032 = vmatprep.subr.bf16.mxu1 %v10257_v20 }
 0x292   : > { %v2315_v58 = vmul.f32 %v7600_v0, %v6270_v51 }
 0x293   : > { %2542 = vmatprep.mubr.bf16.mxu1 %v2356_v16  ;;  %v7602_v12 = vpop.eup %7601 }
 0x294   : > { %2543 = vmatmul.mubr.bf16.gmra.mxu1 %v2355_v54  ;;  %v2331_v61 = vsel %vm2251_vm12, 1.0, %v2315_v58  ;;  %v2316_v34 = vmul.f32 %v7602_v12, %v6271_v19 }
 0x295   : > { %7040 = vmatpush3.bf16.msra.mxu1 %v10258_v30  ;;  %v7604_v42 = vpop.eup %7603  ;;  %v2347_v53 = vmul.f32 %v2331_v61, %v9110_v29 }
 0x296   : > { %7033 = vmatprep.subr.bf16.mxu1 %v10259_v14  ;;  %v2317_v57 = vmul.f32 %v7604_v42, %v6272_v35  ;;  %v2332_v6 = vsel %vm2252_vm14, 1.0, %v2316_v34 }
 0x297   : > { %v2348_v24 = vmul.f32 %v2332_v6, %v9119_v36 }
 0x298   : > { %v2333_v23 = vsel %vm2253_vm13, 1.0, %v2317_v57 }
 0x299   : > { %7041 = vmatpush3.bf16.msra.mxu1 %v10260_v63  ;;  %v7606_v9 = vpop.eup %7605  ;;  %v2349_v5 = vmul.f32 %v2333_v23, %v9122_v11 }
 0x29a   : > { %7034 = vmatprep.subr.bf16.mxu1 %v10261_v46  ;;  %v2318_v3 = vmul.f32 %v7606_v9, %v6273_v28 }
 0x29b   : > { %v2357_v62 = vpack.c.bf16 %v2349_v5, %v2347_v53 }
 0x29c   : > { %v2334_v48 = vsel %vm2254_vm15, 1.0, %v2318_v3 }
 0x29d   : > { %7042 = vmatpush3.bf16.msra.mxu1 %v10262_v22  ;;  %v2350_v10 = vmul.f32 %v2334_v48, %v9135_v55 }
 0x29e   : > { %7035 = vmatprep.subr.bf16.mxu1 %v10263_v37 }
 0x29f   : > { %v2358_v29 = vpack.c.bf16 %v2350_v10, %v2348_v24 }
 0x2a1   : > { %7043 = vmatpush3.bf16.msra.mxu1 %v10264_v59  ;;  %2550 = vmatprep.mubr.bf16.mxu1 %v2358_v29 }
 0x2a2   : > { %2551 = vmatmul.mubr.bf16.gmra.mxu1 %v2357_v62 }
 0x2a3   : > { %2842 = vmatprep.mubr.bf16.mxu1 %v2356_v16 }
 0x2aa   : > { %2843 = vmatmul.mubr.bf16.vlgmr.msra.gmra.mxu1 %v2355_v54 }
 0x2ab   : > { %2850 = vmatprep.mubr.bf16.mxu1 %v2358_v29 }
 0x2b2   : > { %2851 = vmatmul.mubr.bf16.gmra.mxu1 %v2357_v62 }
 0x343   : > { %v6696_v11 = vpop.f32.mrf.mxu1  ;;  %v6736_v47 = vpop.f32.mrf.mxu0 }
 0x345   : > { %v6697_v7 = vpop.f32.mrf.mxu1  ;;  %v6737_v36 = vpop.f32.mrf.mxu0 }
 0x346   : > { %v6698_v55 = vadd.f32 %v6697_v7, %v6696_v11  ;;  %v6738_v32 = vadd.f32 %v6737_v36, %v6736_v47 }
 0x347   : > { %v6699_v8 = vpop.f32.mrf.mxu1  ;;  %v6739_v50 = vpop.f32.mrf.mxu0 }
 0x348   : > { %v9223_v45 = vadd.f32 %v6698_v55, %v9218_v15  ;;  %v9226_v27 = vadd.f32 %v6738_v32, %v9220_v40 }
 0x349   : > { %v6700_v18 = vpop.f32.mrf.mxu1  ;;  %v6740_v26 = vpop.f32.mrf.mxu0 }
 0x34a   : > { %v2559_v17 = vmin.f32 %v9223_v45, 20.0  ;;  %v2859_v49 = vmin.f32 %v9226_v27, 20.0  ;;  %v6701_v43 = vadd.f32 %v6700_v18, %v6699_v8  ;;  %v6741_v44 = vadd.f32 %v6740_v26, %v6739_v50 }
 0x34b   : > { %v6702_v33 = vpop.f32.mrf.mxu1  ;;  %v6742_v4 = vpop.f32.mrf.mxu0  ;;  %vm2599_vm0 = vcmp.gt.f32.partialorder %v9223_v45, 20.0  ;;  %vm2899_vm1 = vcmp.gt.f32.partialorder %v9226_v27, 20.0 }
 0x34c   : > { %v2567_v52 = vmul.f32 1.442695, %v2559_v17  ;;  %v2867_v60 = vmul.f32 1.442695, %v2859_v49  ;;  %v9231_v13 = vadd.f32 %v6701_v43, %v9218_v15  ;;  %v9234_v21 = vadd.f32 %v6741_v44, %v9220_v40 }
 0x34d   : > { %v6703_v39 = vpop.f32.mrf.mxu1  ;;  %v6743_v38 = vpop.f32.mrf.mxu0 }
 0x34e   : > { %7607 = vpow2.f32 %v2567_v52  ;;  %v6704_v25 = vadd.f32 %v6703_v39, %v6702_v33  ;;  %v6744_v31 = vadd.f32 %v6743_v38, %v6742_v4  ;;  %v2560_v41 = vmin.f32 %v9231_v13, 20.0 }
 0x34f   : > { %7609 = vpow2.f32 %v2867_v60  ;;  %v2860_v1 = vmin.f32 %v9234_v21, 20.0  ;;  %v6705_v0 = vpop.f32.mrf.mxu1  ;;  %v6745_v56 = vpop.f32.mrf.mxu0  ;;  %vm2600_vm2 = vcmp.gt.f32.partialorder %v9231_v13, 20.0  ;;  %vm2900_vm3 = vcmp.gt.f32.partialorder %v9234_v21, 20.0 }
 0x350   : > { %v9239_v2 = vadd.f32 %v6704_v25, %v9218_v15  ;;  %v9242_v51 = vadd.f32 %v6744_v31, %v9220_v40  ;;  %v2569_v16 = vmul.f32 1.442695, %v2560_v41 }
 0x351   : > { %v2869_v20 = vmul.f32 1.442695, %v2860_v1  ;;  %v6706_v54 = vpop.f32.mrf.mxu1  ;;  %v6746_v58 = vpop.f32.mrf.mxu0 }
 0x352   : > { %v2561_v12 = vmin.f32 %v9239_v2, 20.0  ;;  %v2861_v19 = vmin.f32 %v9242_v51, 20.0  ;;  %7611 = vpow2.f32 %v2569_v16  ;;  %v6707_v35 = vadd.f32 %v6706_v54, %v6705_v0 }
 0x353   : > { %v6747_v30 = vadd.f32 %v6746_v58, %v6745_v56  ;;  %7613 = vpow2.f32 %v2869_v20  ;;  %vm2901_vm4 = vcmp.gt.f32.partialorder %v9242_v51, 20.0  ;;  %vm2601_vm5 = vcmp.gt.f32.partialorder %v9239_v2, 20.0 }
 0x354   : > { %v2571_v42 = vmul.f32 1.442695, %v2561_v12  ;;  %v2871_v14 = vmul.f32 1.442695, %v2861_v19  ;;  %v6708_v61 = vpop.f32.mrf.mxu1  ;;  %v9247_v34 = vadd.f32 %v6707_v35, %v9218_v15 }
 0x355   : > { %v9250_v57 = vadd.f32 %v6747_v30, %v9220_v40 }
 0x356   : > { %7615 = vpow2.f32 %v2571_v42  ;;  %v6709_v23 = vpop.f32.mrf.mxu1  ;;  %v2562_v28 = vmin.f32 %v9247_v34, 20.0  ;;  %vm2602_vm6 = vcmp.gt.f32.partialorder %v9247_v34, 20.0 }
 0x357   : > { %7617 = vpow2.f32 %v2871_v14  ;;  %v2862_v63 = vmin.f32 %v9250_v57, 20.0  ;;  %v6710_v9 = vadd.f32 %v6709_v23, %v6708_v61  ;;  %vm2902_vm7 = vcmp.gt.f32.partialorder %v9250_v57, 20.0 }
 0x358   : > { %v6711_v53 = vpop.f32.mrf.mxu1  ;;  %v2573_v5 = vmul.f32 1.442695, %v2562_v28 }
 0x359   : > { %v2873_v46 = vmul.f32 1.442695, %v2862_v63  ;;  %v9255_v6 = vadd.f32 %v6710_v9, %v9218_v15 }
 0x35a   : > { %v6712_v3 = vpop.f32.mrf.mxu1  ;;  %7619 = vpow2.f32 %v2573_v5 }
 0x35b   : > { %v7608_v62 = vpop.eup %7607  ;;  %v6713_v48 = vadd.f32 %v6712_v3, %v6711_v53  ;;  %7621 = vpow2.f32 %v2873_v46  ;;  %v2563_v10 = vmin.f32 %v9255_v6, 20.0  ;;  %vm2603_vm8 = vcmp.gt.f32.partialorder %v9255_v6, 20.0 }
 0x35c   : > { %v7610_v22 = vpop.eup %7609  ;;  %v2583_v24 = vadd.f32 1.0, %v7608_v62 }
 0x35d   : > { %v2883_v37 = vadd.f32 1.0, %v7610_v22  ;;  %v9259_v29 = vadd.f32 %v6713_v48, %v9218_v15  ;;  %v2575_v11 = vmul.f32 1.442695, %v2563_v10 }
 0x35e   : > { %v2591_v59 = vmul.f32 %v2583_v24, %v2583_v24 }
 0x35f   : > { %v2891_v47 = vmul.f32 %v2883_v37, %v2883_v37  ;;  %v2564_v7 = vmin.f32 %v9259_v29, 20.0  ;;  %v7612_v36 = vpop.eup %7611  ;;  %7623 = vpow2.f32 %v2575_v11  ;;  %vm2604_vm9 = vcmp.gt.f32.partialorder %v9259_v29, 20.0 }
 0x360   : > { %v2615_v55 = vadd.f32 1.0, %v2591_v59  ;;  %v7614_v32 = vpop.eup %7613  ;;  %v2584_v50 = vadd.f32 1.0, %v7612_v36  ;;  %v6291_v5 = vadd.f32 -1.0, %v2591_v59 }
 0x361   : > { %v2915_v8 = vadd.f32 1.0, %v2891_v47  ;;  %v2577_v18 = vmul.f32 1.442695, %v2564_v7  ;;  %v2884_v26 = vadd.f32 1.0, %v7614_v32  ;;  %v6316_v48 = vadd.f32 -1.0, %v2891_v47 }
 0x362   : > { %7625 = vrcp.f32 %v2615_v55  ;;  %v2592_v49 = vmul.f32 %v2584_v50, %v2584_v50  ;;  %v6714_v43 = vpop.f32.mrf.mxu1 }
 0x363   : > { %v7616_v17 = vpop.eup %7615  ;;  %7627 = vrcp.f32 %v2915_v8  ;;  %v9262_v33 = vmul.f32 %v2884_v26, %v2884_v26 }
 0x364   : > { %v7618_v44 = vpop.eup %7617  ;;  %v2585_v4 = vadd.f32 1.0, %v7616_v17  ;;  %7629 = vpow2.f32 %v2577_v18  ;;  %v2616_v52 = vadd.f32 1.0, %v2592_v49  ;;  %v6715_v39 = vpop.f32.mrf.mxu1  ;;  %v6292_v18 = vadd.f32 -1.0, %v2592_v49 }
 0x365   : > { %v2885_v60 = vadd.f32 1.0, %v7618_v44  ;;  %v2916_v38 = vadd.f32 1.0, %v9262_v33  ;;  %v6716_v31 = vadd.f32 %v6715_v39, %v6714_v43 }
 0x366   : > { %v9265_v25 = vmul.f32 %v2585_v4, %v2585_v4  ;;  %7631 = vrcp.f32 %v2616_v52  ;;  %v6717_v1 = vpop.f32.mrf.mxu1  ;;  %v6317_v4 = vadd.f32 -1.0, %v9262_v33 }
 0x367   : > { %v9267_v41 = vmul.f32 %v2885_v60, %v2885_v60  ;;  %v7620_v0 = vpop.eup %7619  ;;  %7633 = vrcp.f32 %v2916_v38  ;;  %v9271_v16 = vadd.f32 %v6716_v31, %v9218_v15 }
 0x368   : > { %v2617_v56 = vadd.f32 1.0, %v9265_v25  ;;  %v7622_v20 = vpop.eup %7621  ;;  %v2586_v58 = vadd.f32 1.0, %v7620_v0  ;;  %v6718_v12 = vpop.f32.mrf.mxu1 }
 0x369   : > { %v2917_v54 = vadd.f32 1.0, %v9267_v41  ;;  %v2886_v19 = vadd.f32 1.0, %v7622_v20  ;;  %v2565_v35 = vmin.f32 %v9271_v16, 20.0  ;;  %v6719_v42 = vadd.f32 %v6718_v12, %v6717_v1 }
 0x36a   : > { %7635 = vrcp.f32 %v2617_v56  ;;  %v9275_v30 = vmul.f32 %v2586_v58, %v2586_v58  ;;  %v6748_v14 = vpop.f32.mrf.mxu1  ;;  %v6293_v56 = vadd.f32 -1.0, %v9265_v25  ;;  %v6318_v58 = vadd.f32 -1.0, %v9267_v41 }
 0x36b   : > { %7637 = vrcp.f32 %v2917_v54  ;;  %v9277_v61 = vmul.f32 %v2886_v19, %v2886_v19  ;;  %v2579_v23 = vmul.f32 1.442695, %v2565_v35  ;;  %v9281_v9 = vadd.f32 %v6719_v42, %v9218_v15 }
 0x36c   : > { %v7624_v28 = vpop.eup %7623  ;;  %v2618_v63 = vadd.f32 1.0, %v9275_v30  ;;  %v6749_v53 = vpop.f32.mrf.mxu1  ;;  %vm2605_vm10 = vcmp.gt.f32.partialorder %v9271_v16, 20.0 }
 0x36d   : > { %v2918_v46 = vadd.f32 1.0, %v9277_v61  ;;  %v2587_v3 = vadd.f32 1.0, %v7624_v28  ;;  %7639 = vpow2.f32 %v2579_v23  ;;  %v2566_v22 = vmin.f32 %v9281_v9, 20.0 }
 0x36e   : > { %7641 = vrcp.f32 %v2618_v63  ;;  %v6750_v24 = vadd.f32 %v6749_v53, %v6748_v14  ;;  %v6751_v10 = vpop.f32.mrf.mxu1  ;;  %vm2606_vm11 = vcmp.gt.f32.partialorder %v9281_v9, 20.0 }
 0x36f   : > { %v7626_v62 = vpop.eup %7625  ;;  %7643 = vrcp.f32 %v2918_v46  ;;  %v9287_v15 = vmul.f32 %v2587_v3, %v2587_v3  ;;  %v2581_v36 = vmul.f32 1.442695, %v2566_v22 }
 0x370   : > { %v7628_v37 = vpop.eup %7627  ;;  %v2631_v11 = vmul.f32 %v7626_v62, %v6291_v5  ;;  %v9290_v55 = vadd.f32 %v6750_v24, %v9220_v40  ;;  %v6752_v47 = vpop.f32.mrf.mxu1  ;;  %v6319_v24 = vadd.f32 -1.0, %v9277_v61 }
 0x371   : > { %v7630_v59 = vpop.eup %7629  ;;  %v2931_v7 = vmul.f32 %v7628_v37, %v6316_v48  ;;  %v2619_v32 = vadd.f32 1.0, %v9287_v15  ;;  %7645 = vpow2.f32 %v2581_v36  ;;  %v6753_v1 = vadd.f32 %v6752_v47, %v6751_v10 }
 0x372   : > { %v2588_v8 = vadd.f32 1.0, %v7630_v59  ;;  %v2863_v26 = vmin.f32 %v9290_v55, 20.0  ;;  %v6754_v17 = vpop.f32.mrf.mxu1  ;;  %v2639_v39 = vsel %vm2599_vm0, 1.0, %v2631_v11  ;;  %vm2903_vm12 = vcmp.gt.f32.partialorder %v9290_v55, 20.0 }
 0x373   : > { %v2939_v50 = vsel %vm2899_vm1, 1.0, %v2931_v7  ;;  %v7632_v43 = vpop.eup %7631  ;;  %7647 = vrcp.f32 %v2619_v32  ;;  %v9308_v12 = vadd.f32 %v6753_v1, %v9220_v40  ;;  %v9311_v42 = vmul.f32 %v2639_v39, %v9223_v45 }
 0x374   : > { %v2947_v44 = vmul.f32 %v2939_v50, %v9226_v27  ;;  %v9298_v52 = vmul.f32 %v2588_v8, %v2588_v8  ;;  %v7634_v60 = vpop.eup %7633  ;;  %v2632_v38 = vmul.f32 %v7632_v43, %v6292_v18  ;;  %v2875_v31 = vmul.f32 1.442695, %v2863_v26  ;;  %v6755_v49 = vpop.f32.mrf.mxu1 }
 0x375   : > { %v2932_v0 = vmul.f32 %v7634_v60, %v6317_v4  ;;  %v6756_v27 = vadd.f32 %v6755_v49, %v6754_v17  ;;  %10265 = vst [vmem:[#allocation60_spill] sm:$0xff] %v9311_v42  ;;  %v2864_v63 = vmin.f32 %v9308_v12, 20.0  ;;  %vm2904_vm13 = vcmp.gt.f32.partialorder %v9308_v12, 20.0 }
 0x376   : > { %2955 = vst [vmem:[#allocation2 + $0x30] sm:$0xff] %v2947_v44  ;;  %v2620_v20 = vadd.f32 1.0, %v9298_v52  ;;  %v2640_v33 = vsel %vm2600_vm2, 1.0, %v2632_v38  ;;  %7649 = vpow2.f32 %v2875_v31  ;;  %v6757_v19 = vpop.f32.mrf.mxu1 }
 0x377   : > { %v7636_v54 = vpop.eup %7635  ;;  %v9314_v25 = vmul.f32 %v2640_v33, %v9231_v13  ;;  %v2940_v14 = vsel %vm2900_vm3, 1.0, %v2932_v0  ;;  %v9324_v45 = vadd.f32 %v6756_v27, %v9220_v40  ;;  %v2877_v62 = vmul.f32 1.442695, %v2864_v63 }
 0x378   : > { %v7638_v35 = vpop.eup %7637  ;;  %7651 = vrcp.f32 %v2620_v20  ;;  %v2948_v23 = vmul.f32 %v2940_v14, %v9234_v21  ;;  %v2633_v28 = vmul.f32 %v7636_v54, %v6293_v56  ;;  %v6758_v53 = vpop.f32.mrf.mxu1  ;;  %v6294_v21 = vadd.f32 -1.0, %v9275_v30 }
 0x379   : > { %10266 = vst [vmem:[#allocation61_spill] sm:$0xff] %v9314_v25  ;;  %v2933_v41 = vmul.f32 %v7638_v35, %v6318_v58  ;;  %v6759_v13 = vadd.f32 %v6758_v53, %v6757_v19  ;;  %v2865_v37 = vmin.f32 %v9324_v45, 20.0  ;;  %7653 = vpow2.f32 %v2877_v62 }
 0x37a   : > { %v7640_v46 = vpop.eup %7639  ;;  %2956 = vst [vmem:[#allocation2] sm:$0xff] %v2948_v23  ;;  %v2641_v11 = vsel %vm2601_vm5, 1.0, %v2633_v28  ;;  %vm2905_vm14 = vcmp.gt.f32.partialorder %v9324_v45, 20.0 }
 0x37b   : > { %v2941_v3 = vsel %vm2901_vm4, 1.0, %v2933_v41  ;;  %v7642_v48 = vpop.eup %7641  ;;  %v2589_v10 = vadd.f32 1.0, %v7640_v46  ;;  %v9332_v36 = vadd.f32 %v6759_v13, %v9220_v40  ;;  %v2879_v32 = vmul.f32 1.442695, %v2865_v37 }
 0x37c   : > { %v2949_v22 = vmul.f32 %v2941_v3, %v9242_v51  ;;  %v7644_v59 = vpop.eup %7643  ;;  %v2634_v7 = vmul.f32 %v7642_v48, %v6294_v21  ;;  %v6295_v51 = vadd.f32 -1.0, %v9287_v15  ;;  %v9339_v18 = vmul.f32 %v2641_v11, %v9239_v2 }
 0x37d   : > { %v2934_v30 = vmul.f32 %v7644_v59, %v6319_v24  ;;  %v2597_v47 = vmul.f32 %v2589_v10, %v2589_v10  ;;  %v2866_v61 = vmin.f32 %v9332_v36, 20.0  ;;  %7655 = vpow2.f32 %v2879_v32 }
 0x37e   : > { %2957 = vst [vmem:[#allocation2 + $0x18] sm:$0xff] %v2949_v22  ;;  %v2642_v8 = vsel %vm2602_vm6, 1.0, %v2634_v7  ;;  %v7646_v50 = vpop.eup %7645  ;;  %10267 = vst [vmem:[#allocation44_spill] sm:$0xff] %v9339_v18  ;;  %vm2906_vm15 = vcmp.gt.f32.partialorder %v9332_v36, 20.0 }
 0x37f   : > { %v9342_v40 = vmul.f32 %v2642_v8, %v9247_v34  ;;  %v2942_v26 = vsel %vm2902_vm7, 1.0, %v2934_v30  ;;  %v2621_v17 = vadd.f32 1.0, %v2597_v47  ;;  %v2590_v4 = vadd.f32 1.0, %v7646_v50 }
 0x380   : > { %v7648_v43 = vpop.eup %7647  ;;  %v2950_v44 = vmul.f32 %v2942_v26, %v9250_v57  ;;  %v2881_v60 = vmul.f32 1.442695, %v2866_v61  ;;  %v6296_v34 = vadd.f32 -1.0, %v9298_v52  ;;  %v6297_v28 = vadd.f32 -1.0, %v2597_v47 }
 0x381   : > { %10268 = vst [vmem:[#allocation45_spill] sm:$0xff] %v9342_v40  ;;  %v2635_v39 = vmul.f32 %v7648_v43, %v6295_v51  ;;  %7657 = vrcp.f32 %v2621_v17  ;;  %v2598_v38 = vmul.f32 %v2590_v4, %v2590_v4 }
 0x382   : > { %2958 = vst [vmem:[#allocation2 + $0x10] sm:$0xff] %v2950_v44  ;;  %7659 = vpow2.f32 %v2881_v60 }
 0x383   : > { %v7650_v2 = vpop.eup %7649  ;;  %v2622_v1 = vadd.f32 1.0, %v2598_v38  ;;  %v2643_v57 = vsel %vm2603_vm8, 1.0, %v2635_v39 }
 0x384   : > { %v2887_v49 = vadd.f32 1.0, %v7650_v2  ;;  %v9351_v27 = vmul.f32 %v2643_v57, %v9255_v6 }
 0x385   : > { %v7652_v31 = vpop.eup %7651  ;;  %7661 = vrcp.f32 %v2622_v1 }
 0x386   : > { %v2636_v0 = vmul.f32 %v7652_v31, %v6296_v34  ;;  %v2895_v56 = vmul.f32 %v2887_v49, %v2887_v49  ;;  %10269 = vst [vmem:[#allocation46_spill] sm:$0xff] %v9351_v27  ;;  %v7654_v52 = vpop.eup %7653 }
 0x387   : > { %v2888_v19 = vadd.f32 1.0, %v7654_v52 }
 0x388   : > { %v2644_v20 = vsel %vm2604_vm9, 1.0, %v2636_v0  ;;  %v2919_v33 = vadd.f32 1.0, %v2895_v56  ;;  %v6320_v37 = vadd.f32 -1.0, %v2895_v56 }
 0x389   : > { %v9354_v54 = vmul.f32 %v2644_v20, %v9259_v29  ;;  %v2896_v35 = vmul.f32 %v2888_v19, %v2888_v19  ;;  %v6298_v29 = vadd.f32 -1.0, %v2598_v38 }
 0x38a   : > { %7663 = vrcp.f32 %v2919_v33  ;;  %v7656_v14 = vpop.eup %7655 }
 0x38b   : > { %10270 = vst [vmem:[#allocation47_spill] sm:$0xff] %v9354_v54  ;;  %v2920_v41 = vadd.f32 1.0, %v2896_v35  ;;  %v2889_v63 = vadd.f32 1.0, %v7656_v14  ;;  %v6321_v51 = vadd.f32 -1.0, %v2896_v35 }
 0x38d   : > { %7665 = vrcp.f32 %v2920_v41  ;;  %v2897_v6 = vmul.f32 %v2889_v63, %v2889_v63 }
 0x38e   : > { %v7658_v23 = vpop.eup %7657 }
 0x38f   : > { %v7660_v53 = vpop.eup %7659  ;;  %v2637_v13 = vmul.f32 %v7658_v23, %v6297_v28  ;;  %v2921_v3 = vadd.f32 1.0, %v2897_v6  ;;  %v6322_v26 = vadd.f32 -1.0, %v2897_v6 }
 0x390   : > { %v2890_v46 = vadd.f32 1.0, %v7660_v53 }
 0x391   : > { %v2645_v48 = vsel %vm2605_vm10, 1.0, %v2637_v13  ;;  %7667 = vrcp.f32 %v2921_v3 }
 0x392   : > { %v2898_v21 = vmul.f32 %v2890_v46, %v2890_v46  ;;  %v7662_v62 = vpop.eup %7661  ;;  %v9361_v11 = vmul.f32 %v2645_v48, %v9271_v16 }
 0x393   : > { %v2638_v22 = vmul.f32 %v7662_v62, %v6298_v29 }
 0x394   : > { %v2922_v24 = vadd.f32 1.0, %v2898_v21  ;;  %10271 = vst [vmem:[#allocation48_spill] sm:$0xff] %v9361_v11  ;;  %v6323_v44 = vadd.f32 -1.0, %v2898_v21 }
 0x395   : > { %v2646_v10 = vsel %vm2606_vm11, 1.0, %v2638_v22 }
 0x396   : > { %7669 = vrcp.f32 %v2922_v24  ;;  %v9364_v7 = vmul.f32 %v2646_v10, %v9281_v9 }
 0x397   : > { %v7664_v59 = vpop.eup %7663 }
 0x398   : > { %10272 = vst [vmem:[#allocation49_spill] sm:$0xff] %v9364_v7  ;;  %v2935_v30 = vmul.f32 %v7664_v59, %v6320_v37 }
 0x39a   : > { %v2943_v32 = vsel %vm2903_vm12, 1.0, %v2935_v30  ;;  %v7666_v61 = vpop.eup %7665 }
 0x39b   : > { %v2951_v8 = vmul.f32 %v2943_v32, %v9290_v55  ;;  %v2936_v50 = vmul.f32 %v7666_v61, %v6321_v51 }
 0x39d   : > { %2959 = vst [vmem:[#allocation2 + $0x8] sm:$0xff] %v2951_v8  ;;  %v2944_v16 = vsel %vm2904_vm13, 1.0, %v2936_v50 }
 0x39e   : > { %v7668_v9 = vpop.eup %7667  ;;  %v2952_v17 = vmul.f32 %v2944_v16, %v9308_v12 }
 0x39f   : > { %v2937_v43 = vmul.f32 %v7668_v9, %v6322_v26 }
 0x3a0   : > { %2960 = vst [vmem:[#allocation2 + $0x20] sm:$0xff] %v2952_v17 }
 0x3a1   : > { %v2945_v60 = vsel %vm2905_vm14, 1.0, %v2937_v43 }
 0x3a2   : > { %v2953_v39 = vmul.f32 %v2945_v60, %v9324_v45 }
 0x3a3   : > { %v7670_v4 = vpop.eup %7669 }
 0x3a4   : > { %v2938_v55 = vmul.f32 %v7670_v4, %v6323_v44  ;;  %2961 = vst [vmem:[#allocation2 + $0x28] sm:$0xff] %v2953_v39 }
 0x3a6   : > { %v2946_v38 = vsel %vm2906_vm15, 1.0, %v2938_v55 }
 0x3a7   : > { %v2954_v2 = vmul.f32 %v2946_v38, %v9332_v36 }
 0x3a9   : > { %2962 = vst [vmem:[#allocation2 + $0x38] sm:$0xff] %v2954_v2 }
 0x3aa LB: >> { %v2981_v12 = vld [vmem:[#allocation2 + $0x30] sm:$0xff]  ;;  %v2982_v45 = vld [vmem:[#allocation2] sm:$0xff]  ;;  %s6604_s25 = sshll.u32 %s8485_s21, 6  ;;  %s6677_s27 = smul.u32 576, %s8485_s21  ;;  %v2983_v33 = vld [vmem:[#allocation2 + $0x18] sm:$0xff]  ;;  %s8485_s21 = sphi %s9379_s21, %s2980_s21  }
 0x3ab   : >> { %v2989_v34 = vpack.c.bf16 %v2982_v45, %v2981_v12  ;;  %s2995_s16 = scalar_lea.vmem [#allocation16], %s6604_s25  ;;  %v2984_v52 = vld [vmem:[#allocation2 + $0x10] sm:$0xff]  ;;  %v2985_v19 = vld [vmem:[#allocation2 + $0x8] sm:$0xff]  ;;  %v2986_v35 = vld [vmem:[#allocation2 + $0x20] sm:$0xff]  ;;  %s3012_s4 = scalar_lea.vmem [#allocation17], %s8485_s21 }
 0x3ac   : >> { %v7671_v31 = vld [vmem:[%s2995_s16 + $0x38] sm:$0xff]   ;;  %v7672_v36 = vld [vmem:[%s2995_s16 + $0x30] sm:$0xff]   ;;  %v7673_v1 = vld [vmem:[%s2995_s16 + $0x28] sm:$0xff]   ;;  %s9386_s20 = scalar_lea.vmem [#allocation19], %s6677_s27  ;;  %v2990_v14 = vpack.c.bf16 %v2984_v52, %v2983_v33  ;;  %v2991_v23 = vpack.c.bf16 %v2986_v35, %v2985_v19  ;;  %s4025_s30 = scalar_lea.vmem [#allocation20], %s8485_s21 }
 0x3ad   : >> { %6972 = vmatprep.mubr.bf16.mxu0 %v2989_v34  ;;  %6956 = vmatprep.subr.bf16.mxu0 %v7671_v31  ;;  %v7674_v49 = vld [vmem:[%s2995_s16 + $0x20] sm:$0xff]   ;;  %v7675_v57 = vld [vmem:[%s2995_s16 + $0x18] sm:$0xff]   ;;  %v7676_v0 = vld [vmem:[%s2995_s16 + $0x10] sm:$0xff]   ;;  %s2980_s21 = sadd.s32 1, %s8485_s21  }
 0x3ae   : >> { %6957 = vmatpush3.bf16.msra.mxu0 %v7671_v31  ;;  %v7677_v56 = vld [vmem:[%s2995_s16 + $0x8] sm:$0xff]   ;;  %v7678_v20 = vld [vmem:[%s2995_s16] sm:$0xff]   ;;  %v7679_v53 = vld [vmem:[%s9386_s20 + $0x78] sm:$0xff]   ;;  %p2977_p5 = scmp.ge.s32.totalorder %s2980_s21, 8  }
 0x3af   : >> { %6958 = vmatprep.subr.bf16.mxu0 %v7672_v36  ;;  %v2987_v28 = vld [vmem:[#allocation2 + $0x28] sm:$0xff]  ;;  %v7680_v13 = vld [vmem:[%s9386_s20 + $0x38] sm:$0xff]   ;;  %6772 = vmatprep.subr.bf16.mxu1 %v7679_v53  ;;  %v7681_v6 = vld [vmem:[%s9386_s20 + $0x70] sm:$0xff]   ;;  %s6679_s26 = sshll.u32 (%p2977_p5), %s8613_s22, 11  ;;  %s5834_s23 = sshll.u32 (%p2977_p5), %s9377_s18, 4  ;;  %s10097_s23 = int_to_ptr.vmem [resolvable:$true] %s5834_s23 }
 0x3b0   : >> { %v2988_v41 = vld [vmem:[#allocation2 + $0x38] sm:$0xff]  ;;  %6773 = vmatpush3.bf16.msra.mxu1 %v7680_v13  ;;  %v7682_v29 = vld [vmem:[%s9386_s20 + $0x30] sm:$0xff]   ;;  %v7685_v21 = vld [vmem:[%s9386_s20 + $0x68] sm:$0xff]   ;;  %s10095_s2 = scalar_lea.hbm (%p2977_p5), %s10158_s15, %s6679_s26  ;;  %s10103_s22 = scalar_lea.sflag (%p2977_p5), [#allocation7], %s682_s24 }
 0x3b1   : >> { %v2992_v63 = vpack.c.bf16 %v2988_v41, %v2987_v28  ;;  %v7683_v46 = vld [vmem:[%s9386_s20 + $0xf8] sm:$0xff]   ;;  %6774 = vmatprep.subr.bf16.mxu1 %v7681_v6  ;;  %v7687_v62 = vld [vmem:[%s9386_s20 + $0xf0] sm:$0xff]   ;;  %v7686_v48 = vld [vmem:[%s9386_s20 + $0x28] sm:$0xff]   ;;  %s8385_s21 = scalar_lea.vmem (%p2977_p5), %s10097_s23, 2048  ;;  %p10331_p12 = scmp.ne.s32.totalorder (%p2977_p5), %s10204_s28, 0 }
 0x3b2   : >> { %6959 = vmatpush3.bf16.msra.mxu0 %v7672_v36  ;;  %v7684_v3 = vld [vmem:[%s9386_s20 + $0xb8] sm:$0xff]   ;;  %v7688_v22 = vld [vmem:[%s9386_s20 + $0xb0] sm:$0xff]   ;;  %v7689_v24 = vld [vmem:[%s9386_s20 + $0x60] sm:$0xff]   ;;  %p8386_p6 = scmp.ne.s32.totalorder (%p2977_p5), %s10097_s23, %s8385_s21  ;;  %s8509_s25 = smov (%p2977_p5), [#allocation28]  }
 0x3b3   : >> { %6960 = vmatprep.subr.bf16.mxu0 %v7673_v1  ;;  %v7691_v10 = vld [vmem:[%s9386_s20 + $0xe8] sm:$0xff]   ;;  %v7690_v37 = vld [vmem:[%s9386_s20 + $0x20] sm:$0xff]   ;;  %v7693_v30 = vld [vmem:[%s9386_s20 + $0x58] sm:$0xff]   ;;  %s8389_s16 = sshll.u32 (%p2977_p5), %s8509_s25, 4  ;;  %s8390_s16 = int_to_ptr.vmem [resolvable:$false] %s8389_s16 }
 0x3b4   : >> { %6775 = vmatpush3.bf16.msra.mxu1 %v7682_v29  ;;  %v7692_v59 = vld [vmem:[%s9386_s20 + $0xa8] sm:$0xff]   ;;  %v7695_v32 = vld [vmem:[%s9386_s20 + $0xe0] sm:$0xff]   ;;  %v7694_v8 = vld [vmem:[%s9386_s20 + $0x18] sm:$0xff]   ;;  %p8387_p10 = pnand (%p2977_p5), %p8386_p6, %p10331_p12  ;;  %s8391_s27 = scalar_lea.vmem (%p2977_p5), %s8390_s16, 4096 }
 0x3b5   : >> { %6776 = vmatprep.subr.bf16.mxu1 %v7685_v21  ;;  %v7696_v51 = vld [vmem:[%s9386_s20 + $0xa0] sm:$0xff]   ;;  %v10273_v61 = vld [vmem:[#allocation59_spill] sm:$0xff]  ;;  %v3406_v60 = vld [vmem:[#allocation3 + $0x8] sm:$0xff]  ;;  %p8392_p7 = scmp.lt.s32.totalorder (%p2977_p5), %s10097_s23, %s8390_s16  ;;  %p8393_p8 = scmp.lt.s32.totalorder (%p2977_p5), %s8391_s27, %s8385_s21 }
 0x3b6   : >> { %6961 = vmatpush3.bf16.msra.mxu0 %v7673_v1  ;;  %v3250_v50 = vand.u32 7, %v10273_v61  ;;  %v7697_v16 = vld [vmem:[%s9386_s20 + $0x50] sm:$0xff]   ;;  %v7699_v26 = vld [vmem:[%s9386_s20 + $0xd8] sm:$0xff]   ;;  %v3342_v9 = vld [vmem:[#allocation3 + $0x7] sm:$0xff]  ;;  %v6613_v39 = vpack.c.bf16 %v3406_v60, %v3406_v60  ;;  %p8388_p4 = pneg (%p2977_p5), %p8387_p10 }
 0x3b7   : >> { %6962 = vmatprep.subr.bf16.mxu0 %v7674_v49  ;;  %v7698_v43 = vld [vmem:[%s9386_s20 + $0x10] sm:$0xff]   ;;  %v7700_v44 = vld [vmem:[%s9386_s20 + $0x98] sm:$0xff]   ;;  %v7701_v38 = vld [vmem:[%s9386_s20 + $0x48] sm:$0xff]   ;;  %p8394_p11 = por (%p2977_p5), %p8393_p8, %p8392_p7 }
 0x3b8   : >> { %6777 = vmatpush3.bf16.msra.mxu1 %v7686_v48  ;;  %vm9411_vm0 = vcmp.gt.s32.totalorder %v3250_v50, 0  ;;  %v7703_v2 = vld [vmem:[%s9386_s20 + $0xd0] sm:$0xff]   ;;  %3446 = vst [vmem:[#allocation4 + $0x4] sm:$0xf] %v6613_v39  ;;  %v7702_v12 = vld [vmem:[%s9386_s20 + $0x8] sm:$0xff]   ;;  %v7705_v34 = vld [vmem:[%s9386_s20 + $0x40] sm:$0xff]  }
 0x3b9   : >> { %6778 = vmatprep.subr.bf16.mxu1 %v7689_v24  ;;  %v3358_v4 = vsel %vm9411_vm0, %v3342_v9, 0.0  ;;  %v7704_v45 = vld [vmem:[%s9386_s20 + $0x90] sm:$0xff]   ;;  %v7707_v31 = vld [vmem:[%s9386_s20 + $0xc8] sm:$0xff]   ;;  %v7706_v36 = vld [vmem:[%s9386_s20] sm:$0xff]   ;;  %vm9490_vm5 = vcmp.lt.s32.totalorder %v3250_v50, 7  ;;  %p8395_p0 = pnand (%p2977_p5), %p8394_p11, %p8388_p4 }
 0x3ba   : >> { %6963 = vmatpush3.bf16.msra.mxu0 %v7674_v49  ;;  %v6605_v55 = vpack.c.bf16 %v3358_v4, %v3358_v4  ;;  %v7708_v1 = vld [vmem:[%s9386_s20 + $0x88] sm:$0xff]   ;;  %v7712_v49 = vld [vmem:[%s9386_s20 + $0x178] sm:$0xff]   ;;  %v3741_v52 = vld [vmem:[#allocation3 + $0x50] sm:$0xff] }
 0x3bb   : >> { %6964 = vmatprep.subr.bf16.mxu0 %v7675_v57  ;;  %v6668_v19 = vpack.c.bf16 %v3741_v52, %v3741_v52  ;;  %v6326_v41 = vld [vmem:[%s3012_s4] ss:$0 sm:$0xff] }
 0x3bc   : >> { %6779 = vmatpush3.bf16.msra.mxu1 %v7690_v37  ;;  %3398 = vst [vmem:[#allocation4] sm:$0xf] %v6605_v55  ;;  %v9799_v5 = vld [vmem:[%s4025_s30] ss:$0 sm:$0xff] }
 0x3bd   : >> { %6780 = vmatprep.subr.bf16.mxu1 %v7693_v30  ;;  %3781 = vst [vmem:[#allocation4 + $0x118] sm:$0xf] %v6668_v19 }
 0x3be   : >> { %6965 = vmatpush3.bf16.msra.mxu0 %v7675_v57  ;;  %v7713_v57 = vld [vmem:[%s9386_s20 + $0xc0] sm:$0xff]  }
 0x3bf   : >> { %6966 = vmatprep.subr.bf16.mxu0 %v7676_v0 }
 0x3c0   : >> { %6781 = vmatpush3.bf16.msra.mxu1 %v7694_v8 }
 0x3c1   : >> { %6782 = vmatprep.subr.bf16.mxu1 %v7697_v16 }
 0x3c2   : >> { %6967 = vmatpush3.bf16.msra.mxu0 %v7676_v0  ;;  %v7715_v0 = vld [vmem:[%s9386_s20 + $0x80] sm:$0xff]  }
 0x3c3   : >> { %6968 = vmatprep.subr.bf16.mxu0 %v7677_v56 }
 0x3c4   : >> { %6783 = vmatpush3.bf16.msra.mxu1 %v7698_v43 }
 0x3c5   : >> { %6784 = vmatprep.subr.bf16.mxu1 %v7701_v38 }
 0x3c6   : >> { %6969 = vmatpush3.bf16.msra.mxu0 %v7677_v56  ;;  %v7723_v56 = vld [vmem:[%s9386_s20 + $0x1f8] sm:$0xff]  }
 0x3c7   : >> { %6970 = vmatprep.subr.bf16.mxu0 %v7678_v20 }
 0x3c8   : >> { %6785 = vmatpush3.bf16.msra.mxu1 %v7702_v12 }
 0x3c9   : >> { %6786 = vmatprep.subr.bf16.mxu1 %v7705_v34 }
 0x3ca   : >> { %6971 = vmatpush3.bf16.msra.mxu0 %v7678_v20  ;;  %v9432_v20 = vadd.s32 56, %v10273_v61 }
 0x3cb   : >> { %6812 = vmatprep.subr.bf16.mxu0 %v7683_v46 }
 0x3cc   : >> { %6787 = vmatpush3.bf16.msra.mxu1 %v7706_v36  ;;  %v3299_v33 = vand.u32 7, %v9432_v20 }
 0x3cd   : >> { %6973 = vmatmul.mubr.bf16.vlgmr.msra.gmra.mxu0 %v2990_v14  ;;  %6852 = vmatprep.subr.bf16.mxu1 %v7712_v49  ;;  %v3789_v14 = vld [vmem:[#allocation3 + $0x51] sm:$0xff] }
 0x3ce   : >> { %6976 = vmatprep.mubr.bf16.mxu0 %v2991_v23  ;;  %6813 = vmatpush3.bf16.msra.mxu0 %v7684_v3  ;;  %vm9437_vm1 = vcmp.lt.s32.totalorder %v3299_v33, 7 }
 0x3cf   : >> { %6814 = vmatprep.subr.bf16.mxu0 %v7687_v62  ;;  %v3797_v23 = vsel %vm9437_vm1, %v3789_v14, 0.0 }
 0x3d0   : >> { %v6676_v28 = vpack.c.bf16 %v3797_v23, %v3797_v23 }
 0x3d2   : >> { %6815 = vmatpush3.bf16.msra.mxu0 %v7688_v22  ;;  %3837 = vst [vmem:[#allocation4 + $0x11c] sm:$0xf] %v6676_v28 }
 0x3d3   : >> { %6816 = vmatprep.subr.bf16.mxu0 %v7691_v10 }
 0x3d5   : >> { %6977 = vmatmul.mubr.bf16.gmra.mxu0 %v2992_v63 }
 0x3d6   : >> { %6817 = vmatpush3.bf16.msra.mxu0 %v7692_v59 }
 0x3d7   : >> { %6818 = vmatprep.subr.bf16.mxu0 %v7695_v32 }
 0x3da   : >> { %6819 = vmatpush3.bf16.msra.mxu0 %v7696_v51 }
 0x3db   : >> { %6820 = vmatprep.subr.bf16.mxu0 %v7699_v26 }
 0x3de   : >> { %6821 = vmatpush3.bf16.msra.mxu0 %v7700_v44 }
 0x3df   : >> { %6822 = vmatprep.subr.bf16.mxu0 %v7703_v2 }
 0x3e2   : >> { %6823 = vmatpush3.bf16.msra.mxu0 %v7704_v45 }
 0x3e3   : >> { %6824 = vmatprep.subr.bf16.mxu0 %v7707_v31 }
 0x3e6   : >> { %6825 = vmatpush3.bf16.msra.mxu0 %v7708_v1 }
 0x3e7   : >> { %6826 = vmatprep.subr.bf16.mxu0 %v7713_v57 }
 0x3ea   : >> { %6827 = vmatpush3.bf16.msra.mxu0 %v7715_v0 }
 0x3eb   : >> { %6892 = vmatprep.subr.bf16.mxu0 %v7723_v56 }
 0x48d   : >> { %v6974_v63 = vpop.f32.mrf.mxu0 }
 0x48e   : >> { %v9444_v53 = vadd.f32 %v6974_v63, %v6326_v41 }
 0x48f   : >> { %v3102_v13 = vpop.f32.mrf.mxu0 }
 0x490   : >> { %v3135_v6 = vmin.f32 %v9444_v53, 20.0  ;;  %v9447_v46 = vadd.f32 %v6326_v41, %v3102_v13  ;;  %vm3175_vm2 = vcmp.gt.f32.partialorder %v9444_v53, 20.0 }
 0x491   : >> { %v6975_v29 = vpop.f32.mrf.mxu0 }
 0x492   : >> { %v3145_v3 = vmul.f32 1.442695, %v3135_v6  ;;  %v3133_v21 = vmin.f32 %v9447_v46, 20.0  ;;  %v9450_v62 = vadd.f32 %v6975_v29, %v6326_v41  ;;  %vm3173_vm3 = vcmp.gt.f32.partialorder %v9447_v46, 20.0 }
 0x493   : >> { %v3105_v48 = vpop.f32.mrf.mxu0 }
 0x494   : >> { %7797 = vpow2.f32 %v3145_v3  ;;  %v3141_v22 = vmul.f32 1.442695, %v3133_v21  ;;  %v3136_v24 = vmin.f32 %v9450_v62, 20.0  ;;  %v9453_v10 = vadd.f32 %v6326_v41, %v3105_v48 }
 0x495   : >> { %v6978_v37 = vpop.f32.mrf.mxu0  ;;  %vm3176_vm6 = vcmp.gt.f32.partialorder %v9450_v62, 20.0 }
 0x496   : >> { %7799 = vpow2.f32 %v3141_v22  ;;  %v3147_v59 = vmul.f32 1.442695, %v3136_v24  ;;  %v9455_v30 = vadd.f32 %v6978_v37, %v6326_v41  ;;  %v3134_v32 = vmin.f32 %v9453_v10, 20.0 }
 0x497   : >> { %v3118_v8 = vpop.f32.mrf.mxu0  ;;  %vm3174_vm9 = vcmp.gt.f32.partialorder %v9453_v10, 20.0 }
 0x498   : >> { %7801 = vpow2.f32 %v3147_v59  ;;  %v3139_v51 = vmin.f32 %v9455_v30, 20.0  ;;  %v9459_v16 = vadd.f32 %v6326_v41, %v3118_v8  ;;  %v3143_v26 = vmul.f32 1.442695, %v3134_v32 }
 0x499   : >> { %v6979_v9 = vpop.f32.mrf.mxu0  ;;  %vm3179_vm12 = vcmp.gt.f32.partialorder %v9455_v30, 20.0 }
 0x49a   : >> { %v3153_v43 = vmul.f32 1.442695, %v3139_v51  ;;  %v3137_v44 = vmin.f32 %v9459_v16, 20.0  ;;  %v9462_v4 = vadd.f32 %v6979_v9, %v6326_v41  ;;  %7803 = vpow2.f32 %v3143_v26 }
 0x49b   : >> { %v3121_v60 = vpop.f32.mrf.mxu0  ;;  %vm3177_vm13 = vcmp.gt.f32.partialorder %v9459_v16, 20.0 }
 0x49c   : >> { %7805 = vpow2.f32 %v3153_v43  ;;  %v3149_v55 = vmul.f32 1.442695, %v3137_v44  ;;  %v3140_v39 = vmin.f32 %v9462_v4, 20.0  ;;  %v9465_v38 = vadd.f32 %v6326_v41, %v3121_v60 }
 0x49d   : >> { %v9472_v43 = vadd.s32 8, %v10273_v61 }
 0x49e   : >> { %7807 = vpow2.f32 %v3149_v55  ;;  %v3155_v2 = vmul.f32 1.442695, %v3140_v39  ;;  %v3138_v12 = vmin.f32 %v9465_v38, 20.0  ;;  %v3241_v55 = vadd.s32 24, %v10273_v61 }
 0x4a0   : >> { %7809 = vpow2.f32 %v3155_v2  ;;  %v3151_v34 = vmul.f32 1.442695, %v3138_v12  ;;  %v3240_v2 = vadd.s32 16, %v10273_v61 }
 0x4a1   : >> { %v7798_v45 = vpop.eup %7797 }
 0x4a2   : >> { %v3159_v31 = vadd.f32 1.0, %v7798_v45  ;;  %7811 = vpow2.f32 %v3151_v34 }
 0x4a3   : >> { %v7800_v36 = vpop.eup %7799 }
 0x4a4   : >> { %v3167_v1 = vmul.f32 %v3159_v31, %v3159_v31  ;;  %v3157_v49 = vadd.f32 1.0, %v7800_v36  ;;  %v3257_v31 = vand.u32 7, %v9472_v43 }
 0x4a5   : >> { %v7802_v57 = vpop.eup %7801 }
 0x4a6   : >> { %v3191_v0 = vadd.f32 1.0, %v3167_v1  ;;  %v3165_v56 = vmul.f32 %v3157_v49, %v3157_v49  ;;  %v3160_v52 = vadd.f32 1.0, %v7802_v57  ;;  %v6337_v60 = vadd.f32 -1.0, %v3167_v1 }
 0x4a7   : >> { %v7804_v19 = vpop.eup %7803  ;;  %v3271_v1 = vand.u32 7, %v3241_v55  ;;  %vm9484_vm4 = vcmp.gt.s32.totalorder %v3257_v31, 0  ;;  %vm9526_vm14 = vcmp.lt.s32.totalorder %v3257_v31, 7 }
 0x4a8   : >> { %7813 = vrcp.f32 %v3191_v0  ;;  %v3189_v14 = vadd.f32 1.0, %v3165_v56  ;;  %v3168_v23 = vmul.f32 %v3160_v52, %v3160_v52  ;;  %v3158_v41 = vadd.f32 1.0, %v7804_v19 }
 0x4a9   : >> { %v7806_v28 = vpop.eup %7805  ;;  %v6335_v34 = vadd.f32 -1.0, %v3165_v56  ;;  %vm9499_vm7 = vcmp.lt.s32.totalorder %v3271_v1, 7  ;;  %vm9503_vm8 = vcmp.gt.s32.totalorder %v3271_v1, 0 }
 0x4aa   : >> { %7815 = vrcp.f32 %v3189_v14  ;;  %v3192_v63 = vadd.f32 1.0, %v3168_v23  ;;  %v3163_v13 = vadd.f32 1.0, %v7806_v28  ;;  %v3166_v29 = vmul.f32 %v3158_v41, %v3158_v41 }
 0x4ab   : >> { %v7808_v6 = vpop.eup %7807  ;;  %v6338_v0 = vadd.f32 -1.0, %v3168_v23  ;;  %v3264_v14 = vand.u32 7, %v3240_v2  ;;  %v3242_v28 = vadd.s32 32, %v10273_v61  ;;  %v9495_v23 = vadd.s32 40, %v10273_v61 }
 0x4ac   : >> { %7817 = vrcp.f32 %v3192_v63  ;;  %v3171_v3 = vmul.f32 %v3163_v13, %v3163_v13  ;;  %v3161_v21 = vadd.f32 1.0, %v7808_v6  ;;  %v3190_v22 = vadd.f32 1.0, %v3166_v29 }
 0x4ad   : >> { %v7810_v48 = vpop.eup %7809  ;;  %v6336_v6 = vadd.f32 -1.0, %v3166_v29  ;;  %v3278_v29 = vand.u32 7, %v3242_v28  ;;  %vm9509_vm10 = vcmp.lt.s32.totalorder %v3264_v14, 7  ;;  %vm9513_vm11 = vcmp.gt.s32.totalorder %v3264_v14, 0 }
 0x4ae   : >> { %v3195_v24 = vadd.f32 1.0, %v3171_v3  ;;  %v3169_v37 = vmul.f32 %v3161_v21, %v3161_v21  ;;  %v3164_v59 = vadd.f32 1.0, %v7810_v48  ;;  %7819 = vrcp.f32 %v3190_v22 }
 0x4af   : >> { %v7812_v32 = vpop.eup %7811  ;;  %vm9530_vm15 = vcmp.gt.s32.totalorder %v3278_v29, 0 }
 0x4b0   : >> { %7821 = vrcp.f32 %v3195_v24  ;;  %v3193_v8 = vadd.f32 1.0, %v3169_v37  ;;  %v9468_v51 = vmul.f32 %v3164_v59, %v3164_v59  ;;  %v3162_v26 = vadd.f32 1.0, %v7812_v32 }
 0x4b1   : >> { %v6341_v24 = vadd.f32 -1.0, %v3171_v3 }
 0x4b2   : >> { %7823 = vrcp.f32 %v3193_v8  ;;  %v3196_v9 = vadd.f32 1.0, %v9468_v51  ;;  %v9474_v44 = vmul.f32 %v3162_v26, %v3162_v26 }
 0x4b4   : >> { %7825 = vrcp.f32 %v3196_v9  ;;  %v3194_v12 = vadd.f32 1.0, %v9474_v44  ;;  %v6339_v9 = vadd.f32 -1.0, %v3169_v37 }
 0x4b5   : >> { %v7814_v39 = vpop.eup %7813 }
 0x4b6   : >> { %v3207_v45 = vmul.f32 %v7814_v39, %v6337_v60  ;;  %7827 = vrcp.f32 %v3194_v12  ;;  %v9520_v12 = vadd.s32 48, %v10273_v61 }
 0x4b7   : >> { %v7816_v36 = vpop.eup %7815 }
 0x4b8   : >> { %v3215_v49 = vsel %vm3175_vm2, 1.0, %v3207_v45  ;;  %v3205_v57 = vmul.f32 %v7816_v36, %v6335_v34  ;;  %v6342_v36 = vadd.f32 -1.0, %v9468_v51 }
 0x4b9   : >> { %v7818_v52 = vpop.eup %7817  ;;  %v3223_v19 = vmul.f32 %v3215_v49, %v9444_v53 }
 0x4ba   : >> { %v3213_v41 = vsel %vm3173_vm3, 1.0, %v3205_v57  ;;  %v3208_v56 = vmul.f32 %v7818_v52, %v6338_v0  ;;  %vm3180_vm3 = vcmp.gt.f32.partialorder %v9462_v4, 20.0  ;;  %v6340_v52 = vadd.f32 -1.0, %v9474_v44 }
 0x4bb   : >> { %3231 = vst [vmem:[#allocation3 + $0x20] sm:$0xff] %v3223_v19  ;;  %v3221_v53 = vmul.f32 %v3213_v41, %v9447_v46  ;;  %v6616_v21 = vpack.c.bf16 %v3223_v19, %v3223_v19  ;;  %v7820_v48 = vpop.eup %7819  ;;  %v7742_v19 = vld [vmem:[%s9386_s20 + $0x1e0] sm:$0xff]  }
 0x4bc   : >> { %v3216_v22 = vsel %vm3176_vm6, 1.0, %v3208_v56  ;;  %v3206_v46 = vmul.f32 %v7820_v48, %v6336_v6  ;;  %vm9543_vm6 = vcmp.lt.s32.totalorder %v3278_v29, 7  ;;  %v3292_v6 = vand.u32 7, %v9520_v12 }
 0x4bd   : >> { %v7822_v32 = vpop.eup %7821  ;;  %3229 = vst [vmem:[#allocation3 + $0x10] sm:$0xff] %v3221_v53  ;;  %v3224_v8 = vmul.f32 %v3216_v22, %v9450_v62  ;;  %v6614_v26 = vpack.c.bf16 %v3221_v53, %v3221_v53  ;;  %3449 = vst [vmem:[#allocation4 + $0x70] sm:$0xf] %v6616_v21  ;;  %v3285_v62 = vand.u32 7, %v9495_v23 }
 0x4be   : >> { %3775 = vst [vmem:[#allocation4 + $0x40] sm:$0xf] %v6616_v21  ;;  %3616 = vst [vmem:[#allocation4 + $0x58] sm:$0xf] %v6616_v21  ;;  %v3211_v3 = vmul.f32 %v7822_v32, %v6341_v24  ;;  %v3214_v39 = vsel %vm3174_vm9, 1.0, %v3206_v46  ;;  %vm3178_vm9 = vcmp.gt.f32.partialorder %v9465_v38, 20.0 }
 0x4bf   : >> { %v7824_v55 = vpop.eup %7823  ;;  %3232 = vst [vmem:[#allocation3 + $0x28] sm:$0xff] %v3224_v8  ;;  %3447 = vst [vmem:[#allocation4 + $0x28] sm:$0xf] %v6614_v26  ;;  %v6617_v2 = vpack.c.bf16 %v3224_v8, %v3224_v8  ;;  %v3222_v37 = vmul.f32 %v3214_v39, %v9453_v10  ;;  %vm9536_vm2 = vcmp.gt.s32.totalorder %v3285_v62, 0 }
 0x4c0   : >> { %3614 = vst [vmem:[#allocation4 + $0x10] sm:$0xf] %v6614_v26  ;;  %v3219_v45 = vsel %vm3179_vm12, 1.0, %v3211_v3  ;;  %v3209_v34 = vmul.f32 %v7824_v55, %v6339_v9  ;;  %vm9551_vm12 = vcmp.gt.s32.totalorder %v3299_v33, 0 }
 0x4c1   : >> { %v7826_v49 = vpop.eup %7825  ;;  %v3227_v57 = vmul.f32 %v3219_v45, %v9455_v30  ;;  %3450 = vst [vmem:[#allocation4 + $0x94] sm:$0xf] %v6617_v2  ;;  %3617 = vst [vmem:[#allocation4 + $0x7c] sm:$0xf] %v6617_v2  ;;  %v6615_v51 = vpack.c.bf16 %v3222_v37, %v3222_v37 }
 0x4c2   : >> { %3776 = vst [vmem:[#allocation4 + $0x64] sm:$0xf] %v6617_v2  ;;  %3230 = vst [vmem:[#allocation3 + $0x18] sm:$0xff] %v3222_v37  ;;  %v3217_v61 = vsel %vm3177_vm13, 1.0, %v3209_v34  ;;  %v3212_v10 = vmul.f32 %v7826_v49, %v6342_v36  ;;  %vm9580_vm13 = vcmp.lt.s32.totalorder %v3285_v62, 7 }
 0x4c3   : >> { %3235 = vst [vmem:[#allocation3 + $0x40] sm:$0xff] %v3227_v57  ;;  %v3225_v31 = vmul.f32 %v3217_v61, %v9459_v16  ;;  %v6620_v14 = vpack.c.bf16 %v3227_v57, %v3227_v57  ;;  %v7828_v28 = vpop.eup %7827  ;;  %3448 = vst [vmem:[#allocation4 + $0x4c] sm:$0xf] %v6615_v51 }
 0x4c4   : >> { %v3454_v41 = vld [vmem:[#allocation3 + $0x9] sm:$0xff]  ;;  %v3220_v53 = vsel %vm3180_vm3, 1.0, %v3212_v10  ;;  %3615 = vst [vmem:[#allocation4 + $0x34] sm:$0xf] %v6615_v51  ;;  %3774 = vst [vmem:[#allocation4 + $0x1c] sm:$0xf] %v6615_v51  ;;  %v3210_v21 = vmul.f32 %v7828_v28, %v6340_v52 }
 0x4c5   : >> { %v3518_v56 = vld [vmem:[#allocation3 + $0xf] sm:$0xff]  ;;  %3233 = vst [vmem:[#allocation3 + $0x30] sm:$0xff] %v3225_v31  ;;  %v3228_v44 = vmul.f32 %v3220_v53, %v9462_v4  ;;  %v3470_v22 = vsel %vm9490_vm5, %v3454_v41, 0.0  ;;  %3453 = vst [vmem:[#allocation4 + $0x100] sm:$0xf] %v6620_v14  ;;  %v6618_v46 = vpack.c.bf16 %v3225_v31, %v3225_v31  ;;  %vm9606_vm3 = vcmp.gt.s32.totalorder %v3292_v6, 0 }
 0x4c6   : >> { %v3359_v48 = vsel %vm9484_vm4, %v3518_v56, 0.0  ;;  %3779 = vst [vmem:[#allocation4 + $0xd0] sm:$0xf] %v6620_v14  ;;  %3620 = vst [vmem:[#allocation4 + $0xe8] sm:$0xf] %v6620_v14  ;;  %v3346_v20 = vld [vmem:[#allocation3 + $0x27] sm:$0xff]  ;;  %v6621_v32 = vpack.c.bf16 %v3470_v22, %v3470_v22 }
 0x4c7   : >> { %v9560_v33 = vld [vmem:[#allocation3 + $0x21] sm:$0xff]  ;;  %v6606_v24 = vpack.c.bf16 %v3359_v48, %v3359_v48  ;;  %v3526_v8 = vsel %vm9411_vm0, %v3518_v56, 0.0  ;;  %3236 = vst [vmem:[#allocation3 + $0x48] sm:$0xff] %v3228_v44  ;;  %v3218_v4 = vsel %vm3178_vm9, 1.0, %v3210_v21  ;;  %v3529_v3 = vsel %vm9503_vm8, %v3346_v20, 0.0  ;;  %v7741_v56 = vld [vmem:[%s9386_s20 + $0x118] sm:$0xff]  }
 0x4c8   : >> { %v6629_v26 = vpack.c.bf16 %v3526_v8, %v3526_v8  ;;  %v3473_v29 = vsel %vm9499_vm7, %v9560_v33, 0.0  ;;  %v3226_v9 = vmul.f32 %v3218_v4, %v9465_v38  ;;  %3510 = vst [vmem:[#allocation4 + $0x8] sm:$0xf] %v6621_v32  ;;  %v6632_v39 = vpack.c.bf16 %v3529_v3, %v3529_v3  ;;  %3451 = vst [vmem:[#allocation4 + $0xb8] sm:$0xf] %v6618_v46  ;;  %v7735_v31 = vld [vmem:[%s9386_s20 + $0x120] sm:$0xff]  }
 0x4c9   : >> { %3399 = vst [vmem:[#allocation4 + $0x24] sm:$0xf] %v6606_v24  ;;  %v6624_v55 = vpack.c.bf16 %v3473_v29, %v3473_v29  ;;  %v3362_v2 = vsel %vm9530_vm15, %v3346_v20, 0.0  ;;  %3777 = vst [vmem:[#allocation4 + $0x88] sm:$0xf] %v6618_v46  ;;  %v9574_v12 = vld [vmem:[#allocation3 + $0x17] sm:$0xff]  ;;  %v6644_v57 = vpack.c.bf16 %v3228_v44, %v3228_v44 }
 0x4ca   : >> { %3618 = vst [vmem:[#allocation4 + $0xa0] sm:$0xf] %v6618_v46  ;;  %v9576_v37 = vld [vmem:[#allocation3 + $0x1f] sm:$0xff]  ;;  %v3455_v45 = vld [vmem:[#allocation3 + $0x11] sm:$0xff]  ;;  %3566 = vst [vmem:[#allocation4 + $0xc] sm:$0xf] %v6629_v26  ;;  %v6609_v34 = vpack.c.bf16 %v3362_v2, %v3362_v2  ;;  %v6619_v22 = vpack.c.bf16 %v3226_v9, %v3226_v9 }
 0x4cb   : >> { %v9587_v36 = vsel %vm9509_vm10, %v9560_v33, 0.0  ;;  %v9591_v49 = vsel %vm9513_vm11, %v3346_v20, 0.0  ;;  %v9593_v61 = vld [vmem:[#allocation3 + $0x19] sm:$0xff]  ;;  %3234 = vst [vmem:[#allocation3 + $0x38] sm:$0xff] %v3226_v9  ;;  %v3360_v23 = vsel %vm9513_vm11, %v9574_v12, 0.0  ;;  %v3361_v62 = vsel %vm9503_vm8, %v9576_v37, 0.0 }
 0x4cc   : >> { %v3471_v10 = vsel %vm9526_vm14, %v3455_v45, 0.0  ;;  %v3527_v51 = vsel %vm9484_vm4, %v9574_v12, 0.0  ;;  %3513 = vst [vmem:[#allocation4 + $0x74] sm:$0xf] %v6624_v55  ;;  %3569 = vst [vmem:[#allocation4 + $0x78] sm:$0xf] %v6632_v39  ;;  %v6607_v52 = vpack.c.bf16 %v3360_v23, %v3360_v23  ;;  %v6608_v14 = vpack.c.bf16 %v3361_v62, %v3361_v62 }
 0x4cd   : >> { %v6622_v28 = vpack.c.bf16 %v3471_v10, %v3471_v10  ;;  %v6630_v41 = vpack.c.bf16 %v3527_v51, %v3527_v51  ;;  %3402 = vst [vmem:[#allocation4 + $0x90] sm:$0xf] %v6609_v34  ;;  %vm9610_vm9 = vcmp.lt.s32.totalorder %v3292_v6, 7  ;;  %3621 = vst [vmem:[#allocation4 + $0x10c] sm:$0xf] %v6644_v57  ;;  %v9614_v53 = vld [vmem:[#allocation3 + $0x2f] sm:$0xff] }
 0x4ce   : >> { %3780 = vst [vmem:[#allocation4 + $0xf4] sm:$0xf] %v6644_v57  ;;  %v3458_v44 = vld [vmem:[#allocation3 + $0x29] sm:$0xff]  ;;  %v3472_v21 = vsel %vm9509_vm10, %v9593_v61, 0.0  ;;  %v3528_v48 = vsel %vm9513_vm11, %v9576_v37, 0.0  ;;  %v3630_v6 = vsel %vm9490_vm5, %v3455_v45, 0.0 }
 0x4cf   : >> { %v3792_v20 = vsel %vm9509_vm10, %v3458_v44, 0.0  ;;  %3400 = vst [vmem:[#allocation4 + $0x48] sm:$0xf] %v6607_v52  ;;  %3401 = vst [vmem:[#allocation4 + $0x6c] sm:$0xf] %v6608_v14  ;;  %v6623_v24 = vpack.c.bf16 %v3472_v21, %v3472_v21  ;;  %v6631_v32 = vpack.c.bf16 %v3528_v48, %v3528_v48  ;;  %v3363_v8 = vsel %vm9536_vm2, %v9614_v53, 0.0 }
 0x4d0   : >> { %3511 = vst [vmem:[#allocation4 + $0x2c] sm:$0xf] %v6622_v28  ;;  %3567 = vst [vmem:[#allocation4 + $0x30] sm:$0xf] %v6630_v41  ;;  %v6671_v60 = vpack.c.bf16 %v3792_v20, %v3792_v20  ;;  %v9629_v46 = vld [vmem:[#allocation3 + $0x41] sm:$0xff]  ;;  %v6610_v26 = vpack.c.bf16 %v3363_v8, %v3363_v8  ;;  %v3474_v43 = vsel %vm9543_vm6, %v3458_v44, 0.0  ;;  %v6645_v51 = vpack.c.bf16 %v3630_v6, %v3630_v6 }
 0x4d1   : >> { %v9631_v4 = vld [vmem:[#allocation3 + $0x47] sm:$0xff]  ;;  %v3530_v29 = vsel %vm9530_vm15, %v9614_v53, 0.0  ;;  %3452 = vst [vmem:[#allocation4 + $0xdc] sm:$0xf] %v6619_v22  ;;  %3619 = vst [vmem:[#allocation4 + $0xc4] sm:$0xf] %v6619_v22  ;;  %v6625_v55 = vpack.c.bf16 %v3474_v43, %v3474_v43 }
 0x4d2   : >> { %3778 = vst [vmem:[#allocation4 + $0xac] sm:$0xf] %v6619_v22  ;;  %v7709_v3 = vld [vmem:[#allocation4] ss:$36 sps:$4 sm:$0xff]   ;;  %v7714_v9 = vld [vmem:[%s9386_s20 + $0x138] sm:$0xff]   ;;  %v6633_v39 = vpack.c.bf16 %v3530_v29, %v3530_v29  ;;  %v3477_v2 = vsel %vm9437_vm1, %v9629_v46, 0.0 }
 0x4d3   : >> { %3512 = vst [vmem:[#allocation4 + $0x50] sm:$0xf] %v6623_v24  ;;  %3568 = vst [vmem:[#allocation4 + $0x54] sm:$0xf] %v6631_v32  ;;  %v3533_v45 = vsel %vm9551_vm12, %v9631_v4, 0.0  ;;  %v7721_v57 = vld [vmem:[%s9386_s20 + $0x170] sm:$0xff]   ;;  %v6628_v23 = vpack.c.bf16 %v3477_v2, %v3477_v2 }
 0x4d4   : >> { %3832 = vst [vmem:[#allocation4 + $0x68] sm:$0xf] %v6671_v60  ;;  %v7711_v34 = vld [vmem:[#allocation4 + $0x4] ss:$36 sps:$4 sm:$0xff]   ;;  %3403 = vst [vmem:[#allocation4 + $0xb4] sm:$0xf] %v6610_v26  ;;  %v6636_v62 = vpack.c.bf16 %v3533_v45, %v3533_v45 }
 0x4d5   : >> { %v3631_v10 = vsel %vm9526_vm14, %v9593_v61, 0.0  ;;  %v9649_v52 = vld [vmem:[#allocation3 + $0x37] sm:$0xff]  ;;  %v9651_v14 = vld [vmem:[#allocation3 + $0x3f] sm:$0xff]  ;;  %3514 = vst [vmem:[#allocation4 + $0x98] sm:$0xf] %v6625_v55  ;;  %v3686_v21 = vsel %vm9411_vm0, %v9574_v12, 0.0  ;;  %4681 = vmatprep.mubr.bf16.mxu1 %v7711_v34 }
 0x4d6   : >> { %v3459_v28 = vld [vmem:[#allocation3 + $0x31] sm:$0xff]  ;;  %3570 = vst [vmem:[#allocation4 + $0x9c] sm:$0xf] %v6633_v39  ;;  %v6646_v41 = vpack.c.bf16 %v3631_v10, %v3631_v10  ;;  %v3687_v48 = vsel %vm9484_vm4, %v9576_v37, 0.0  ;;  %v3633_v22 = vsel %vm9499_vm7, %v3458_v44, 0.0  ;;  %v9661_v6 = vld [vmem:[#allocation3 + $0x39] sm:$0xff]  ;;  %v6653_v63 = vpack.c.bf16 %v3686_v21, %v3686_v21  ;;  %4682 = vmatmul.mubr.bf16.vlgmr.msra.gmra.mxu1 %v7709_v3 }
 0x4d7   : >> { %v3793_v20 = vsel %vm9499_vm7, %v3459_v28, 0.0  ;;  %v3475_v24 = vsel %vm9580_vm13, %v3459_v28, 0.0  ;;  %v3531_v17 = vsel %vm9536_vm2, %v9649_v52, 0.0  ;;  %3517 = vst [vmem:[#allocation4 + $0x104] sm:$0xf] %v6628_v23  ;;  %v7722_v37 = vld [vmem:[%s9386_s20 + $0x130] sm:$0xff]   ;;  %6853 = vmatpush3.bf16.msra.mxu1 %v7714_v9  ;;  %v6654_v2 = vpack.c.bf16 %v3687_v48, %v3687_v48 }
 0x4d8   : >> { %3573 = vst [vmem:[#allocation4 + $0x108] sm:$0xf] %v6636_v62  ;;  %3670 = vst [vmem:[#allocation4 + $0x14] sm:$0xf] %v6645_v51  ;;  %v6672_v12 = vpack.c.bf16 %v3793_v20, %v3793_v20  ;;  %v7726_v44 = vld [vmem:[%s9386_s20 + $0x1b8] sm:$0xff]   ;;  %v6626_v32 = vpack.c.bf16 %v3475_v24, %v3475_v24  ;;  %v6634_v59 = vpack.c.bf16 %v3531_v17, %v3531_v17  ;;  %v3364_v8 = vsel %vm9606_vm3, %v9649_v52, 0.0 }
 0x4d9   : >> { %3671 = vst [vmem:[#allocation4 + $0x38] sm:$0xf] %v6646_v41  ;;  %v9675_v60 = vld [vmem:[#allocation4 + $0x48] sm:$0xff]  ;;  %v3365_v3 = vsel %vm9551_vm12, %v9651_v14, 0.0  ;;  %v6611_v55 = vpack.c.bf16 %v3364_v8, %v3364_v8  ;;  %v3476_v39 = vsel %vm9610_vm9, %v9661_v6, 0.0  ;;  %6854 = vmatprep.subr.bf16.mxu1 %v7721_v57  ;;  %v3532_v62 = vsel %vm9606_vm3, %v9651_v14, 0.0 }
 0x4da   : >> { %v9677_v26 = vld [vmem:[#allocation4 + $0x6c] sm:$0xff]  ;;  %3726 = vst [vmem:[#allocation4 + $0x18] sm:$0xf] %v6653_v63  ;;  %3833 = vst [vmem:[#allocation4 + $0x8c] sm:$0xf] %v6672_v12  ;;  %v6612_v34 = vpack.c.bf16 %v3365_v3, %v3365_v3  ;;  %v6627_v23 = vpack.c.bf16 %v3476_v39, %v3476_v39  ;;  %v6635_v41 = vpack.c.bf16 %v3532_v62, %v3532_v62  ;;  %v3689_v48 = vsel %vm9503_vm8, %v9614_v53, 0.0 }
 0x4db   : >> { %v7716_v43 = vld [vmem:[#allocation4 + $0x4c] ss:$36 sps:$4 sm:$0xff]   ;;  %3515 = vst [vmem:[#allocation4 + $0xbc] sm:$0xf] %v6626_v32  ;;  %3571 = vst [vmem:[#allocation4 + $0xc0] sm:$0xf] %v6634_v59  ;;  %v6647_v57 = vpack.c.bf16 %v9587_v36, %v9587_v36  ;;  %v6648_v21 = vpack.c.bf16 %v3633_v22, %v3633_v22  ;;  %v6655_v63 = vpack.c.bf16 %v9591_v49, %v9591_v49  ;;  %6855 = vmatpush3.bf16.msra.mxu1 %v7722_v37 }
 0x4dc   : >> { %v7727_v29 = vld [vmem:[%s9386_s20 + $0x168] sm:$0xff]   ;;  %4689 = vmatprep.mubr.bf16.mxu1 %v7716_v43  ;;  %v7729_v51 = vld [vmem:[%s9386_s20 + $0x1f0] sm:$0xff]   ;;  %3404 = vst [vmem:[#allocation4 + $0xd8] sm:$0xf] %v6611_v55  ;;  %3727 = vst [vmem:[#allocation4 + $0x3c] sm:$0xf] %v6654_v2  ;;  %v6656_v12 = vpack.c.bf16 %v3689_v48, %v3689_v48  ;;  %v6426_v53 = vcombine.low %v9675_v60, %v9677_v26 }
 0x4dd   : >> { %v7718_v9 = vld [vmem:[#allocation4 + $0x8] ss:$36 sps:$4 sm:$0xff]   ;;  %v7724_v20 = vld [vmem:[#allocation4 + $0x54] ss:$36 sps:$4 sm:$0xff]   ;;  %3405 = vst [vmem:[#allocation4 + $0xfc] sm:$0xf] %v6612_v34  ;;  %6856 = vmatprep.subr.bf16.mxu1 %v7727_v29 }
 0x4de   : >> { %v7720_v45 = vld [vmem:[#allocation4 + $0xc] ss:$36 sps:$4 sm:$0xff]   ;;  %3516 = vst [vmem:[#allocation4 + $0xe0] sm:$0xf] %v6627_v23  ;;  %v3634_v32 = vsel %vm9543_vm6, %v3459_v28, 0.0  ;;  %v3635_v36 = vsel %vm9580_vm13, %v9661_v6, 0.0  ;;  %4690 = vmatmul.mubr.bf16.gmra.mxu1 %v6426_v53 }
 0x4df   : >> { %v9689_v10 = vld [vmem:[#allocation3 + $0x49] sm:$0xff]  ;;  %4746 = vmatprep.mubr.bf16.mxu0 %v7720_v45  ;;  %3572 = vst [vmem:[#allocation4 + $0xe4] sm:$0xf] %v6635_v41  ;;  %3672 = vst [vmem:[#allocation4 + $0x5c] sm:$0xf] %v6647_v57  ;;  %v6649_v49 = vpack.c.bf16 %v3634_v32, %v3634_v32  ;;  %v6650_v22 = vpack.c.bf16 %v3635_v36, %v3635_v36  ;;  %v3690_v28 = vsel %vm9530_vm15, %v9649_v52, 0.0 }
 0x4e0   : >> { %v7728_v24 = vld [vmem:[%s9386_s20 + $0x128] sm:$0xff]   ;;  %v7732_v17 = vld [vmem:[%s9386_s20 + $0x1b0] sm:$0xff]   ;;  %4747 = vmatmul.mubr.bf16.vlgmr.msra.gmra.mxu0 %v7718_v9  ;;  %3673 = vst [vmem:[#allocation4 + $0x80] sm:$0xf] %v6648_v21  ;;  %v7733_v59 = vld [vmem:[%s9386_s20 + $0x160] sm:$0xff]   ;;  %v3691_v37 = vsel %vm9536_vm2, %v9651_v14, 0.0  ;;  %v6657_v8 = vpack.c.bf16 %v3690_v28, %v3690_v28 }
 0x4e1   : >> { %v3685_v50 = vld [vmem:[#allocation3 + $0x4f] sm:$0xff]  ;;  %4754 = vmatprep.mubr.bf16.mxu0 %v7724_v20  ;;  %6893 = vmatpush3.bf16.msra.mxu0 %v7726_v44  ;;  %3728 = vst [vmem:[#allocation4 + $0x60] sm:$0xf] %v6655_v63  ;;  %3729 = vst [vmem:[#allocation4 + $0x84] sm:$0xf] %v6656_v12  ;;  %v3636_v60 = vsel %vm9610_vm9, %v9629_v46, 0.0  ;;  %v6658_v44 = vpack.c.bf16 %v3691_v37, %v3691_v37 }
 0x4e2   : >> { %v3637_v26 = vsel %vm9437_vm1, %v9689_v10, 0.0  ;;  %6894 = vmatprep.subr.bf16.mxu0 %v7729_v51  ;;  %v7730_v1 = vld [vmem:[#allocation4 + $0x94] ss:$36 sps:$4 sm:$0xff]   ;;  %v7736_v52 = vld [vmem:[%s9386_s20 + $0x1e8] sm:$0xff]   ;;  %3674 = vst [vmem:[#allocation4 + $0xa4] sm:$0xf] %v6649_v49  ;;  %v6651_v43 = vpack.c.bf16 %v3636_v60, %v3636_v60  ;;  %6857 = vmatpush3.bf16.msra.mxu1 %v7728_v24 }
 0x4e3   : >> { %3675 = vst [vmem:[#allocation4 + $0xc8] sm:$0xf] %v6650_v22  ;;  %v6652_v30 = vpack.c.bf16 %v3637_v26, %v3637_v26  ;;  %v3692_v14 = vsel %vm9606_vm3, %v9631_v4, 0.0  ;;  %3730 = vst [vmem:[#allocation4 + $0xa8] sm:$0xf] %v6657_v8  ;;  %v3693_v35 = vsel %vm9551_vm12, %v3685_v50, 0.0  ;;  %4697 = vmatprep.mubr.bf16.mxu1 %v7730_v1  ;;  %6858 = vmatprep.subr.bf16.mxu1 %v7733_v59 }
 0x4e4   : >> { %v6659_v29 = vpack.c.bf16 %v3692_v14, %v3692_v14  ;;  %v3790_v3 = vsel %vm9490_vm5, %v9593_v61, 0.0  ;;  %v3791_v55 = vsel %vm9526_vm14, %v9560_v33, 0.0  ;;  %3731 = vst [vmem:[#allocation4 + $0xcc] sm:$0xf] %v6658_v44  ;;  %3676 = vst [vmem:[#allocation4 + $0xec] sm:$0xf] %v6651_v43  ;;  %v6660_v16 = vpack.c.bf16 %v3693_v35, %v3693_v35 }
 0x4e5   : >> { %3677 = vst [vmem:[#allocation4 + $0x110] sm:$0xf] %v6652_v30  ;;  %v6669_v4 = vpack.c.bf16 %v3790_v3, %v3790_v3  ;;  %v6670_v39 = vpack.c.bf16 %v3791_v55, %v3791_v55  ;;  %v3794_v13 = vsel %vm9543_vm6, %v9661_v6, 0.0  ;;  %6895 = vmatpush3.bf16.msra.mxu0 %v7732_v17  ;;  %v7739_v61 = vld [vmem:[%s9386_s20 + $0x1a8] sm:$0xff]   ;;  %v7740_v2 = vld [vmem:[%s9386_s20 + $0x158] sm:$0xff]   ;;  %v3795_v0 = vsel %vm9580_vm13, %v9629_v46, 0.0 }
 0x4e6   : >> { %3732 = vst [vmem:[#allocation4 + $0xf0] sm:$0xf] %v6659_v29  ;;  %v6673_v33 = vpack.c.bf16 %v3794_v13, %v3794_v13  ;;  %v3796_v9 = vsel %vm9610_vm9, %v9689_v10, 0.0  ;;  %v3863_v45 = vld [vmem:[#allocation4 + $0xb4] sm:$0xff]  ;;  %6896 = vmatprep.subr.bf16.mxu0 %v7736_v52  ;;  %3733 = vst [vmem:[#allocation4 + $0x114] sm:$0xf] %v6660_v16  ;;  %v6674_v6 = vpack.c.bf16 %v3795_v0, %v3795_v0  ;;  %6859 = vmatpush3.bf16.msra.mxu1 %v7735_v31 }
 0x4e7   : >> { %v7734_v34 = vld [vmem:[#allocation4 + $0x50] ss:$36 sps:$4 sm:$0xff]   ;;  %3830 = vst [vmem:[#allocation4 + $0x20] sm:$0xf] %v6669_v4  ;;  %3831 = vst [vmem:[#allocation4 + $0x44] sm:$0xf] %v6670_v39  ;;  %v6675_v23 = vpack.c.bf16 %v3796_v9, %v3796_v9  ;;  %6860 = vmatprep.subr.bf16.mxu1 %v7740_v2 }
 0x4e8   : >> { %v7737_v62 = vld [vmem:[#allocation4 + $0x9c] ss:$36 sps:$4 sm:$0xff]   ;;  %3834 = vst [vmem:[#allocation4 + $0xb0] sm:$0xf] %v6673_v33  ;;  %v3858_v38 = vld [vmem:[#allocation4 + $0x90] sm:$0xff]  ;;  %4755 = vmatmul.mubr.bf16.gmra.mxu0 %v7734_v34  ;;  %v7753_v20 = vld [vmem:[%s9386_s20 + $0x148] sm:$0xff]  }
 0x4e9   : >> { %v7745_v46 = vld [vmem:[%s9386_s20 + $0x1a0] sm:$0xff]   ;;  %3835 = vst [vmem:[#allocation4 + $0xd4] sm:$0xf] %v6674_v6  ;;  %3836 = vst [vmem:[#allocation4 + $0xf8] sm:$0xf] %v6675_v23  ;;  %4762 = vmatprep.mubr.bf16.mxu0 %v7737_v62  ;;  %6897 = vmatpush3.bf16.msra.mxu0 %v7739_v61  ;;  %v6435_v10 = vcombine.low %v3858_v38, %v3863_v45  ;;  %v7746_v51 = vld [vmem:[%s9386_s20 + $0x150] sm:$0xff]  }
 0x4ea   : >> { %6898 = vmatprep.subr.bf16.mxu0 %v7742_v19  ;;  %v7743_v41 = vld [vmem:[#allocation4 + $0xdc] ss:$36 sps:$4 sm:$0xff]   ;;  %v7748_v21 = vld [vmem:[%s9386_s20 + $0x110] sm:$0xff]   ;;  %6861 = vmatpush3.bf16.msra.mxu1 %v7741_v56  ;;  %v7750_v32 = vld [vmem:[#allocation4 + $0xe4] ss:$36 sps:$4 sm:$0xff]  }
 0x4eb   : >> { %v7749_v57 = vld [vmem:[%s9386_s20 + $0x1d8] sm:$0xff]   ;;  %4698 = vmatmul.mubr.bf16.gmra.mxu1 %v6435_v10  ;;  %v7755_v24 = vld [vmem:[%s9386_s20 + $0x1d0] sm:$0xff]   ;;  %6862 = vmatprep.subr.bf16.mxu1 %v7746_v51  ;;  %v7754_v36 = vld [vmem:[%s9386_s20 + $0x108] sm:$0xff]  }
 0x4ec   : >> { %4705 = vmatprep.mubr.bf16.mxu1 %v7743_v41  ;;  %v7752_v48 = vld [vmem:[%s9386_s20 + $0x198] sm:$0xff]   ;;  %v7759_v50 = vld [vmem:[%s9386_s20 + $0x190] sm:$0xff]   ;;  %v7760_v49 = vld [vmem:[%s9386_s20 + $0x140] sm:$0xff]  }
 0x4ed   : >> { %v3868_v17 = vld [vmem:[#allocation4 + $0xd8] sm:$0xff]  ;;  %6899 = vmatpush3.bf16.msra.mxu0 %v7745_v46  ;;  %v7763_v28 = vld [vmem:[%s9386_s20 + $0x1c8] sm:$0xff]   ;;  %v7762_v59 = vld [vmem:[%s9386_s20 + $0x100] sm:$0xff]  }
 0x4ee   : >> { %v7747_v63 = vld [vmem:[#allocation4 + $0x98] ss:$36 sps:$4 sm:$0xff]   ;;  %6900 = vmatprep.subr.bf16.mxu0 %v7749_v57  ;;  %6863 = vmatpush3.bf16.msra.mxu1 %v7748_v21  ;;  %v7764_v37 = vld [vmem:[%s9386_s20 + $0x188] sm:$0xff]   ;;  %v7761_v8 = vld [vmem:[#allocation4 + $0xe0] ss:$36 sps:$4 sm:$0xff]  }
 0x4ef   : >> { %v3873_v12 = vld [vmem:[#allocation4 + $0xfc] sm:$0xff]  ;;  %6864 = vmatprep.subr.bf16.mxu1 %v7753_v20  ;;  %v7758_v22 = vld [vmem:[#allocation4 + $0x14] ss:$36 sps:$4 sm:$0xff]   ;;  %v7776_v14 = vld [vmem:[%s9386_s20 + $0x228] sm:$0xff]  }
 0x4f0   : >> { %4763 = vmatmul.mubr.bf16.gmra.mxu0 %v7747_v63  ;;  %v6444_v53 = vcombine.low %v3868_v17, %v3873_v12  ;;  %v7768_v60 = vld [vmem:[%s9386_s20 + $0x238] sm:$0xff]   ;;  %v7769_v26 = vld [vmem:[%s9386_s20 + $0x1c0] sm:$0xff]   ;;  %v7756_v52 = vld [vmem:[#allocation4 + $0x10] ss:$36 sps:$4 sm:$0xff]  }
 0x4f1   : >> { %4770 = vmatprep.mubr.bf16.mxu0 %v7750_v32  ;;  %6901 = vmatpush3.bf16.msra.mxu0 %v7752_v48  ;;  %v7767_v1 = vld [vmem:[#allocation4 + $0x1c] ss:$36 sps:$4 sm:$0xff]   ;;  %v7773_v43 = vld [vmem:[%s9386_s20 + $0x230] sm:$0xff]   ;;  %v7774_v3 = vld [vmem:[#allocation4 + $0x64] ss:$36 sps:$4 sm:$0xff]  }
 0x4f2   : >> { %6902 = vmatprep.subr.bf16.mxu0 %v7755_v24  ;;  %6865 = vmatpush3.bf16.msra.mxu1 %v7754_v36  ;;  %v7772_v44 = vld [vmem:[%s9386_s20 + $0x180] sm:$0xff]   ;;  %v7765_v35 = vld [vmem:[#allocation4 + $0x18] ss:$36 sps:$4 sm:$0xff]   ;;  %v7781_v0 = vld [vmem:[#allocation4 + $0xac] ss:$36 sps:$4 sm:$0xff]  }
 0x4f3   : >> { %4706 = vmatmul.mubr.bf16.gmra.mxu1 %v6444_v53  ;;  %6866 = vmatprep.subr.bf16.mxu1 %v7760_v49  ;;  %v7770_v30 = vld [vmem:[#allocation4 + $0x5c] ss:$36 sps:$4 sm:$0xff]   ;;  %v7777_v4 = vld [vmem:[#allocation4 + $0xa4] ss:$36 sps:$4 sm:$0xff]   ;;  %v7786_v9 = vld [vmem:[%s9386_s20 + $0x210] sm:$0xff]  }
 0x4f4   : >> { %4811 = vmatprep.mubr.bf16.mxu1 %v7758_v22  ;;  %v3855_v29 = vld [vmem:[#allocation4 + $0x7c] sm:$0xff]  ;;  %v3865_v61 = vld [vmem:[#allocation4 + $0xc4] sm:$0xff]  ;;  %v7784_v45 = vld [vmem:[#allocation4 + $0xec] ss:$36 sps:$4 sm:$0xff]  }
 0x4f5   : >> { %6903 = vmatpush3.bf16.msra.mxu0 %v7759_v50  ;;  %v3850_v55 = vld [vmem:[#allocation4 + $0x58] sm:$0xff]  ;;  %v7779_v16 = vld [vmem:[%s9386_s20 + $0x220] sm:$0xff]   ;;  %v7790_v34 = vld [vmem:[%s9386_s20 + $0x208] sm:$0xff]  }
 0x4f6   : >> { %6904 = vmatprep.subr.bf16.mxu0 %v7763_v28  ;;  %6867 = vmatpush3.bf16.msra.mxu1 %v7762_v59  ;;  %v6430_v31 = vcombine.low %v3850_v55, %v3855_v29  ;;  %v7783_v39 = vld [vmem:[%s9386_s20 + $0x218] sm:$0xff]   ;;  %v3860_v13 = vld [vmem:[#allocation4 + $0xa0] sm:$0xff]  ;;  %v3870_v19 = vld [vmem:[#allocation4 + $0xe8] sm:$0xff] }
 0x4f7   : >> { %6980 = vmatprep.subr.bf16.mxu1 %v7768_v60  ;;  %v7780_v2 = vld [vmem:[#allocation4 + $0x60] ss:$36 sps:$4 sm:$0xff]   ;;  %v6439_v33 = vcombine.low %v3860_v13, %v3865_v61  ;;  %v3875_v6 = vld [vmem:[#allocation4 + $0x10c] sm:$0xff]  ;;  %v7788_v62 = vld [vmem:[#allocation4 + $0xf4] ss:$36 sps:$4 sm:$0xff]  }
 0x4f8   : >> { %4771 = vmatmul.mubr.bf16.gmra.mxu0 %v7761_v8  ;;  %v7787_v23 = vld [vmem:[#allocation4 + $0xa8] ss:$36 sps:$4 sm:$0xff]   ;;  %v6448_v38 = vcombine.low %v3870_v19, %v3875_v6  ;;  %v7792_v56 = vld [vmem:[%s9386_s20 + $0x200] sm:$0xff]   ;;  %v7793_v10 = vld [vmem:[#allocation4 + $0xf0] ss:$36 sps:$4 sm:$0xff]  }
 0x4f9   : >> { %6905 = vmatpush3.bf16.msra.mxu0 %v7764_v37  ;;  %4876 = vmatprep.mubr.bf16.mxu0 %v7767_v1  ;;  %v7791_v46 = vld [vmem:[#allocation4 + $0x20] ss:$36 sps:$4 sm:$0xff]   ;;  %v7794_v51 = vld [vmem:[#allocation4 + $0x68] ss:$36 sps:$4 sm:$0xff]   ;;  %v7795_v41 = vld [vmem:[#allocation4 + $0xb0] ss:$36 sps:$4 sm:$0xff]  }
 0x4fa   : >> { %6906 = vmatprep.subr.bf16.mxu0 %v7769_v26  ;;  %v7796_v57 = vld [vmem:[#allocation4 + $0xf8] ss:$36 sps:$4 sm:$0xff]  }
 0x4fb   : >> { %4812 = vmatmul.mubr.bf16.vlgmr.msra.gmra.mxu1 %v7756_v52 }
 0x4fc   : >> { %6981 = vmatpush3.bf16.msra.mxu1 %v7768_v60  ;;  %4819 = vmatprep.mubr.bf16.mxu1 %v7770_v30 }
 0x4fd   : >> { %6907 = vmatpush3.bf16.msra.mxu0 %v7772_v44  ;;  %6982 = vmatprep.subr.bf16.mxu1 %v7773_v43 }
 0x500   : >> { %4877 = vmatmul.mubr.bf16.vlgmr.msra.gmra.mxu0 %v7765_v35  ;;  %6983 = vmatpush3.bf16.msra.mxu1 %v7773_v43 }
 0x501   : >> { %4884 = vmatprep.mubr.bf16.mxu0 %v7774_v3  ;;  %6984 = vmatprep.subr.bf16.mxu1 %v7776_v14 }
 0x503   : >> { %4820 = vmatmul.mubr.bf16.gmra.mxu1 %v6430_v31 }
 0x504   : >> { %6985 = vmatpush3.bf16.msra.mxu1 %v7776_v14  ;;  %4827 = vmatprep.mubr.bf16.mxu1 %v7777_v4 }
 0x505   : >> { %6986 = vmatprep.subr.bf16.mxu1 %v7779_v16 }
 0x508   : >> { %4885 = vmatmul.mubr.bf16.gmra.mxu0 %v7780_v2  ;;  %6987 = vmatpush3.bf16.msra.mxu1 %v7779_v16 }
 0x509   : >> { %4892 = vmatprep.mubr.bf16.mxu0 %v7781_v0  ;;  %6988 = vmatprep.subr.bf16.mxu1 %v7783_v39 }
 0x50b   : >> { %4828 = vmatmul.mubr.bf16.gmra.mxu1 %v6439_v33 }
 0x50c   : >> { %6989 = vmatpush3.bf16.msra.mxu1 %v7783_v39  ;;  %4835 = vmatprep.mubr.bf16.mxu1 %v7784_v45 }
 0x50d   : >> { %6990 = vmatprep.subr.bf16.mxu1 %v7786_v9 }
 0x510   : >> { %4893 = vmatmul.mubr.bf16.gmra.mxu0 %v7787_v23  ;;  %6991 = vmatpush3.bf16.msra.mxu1 %v7786_v9 }
 0x511   : >> { %4900 = vmatprep.mubr.bf16.mxu0 %v7788_v62  ;;  %6992 = vmatprep.subr.bf16.mxu1 %v7790_v34 }
 0x513   : >> { %4836 = vmatmul.mubr.bf16.gmra.mxu1 %v6448_v38 }
 0x514   : >> { %6993 = vmatpush3.bf16.msra.mxu1 %v7790_v34  ;;  %6996 = vmatprep.mubr.bf16.mxu1 %v7791_v46 }
 0x515   : >> { %6994 = vmatprep.subr.bf16.mxu1 %v7792_v56 }
 0x518   : >> { %4901 = vmatmul.mubr.bf16.gmra.mxu0 %v7793_v10  ;;  %6995 = vmatpush3.bf16.msra.mxu1 %v7792_v56 }
 0x51b   : >> { %6997 = vmatmul.mubr.bf16.vlgmr.msra.gmra.mxu1 %v7794_v51 }
 0x51c   : >> { %7000 = vmatprep.mubr.bf16.mxu1 %v7795_v41 }
 0x523   : >> { %7001 = vmatmul.mubr.bf16.gmra.mxu1 %v7796_v57 }
 0x596   : >> { %v6788_v21 = vpop.f32.mrf.mxu1 }
 0x598   : >> { %v6789_v48 = vpop.f32.mrf.mxu1 }
 0x599   : >> { %v6790_v58 = vadd.f32 %v6789_v48, %v6788_v21 }
 0x59a   : >> { %v6791_v20 = vpop.f32.mrf.mxu1 }
 0x59c   : >> { %v6792_v17 = vpop.f32.mrf.mxu1 }
 0x59d   : >> { %v6793_v27 = vadd.f32 %v6792_v17, %v6791_v20 }
 0x59e   : >> { %v6794_v12 = vpop.f32.mrf.mxu1 }
 0x59f   : >> { %v4687_v20 = vadd.f32 %v6793_v27, %v9799_v5 }
 0x5a0   : >> { %v6828_v24 = vpop.f32.mrf.mxu0  ;;  %v6795_v36 = vpop.f32.mrf.mxu1 }
 0x5a1   : >> { %v6796_v57 = vadd.f32 %v6795_v36, %v6794_v12  ;;  %v4684_v12 = vadd.f32 %v6790_v58, %v9799_v5 }
 0x5a2   : >> { %v6829_v63 = vpop.f32.mrf.mxu0  ;;  %v6797_v53 = vpop.f32.mrf.mxu1 }
 0x5a3   : >> { %v6830_v54 = vadd.f32 %v6829_v63, %v6828_v24  ;;  %v4692_v42 = vadd.f32 %v6796_v57, %v9799_v5 }
 0x5a4   : >> { %v6831_v32 = vpop.f32.mrf.mxu0  ;;  %v6798_v22 = vpop.f32.mrf.mxu1 }
 0x5a5   : >> { %v6799_v18 = vadd.f32 %v6798_v22, %v6797_v53  ;;  %v4749_v24 = vadd.f32 %v6830_v54, %v4684_v12 }
 0x5a6   : >> { %v6832_v50 = vpop.f32.mrf.mxu0 }
 0x5a7   : >> { %v6833_v36 = vadd.f32 %v6832_v50, %v6831_v32  ;;  %v4695_v17 = vadd.f32 %v6799_v18, %v9799_v5 }
 0x5a8   : >> { %v6834_v49 = vpop.f32.mrf.mxu0 }
 0x5aa   : >> { %v6835_v28 = vpop.f32.mrf.mxu0 }
 0x5ab   : >> { %v6800_v59 = vpop.f32.mrf.mxu1  ;;  %v6836_v11 = vadd.f32 %v6835_v28, %v6834_v49 }
 0x5ac   : >> { %v6837_v37 = vpop.f32.mrf.mxu0 }
 0x5ad   : >> { %v6801_v8 = vpop.f32.mrf.mxu1 }
 0x5ae   : >> { %v6838_v60 = vpop.f32.mrf.mxu0  ;;  %v6802_v21 = vadd.f32 %v6801_v8, %v6800_v59  ;;  %v4752_v59 = vadd.f32 %v6833_v36, %v4687_v20 }
 0x5af   : >> { %v9770_v26 = vpop.f32.mrf.mxu1  ;;  %v6839_v48 = vadd.f32 %v6838_v60, %v6837_v37 }
 0x5b0   : >> { %v6840_v1 = vpop.f32.mrf.mxu0 }
 0x5b1   : >> { %v9772_v52 = vpop.f32.mrf.mxu1 }
 0x5b2   : >> { %v6841_v44 = vpop.f32.mrf.mxu0  ;;  %v6805_v37 = vadd.f32 %v9772_v52, %v9770_v26 }
 0x5b3   : >> { %v6806_v43 = vpop.f32.mrf.mxu1  ;;  %v6842_v63 = vadd.f32 %v6841_v44, %v6840_v1 }
 0x5b4   : >> { %v9774_v30 = vpop.f32.mrf.mxu0 }
 0x5b5   : >> { %10306 = vst [vmem:[#allocation62_spill] sm:$0xff] %v9774_v30  ;;  %v6807_v14 = vpop.f32.mrf.mxu1 }
 0x5b6   : >> { %v9776_v35 = vpop.f32.mrf.mxu0 }
 0x5b7   : >> { %10307 = vst [vmem:[#allocation63_spill] sm:$0xff] %v9776_v35  ;;  %v9778_v29 = vpop.f32.mrf.mxu1 }
 0x5b8   : >> { %v6846_v3 = vpop.f32.mrf.mxu0 }
 0x5b9   : >> { %v9780_v55 = vpop.f32.mrf.mxu1 }
 0x5ba   : >> { %v6847_v31 = vpop.f32.mrf.mxu0 }
 0x5bb   : >> { %v6868_v16 = vpop.f32.mrf.mxu1  ;;  %v6848_v22 = vadd.f32 %v6847_v31, %v6846_v3 }
 0x5bc   : >> { %v9782_v4 = vpop.f32.mrf.mxu0 }
 0x5bd   : >> { %v6869_v39 = vpop.f32.mrf.mxu1 }
 0x5be   : >> { %v9784_v13 = vpop.f32.mrf.mxu0  ;;  %v6870_v30 = vadd.f32 %v6869_v39, %v6868_v16 }
 0x5bf   : >> { %v9786_v61 = vpop.f32.mrf.mxu1 }
 0x5c0   : >> { %v6908_v2 = vpop.f32.mrf.mxu0  ;;  %v4814_v54 = vadd.f32 %v6870_v30, %v4749_v24 }
 0x5c1   : >> { %v6872_v0 = vpop.f32.mrf.mxu1 }
 0x5c2   : >> { %v6909_v33 = vpop.f32.mrf.mxu0 }
 0x5c3   : >> { %v6874_v9 = vpop.f32.mrf.mxu1 }
 0x5c4   : >> { %v9788_v45 = vpop.f32.mrf.mxu0 }
 0x5c5   : >> { %v6875_v34 = vpop.f32.mrf.mxu1 }
 0x5c6   : >> { %v9790_v19 = vpop.f32.mrf.mxu0  ;;  %v6876_v25 = vadd.f32 %v6875_v34, %v6874_v9  ;;  %v6910_v9 = vadd.f32 %v6909_v33, %v6908_v2 }
 0x5c7   : >> { %v6877_v6 = vpop.f32.mrf.mxu1  ;;  %v6913_v52 = vadd.f32 %v9790_v19, %v9788_v45 }
 0x5c8   : >> { %v6914_v23 = vpop.f32.mrf.mxu0  ;;  %v4879_v26 = vadd.f32 %v6910_v9, %v4814_v54 }
 0x5c9   : >> { %v6878_v62 = vpop.f32.mrf.mxu1 }
 0x5ca   : >> { %v6915_v38 = vpop.f32.mrf.mxu0  ;;  %v6879_v32 = vadd.f32 %v6878_v62, %v6877_v6 }
 0x5cb   : >> { %v6880_v56 = vpop.f32.mrf.mxu1  ;;  %v6916_v49 = vadd.f32 %v6915_v38, %v6914_v23 }
 0x5cc   : >> { %v6917_v46 = vpop.f32.mrf.mxu0 }
 0x5cd   : >> { %v6881_v10 = vpop.f32.mrf.mxu1 }
 0x5ce   : >> { %v6918_v51 = vpop.f32.mrf.mxu0  ;;  %v6882_v30 = vadd.f32 %v6881_v10, %v6880_v56 }
 0x5cf   : >> { %v9792_v41 = vpop.f32.mrf.mxu1  ;;  %v6919_v60 = vadd.f32 %v6918_v51, %v6917_v46 }
 0x5d0   : >> { %10308 = vst [vmem:[#allocation64_spill] sm:$0xff] %v9792_v41  ;;  %v9794_v47 = vpop.f32.mrf.mxu0  ;;  %v4757_v41 = vadd.f32 %v6836_v11, %v4692_v42  ;;  %v4700_v42 = vadd.f32 %v6802_v21, %v9799_v5  ;;  %v4760_v11 = vadd.f32 %v6839_v48, %v4695_v17 }
 0x5d1   : >> { %10309 = vst [vmem:[#allocation65_spill] sm:$0xff] %v9794_v47  ;;  %v9796_v15 = vpop.f32.mrf.mxu1  ;;  %v6808_v47 = vadd.f32 %v6807_v14, %v6806_v43  ;;  %v6873_v43 = vadd.f32 %v6872_v0, %v9786_v61 }
 0x5d2   : >> { %10310 = vst [vmem:[#allocation66_spill] sm:$0xff] %v9796_v15  ;;  %v6921_v7 = vpop.f32.mrf.mxu0  ;;  %v4822_v58 = vadd.f32 %v6876_v25, %v4757_v41  ;;  %v4765_v44 = vadd.f32 %v6842_v63, %v4700_v42  ;;  %v6811_v25 = vadd.f32 %v9780_v55, %v9778_v29  ;;  %v4825_v16 = vadd.f32 %v6879_v32, %v4760_v11  ;;  %v10311_v29 = vld [vmem:[#allocation62_spill] sm:$0xff]  ;;  %v10312_v55 = vld [vmem:[#allocation63_spill] sm:$0xff] }
 0x5d3   : >> { %v6886_v40 = vpop.f32.mrf.mxu1  ;;  %v4708_v27 = vadd.f32 %v6808_v47, %v9799_v5  ;;  %v6851_v47 = vadd.f32 %v9784_v13, %v9782_v4  ;;  %v6845_v61 = vadd.f32 %v10312_v55, %v10311_v29  ;;  %v4817_v23 = vadd.f32 %v6873_v43, %v4752_v59 }
 0x5d4   : >> { %v9802_v35 = vpop.f32.mrf.mxu0  ;;  %v4887_v1 = vadd.f32 %v6916_v49, %v4822_v58  ;;  %v4890_v0 = vadd.f32 %v6919_v60, %v4825_v16  ;;  %v4711_v6 = vadd.f32 %v6811_v25, %v9799_v5  ;;  %v4830_v41 = vadd.f32 %v6882_v30, %v4765_v44 }
 0x5d5   : >> { %v6887_v15 = vpop.f32.mrf.mxu1  ;;  %v4773_v31 = vadd.f32 %v6848_v22, %v4708_v27  ;;  %v4882_v57 = vadd.f32 %v6913_v52, %v4817_v23 }
 0x5d6   : >> { %v9805_v28 = vpop.f32.mrf.mxu0  ;;  %v6888_v14 = vadd.f32 %v6887_v15, %v6886_v40  ;;  %v4776_v51 = vadd.f32 %v6851_v47, %v4711_v6 }
 0x5d7   : >> { %v6889_v53 = vpop.f32.mrf.mxu1  ;;  %v10314_v20 = vld [vmem:[#allocation64_spill] sm:$0xff]  ;;  %v6925_v59 = vadd.f32 %v9805_v28, %v9802_v35 }
 0x5d8   : >> { %v6926_v50 = vpop.f32.mrf.mxu0  ;;  %v10313_v62 = vld [vmem:[#allocation65_spill] sm:$0xff]  ;;  %v4838_v4 = vadd.f32 %v6888_v14, %v4773_v31 }
 0x5d9   : >> { %v6890_v8 = vpop.f32.mrf.mxu1  ;;  %v6922_v38 = vadd.f32 %v6921_v7, %v10313_v62  ;;  %v4703_v7 = vadd.f32 %v6805_v37, %v9799_v5  ;;  %v10315_v24 = vld [vmem:[#allocation66_spill] sm:$0xff] }
 0x5da   : >> { %v6927_v18 = vpop.f32.mrf.mxu0  ;;  %v6891_v45 = vadd.f32 %v6890_v8, %v6889_v53  ;;  %v6885_v17 = vadd.f32 %v10315_v24, %v10314_v20 }
 0x5db   : >> { %v6998_v3 = vpop.f32.mrf.mxu1  ;;  %v6928_v33 = vadd.f32 %v6927_v18, %v6926_v50  ;;  %v4895_v22 = vadd.f32 %v6922_v38, %v4830_v41  ;;  %v4768_v50 = vadd.f32 %v6845_v61, %v4703_v7 }
 0x5dc   : >> { %v6929_v39 = vpop.f32.mrf.mxu0  ;;  %v9816_v2 = vadd.f32 %v6998_v3, %v4887_v1  ;;  %v4841_v9 = vadd.f32 %v6891_v45, %v4776_v51 }
 0x5dd   : >> { %v4943_v34 = vpop.f32.mrf.mxu1  ;;  %v4903_v36 = vadd.f32 %v6928_v33, %v4838_v4  ;;  %v4833_v27 = vadd.f32 %v6885_v17, %v4768_v50 }
 0x5de   : >> { %v4976_v40 = vmin.f32 %v9816_v2, 20.0  ;;  %v9825_v15 = vadd.f32 %v4943_v34, %v4879_v26  ;;  %v6930_v13 = vpop.f32.mrf.mxu0  ;;  %vm5016_vm0 = vcmp.gt.f32.partialorder %v9816_v2, 20.0 }
 0x5df   : >> { %v6999_v46 = vpop.f32.mrf.mxu1  ;;  %v6931_v21 = vadd.f32 %v6930_v13, %v6929_v39  ;;  %v4898_v25 = vadd.f32 %v6925_v59, %v4833_v27  ;;  %v7861_v27 = vld [vmem:[#allocation2 + $0x18] sm:$0xff] }
 0x5e0   : >> { %v4986_v19 = vmul.f32 1.442695, %v4976_v40  ;;  %v4974_v56 = vmin.f32 %v9825_v15, 20.0  ;;  %v9830_v10 = vadd.f32 %v6999_v46, %v4890_v0  ;;  %vm5014_vm1 = vcmp.gt.f32.partialorder %v9825_v15, 20.0 }
 0x5e1   : >> { %v4946_v12 = vpop.f32.mrf.mxu1  ;;  %v4906_v8 = vadd.f32 %v6931_v21, %v4841_v9 }
 0x5e2   : >> { %7829 = vpow2.f32 %v4986_v19  ;;  %v4982_v48 = vmul.f32 1.442695, %v4974_v56  ;;  %v4977_v49 = vmin.f32 %v9830_v10, 20.0  ;;  %v9836_v63 = vadd.f32 %v4946_v12, %v4882_v57 }
 0x5e3   : >> { %v7002_v53 = vpop.f32.mrf.mxu1  ;;  %vm5017_vm4 = vcmp.gt.f32.partialorder %v9830_v10, 20.0 }
 0x5e4   : >> { %7831 = vpow2.f32 %v4982_v48  ;;  %v4988_v58 = vmul.f32 1.442695, %v4977_v49  ;;  %v9838_v32 = vadd.f32 %v7002_v53, %v4903_v36  ;;  %v4975_v42 = vmin.f32 %v9836_v63, 20.0 }
 0x5e5   : >> { %v4959_v11 = vpop.f32.mrf.mxu1  ;;  %vm5015_vm5 = vcmp.gt.f32.partialorder %v9836_v63, 20.0 }
 0x5e6   : >> { %7833 = vpow2.f32 %v4988_v58  ;;  %v4980_v5 = vmin.f32 %v9838_v32, 20.0  ;;  %v9844_v37 = vadd.f32 %v4959_v11, %v4895_v22  ;;  %v4984_v54 = vmul.f32 1.442695, %v4975_v42 }
 0x5e7   : >> { %v7003_v60 = vpop.f32.mrf.mxu1  ;;  %vm5020_vm7 = vcmp.gt.f32.partialorder %v9838_v32, 20.0 }
 0x5e8   : >> { %v4994_v18 = vmul.f32 1.442695, %v4980_v5  ;;  %v4978_v1 = vmin.f32 %v9844_v37, 20.0  ;;  %v9847_v44 = vadd.f32 %v7003_v60, %v4906_v8  ;;  %7835 = vpow2.f32 %v4984_v54 }
 0x5e9   : >> { %v4962_v35 = vpop.f32.mrf.mxu1  ;;  %vm5018_vm8 = vcmp.gt.f32.partialorder %v9844_v37, 20.0 }
 0x5ea   : >> { %7837 = vpow2.f32 %v4994_v18  ;;  %v4990_v28 = vmul.f32 1.442695, %v4978_v1  ;;  %v4981_v43 = vmin.f32 %v9847_v44, 20.0  ;;  %v9850_v14 = vadd.f32 %v4962_v35, %v4898_v25 }
 0x5eb   : >> { %vm5021_vm10 = vcmp.gt.f32.partialorder %v9847_v44, 20.0 }
 0x5ec   : >> { %7839 = vpow2.f32 %v4990_v28  ;;  %v4996_v3 = vmul.f32 1.442695, %v4981_v43  ;;  %v4979_v31 = vmin.f32 %v9850_v14, 20.0  ;;  %v7862_v43 = vld [vmem:[#allocation2 + $0x30] sm:$0xff]  ;;  %vm5019_vm11 = vcmp.gt.f32.partialorder %v9850_v14, 20.0 }
 0x5ee   : >> { %7841 = vpow2.f32 %v4996_v3  ;;  %v4992_v39 = vmul.f32 1.442695, %v4979_v31 }
 0x5ef   : >> { %v7830_v16 = vpop.eup %7829 }
 0x5f0   : >> { %v5000_v26 = vadd.f32 1.0, %v7830_v16  ;;  %7843 = vpow2.f32 %v4992_v39 }
 0x5f1   : >> { %v7832_v47 = vpop.eup %7831 }
 0x5f2   : >> { %v5008_v52 = vmul.f32 %v5000_v26, %v5000_v26  ;;  %v4998_v30 = vadd.f32 1.0, %v7832_v47 }
 0x5f3   : >> { %v7834_v33 = vpop.eup %7833 }
 0x5f4   : >> { %v5032_v34 = vadd.f32 1.0, %v5008_v52  ;;  %v5006_v29 = vmul.f32 %v4998_v30, %v4998_v30  ;;  %v5001_v55 = vadd.f32 1.0, %v7834_v33  ;;  %v6527_v20 = vadd.f32 -1.0, %v5008_v52 }
 0x5f5   : >> { %v7836_v61 = vpop.eup %7835 }
 0x5f6   : >> { %7845 = vrcp.f32 %v5032_v34  ;;  %v5030_v40 = vadd.f32 1.0, %v5006_v29  ;;  %v5009_v0 = vmul.f32 %v5001_v55, %v5001_v55  ;;  %v4999_v23 = vadd.f32 1.0, %v7836_v61  ;;  %v7864_v61 = vld [vmem:[#allocation2] sm:$0xff] }
 0x5f7   : >> { %v7838_v6 = vpop.eup %7837  ;;  %v6525_v22 = vadd.f32 -1.0, %v5006_v29 }
 0x5f8   : >> { %7847 = vrcp.f32 %v5030_v40  ;;  %v5033_v62 = vadd.f32 1.0, %v5009_v0  ;;  %v5004_v38 = vadd.f32 1.0, %v7838_v6  ;;  %v5007_v13 = vmul.f32 %v4999_v23, %v4999_v23  ;;  %v7865_v23 = vld [vmem:[#allocation2 + $0x28] sm:$0xff] }
 0x5f9   : >> { %v7840_v4 = vpop.eup %7839  ;;  %v6528_v59 = vadd.f32 -1.0, %v5009_v0 }
 0x5fa   : >> { %7849 = vrcp.f32 %v5033_v62  ;;  %v5012_v46 = vmul.f32 %v5004_v38, %v5004_v38  ;;  %v5002_v45 = vadd.f32 1.0, %v7840_v4  ;;  %v5031_v56 = vadd.f32 1.0, %v5007_v13 }
 0x5fb   : >> { %v7842_v19 = vpop.eup %7841  ;;  %v6526_v18 = vadd.f32 -1.0, %v5007_v13 }
 0x5fc   : >> { %v5036_v51 = vadd.f32 1.0, %v5012_v46  ;;  %v5010_v41 = vmul.f32 %v5002_v45, %v5002_v45  ;;  %v5005_v57 = vadd.f32 1.0, %v7842_v19  ;;  %7851 = vrcp.f32 %v5031_v56  ;;  %v7867_v56 = vld [vmem:[#allocation2 + $0x38] sm:$0xff] }
 0x5fd   : >> { %v7844_v12 = vpop.eup %7843  ;;  %v6531_v35 = vadd.f32 -1.0, %v5012_v46  ;;  %v7866_v46 = vld [vmem:[#allocation2 + $0x8] sm:$0xff] }
 0x5fe   : >> { %7853 = vrcp.f32 %v5036_v51  ;;  %v5034_v36 = vadd.f32 1.0, %v5010_v41  ;;  %v5013_v21 = vmul.f32 %v5005_v57, %v5005_v57  ;;  %v5003_v48 = vadd.f32 1.0, %v7844_v12  ;;  %v7868_v57 = vld [vmem:[#allocation2 + $0x20] sm:$0xff] }
 0x5ff   : >> { %v6529_v39 = vadd.f32 -1.0, %v5010_v41 }
 0x600   : >> { %7855 = vrcp.f32 %v5034_v36  ;;  %v5037_v49 = vadd.f32 1.0, %v5013_v21  ;;  %v5011_v7 = vmul.f32 %v5003_v48, %v5003_v48  ;;  %v6532_v29 = vadd.f32 -1.0, %v5013_v21  ;;  %v10316_v36 = vld [vmem:[#allocation61_spill] sm:$0xff] (%p2977_p5)  ;;  %v10317_v21 = vld [vmem:[#allocation60_spill] sm:$0xff] (%p2977_p5) }
 0x601   : > { %v10318_v48 = vpack.c.bf16 (%p2977_p5), %v10316_v36, %v10317_v21 }
 0x602   : >> { %7857 = vrcp.f32 %v5037_v49  ;;  %v5035_v17 = vadd.f32 1.0, %v5011_v7  ;;  %v7870_v49 = vld [vmem:[#allocation22 + $0x30] sm:$0xff] (%p2977_p5)  }
 0x603   : >> { %v7846_v24 = vpop.eup %7845  ;;  %5570 = vmatprep.mubr.bf16.mxu1 (%p2977_p5), %v10318_v48 }
 0x604   : >> { %v5048_v53 = vmul.f32 %v7846_v24, %v6527_v20  ;;  %7859 = vrcp.f32 %v5035_v17 }
 0x605   : >> { %v7848_v9 = vpop.eup %7847 }
 0x606   : >> { %v5056_v58 = vsel %vm5016_vm0, 1.0, %v5048_v53  ;;  %v5046_v50 = vmul.f32 %v7848_v9, %v6525_v22  ;;  %v7873_v53 = vld [vmem:[#allocation22 + $0x18] sm:$0xff] (%p2977_p5)  }
 0x607   : >> { %v7850_v42 = vpop.eup %7849  ;;  %v5064_v11 = vmul.f32 %v5056_v58, %v9816_v2  ;;  %v7877_v22 = vld [vmem:[#allocation25 + $0x74] ss:$8 sps:$4 sm:$0xff] (%p2977_p5)   ;;  %v7879_v9 = vld [vmem:[#allocation25 + $0x70] ss:$8 sps:$4 sm:$0xff] (%p2977_p5)   ;;  %v7880_v58 = vld [vmem:[#allocation25 + $0x64] ss:$8 sps:$4 sm:$0xff] (%p2977_p5)  }
 0x608   : >> { %v5054_v5 = vsel %vm5014_vm1, 1.0, %v5046_v50  ;;  %v5049_v8 = vmul.f32 %v7850_v42, %v6528_v59  ;;  %5538 = vmatprep.subr.bf16.mxu1 (%p2977_p5), %v7877_v22  ;;  %v7874_v50 = vld [vmem:[#allocation22 + $0x10] sm:$0xff] (%p2977_p5)   ;;  %v7882_v59 = vld [vmem:[#allocation25 + $0x60] ss:$8 sps:$4 sm:$0xff] (%p2977_p5)  }
 0x609   : >> { %v5072_v54 = vadd.f32 %v7861_v27, %v5064_v11  ;;  %v5062_v60 = vmul.f32 %v5054_v5, %v9825_v15  ;;  %v7852_v1 = vpop.eup %7851  ;;  %v7863_v15 = vld [vmem:[#allocation2 + $0x10] sm:$0xff]  ;;  %5539 = vmatpush1.bf16.msra.mxu1 (%p2977_p5), %v7879_v9  ;;  %v7875_v5 = vld [vmem:[#allocation22 + $0x8] sm:$0xff] (%p2977_p5)  }
 0x60a   : >> { %v5057_v25 = vsel %vm5017_vm4, 1.0, %v5049_v8  ;;  %v5047_v31 = vmul.f32 %v7852_v1, %v6526_v18  ;;  %v7883_v42 = vld [vmem:[#allocation25 + $0x54] ss:$8 sps:$4 sm:$0xff] (%p2977_p5)   ;;  %5540 = vmatprep.subr.bf16.mxu1 (%p2977_p5), %v7880_v58  ;;  %v7885_v11 = vld [vmem:[#allocation25 + $0x50] ss:$8 sps:$4 sm:$0xff] (%p2977_p5)  }
 0x60b   : >> { %v7854_v28 = vpop.eup %7853  ;;  %5080 = vst [vmem:[#allocation2 + $0x18] sm:$0xff] %v5072_v54  ;;  %v5070_v3 = vadd.f32 %v7862_v43, %v5062_v60  ;;  %v5065_v2 = vmul.f32 %v5057_v25, %v9830_v10  ;;  %v7876_v8 = vld [vmem:[#allocation22] sm:$0xff] (%p2977_p5)  }
 0x60c   : >> { %v5052_v16 = vmul.f32 %v7854_v28, %v6531_v35  ;;  %v5055_v52 = vsel %vm5015_vm5, 1.0, %v5047_v31  ;;  %v7889_v31 = vld [vmem:[#allocation25 + $0x34] ss:$8 sps:$4 sm:$0xff] (%p2977_p5)  }
 0x60d   : >> { %v7856_v26 = vpop.eup %7855  ;;  %5078 = vst [vmem:[#allocation2 + $0x30] sm:$0xff] %v5070_v3  ;;  %v5073_v47 = vadd.f32 %v7863_v15, %v5065_v2  ;;  %v5063_v30 = vmul.f32 %v5055_v52, %v9836_v63  ;;  %v6530_v63 = vadd.f32 -1.0, %v5011_v7  ;;  %v7872_v7 = vld [vmem:[#allocation22 + $0x20] sm:$0xff] (%p2977_p5)   ;;  %5541 = vmatpush1.bf16.msra.mxu1 (%p2977_p5), %v7882_v59 }
 0x60e   : >> { %v5060_v33 = vsel %vm5020_vm7, 1.0, %v5052_v16  ;;  %v5050_v34 = vmul.f32 %v7856_v26, %v6529_v39  ;;  %5542 = vmatprep.subr.bf16.mxu1 (%p2977_p5), %v7883_v42  ;;  %v7886_v3 = vld [vmem:[#allocation25 + $0x44] ss:$8 sps:$4 sm:$0xff] (%p2977_p5)   ;;  %v7888_v2 = vld [vmem:[#allocation25 + $0x40] ss:$8 sps:$4 sm:$0xff] (%p2977_p5)  }
 0x60f   : >> { %v7858_v55 = vpop.eup %7857  ;;  %5081 = vst [vmem:[#allocation2 + $0x10] sm:$0xff] %v5073_v47  ;;  %v5068_v10 = vmul.f32 %v5060_v33, %v9838_v32  ;;  %v5071_v40 = vadd.f32 %v7864_v61, %v5063_v30  ;;  %v7891_v16 = vld [vmem:[#allocation25 + $0x30] ss:$8 sps:$4 sm:$0xff] (%p2977_p5)   ;;  %v7892_v39 = vld [vmem:[#allocation25 + $0x24] ss:$8 sps:$4 sm:$0xff] (%p2977_p5)  }
 0x610   : >> { %v5058_v0 = vsel %vm5018_vm8, 1.0, %v5050_v34  ;;  %v5053_v6 = vmul.f32 %v7858_v55, %v6532_v29  ;;  %v7894_v26 = vld [vmem:[#allocation25 + $0x20] ss:$8 sps:$4 sm:$0xff] (%p2977_p5)   ;;  %v7895_v15 = vld [vmem:[#allocation25 + $0x14] ss:$8 sps:$4 sm:$0xff] (%p2977_p5)  }
 0x611   : >> { %v5076_v62 = vadd.f32 %v7865_v23, %v5068_v10  ;;  %v5066_v38 = vmul.f32 %v5058_v0, %v9844_v37  ;;  %v7860_v4 = vpop.eup %7859  ;;  %5079 = vst [vmem:[#allocation2] sm:$0xff] %v5071_v40  ;;  %5543 = vmatpush1.bf16.msra.mxu1 (%p2977_p5), %v7885_v11  ;;  %v7897_v47 = vld [vmem:[#allocation25 + $0x10] ss:$8 sps:$4 sm:$0xff] (%p2977_p5)   ;;  %v7898_v52 = vld [vmem:[#allocation25 + $0x4] ss:$8 sps:$4 sm:$0xff] (%p2977_p5)  }
 0x612   : >> { %v5061_v13 = vsel %vm5021_vm10, 1.0, %v5053_v6  ;;  %v5051_v19 = vmul.f32 %v7860_v4, %v6530_v63  ;;  %v5088_v27 = vld [vmem:[#allocation2 + $0x18] sm:$0xff] (%p2977_p5)  ;;  %5544 = vmatprep.subr.bf16.mxu1 (%p2977_p5), %v7886_v3  ;;  %v7901_v33 = vld [vmem:[#allocation25 + $0xf4] ss:$8 sps:$4 sm:$0xff] (%p2977_p5)   ;;  %v7903_v34 = vld [vmem:[#allocation25 + $0xf0] ss:$8 sps:$4 sm:$0xff] (%p2977_p5)  }
 0x613   : >> { %5084 = vst [vmem:[#allocation2 + $0x28] sm:$0xff] %v5076_v62  ;;  %v5074_v45 = vadd.f32 %v7866_v46, %v5066_v38  ;;  %v5069_v32 = vmul.f32 %v5061_v13, %v9847_v44  ;;  %v7869_v44 = vld [vmem:[#allocation22 + $0x38] sm:$0xff] (%p2977_p5)   ;;  %v7900_v30 = vld [vmem:[#allocation25] ss:$8 sps:$4 sm:$0xff] (%p2977_p5)   ;;  %v7904_v29 = vld [vmem:[#allocation25 + $0xe4] ss:$8 sps:$4 sm:$0xff] (%p2977_p5)  }
 0x614   : >> { %v5059_v41 = vsel %vm5019_vm11, 1.0, %v5051_v19  ;;  %7004 = vmatprep.subr.bf16.mxu0 (%p2977_p5), %v7869_v44  ;;  %v5086_v20 = vld [vmem:[#allocation2 + $0x30] sm:$0xff] (%p2977_p5)  ;;  %v7906_v55 = vld [vmem:[#allocation25 + $0xe0] ss:$8 sps:$4 sm:$0xff] (%p2977_p5)   ;;  %v7910_v40 = vld [vmem:[#allocation25 + $0xc4] ss:$8 sps:$4 sm:$0xff] (%p2977_p5)  }
 0x615   : >> { %5082 = vst [vmem:[#allocation2 + $0x8] sm:$0xff] %v5074_v45  ;;  %v5077_v51 = vadd.f32 %v7867_v56, %v5069_v32  ;;  %v5067_v37 = vmul.f32 %v5059_v41, %v9850_v14  ;;  %7005 = vmatpush3.bf16.msra.mxu0 (%p2977_p5), %v7869_v44  ;;  %v7871_v14 = vld [vmem:[#allocation22 + $0x28] sm:$0xff] (%p2977_p5)   ;;  %5545 = vmatpush1.bf16.msra.mxu1 (%p2977_p5), %v7888_v2  ;;  %v7907_v10 = vld [vmem:[#allocation25 + $0xd4] ss:$8 sps:$4 sm:$0xff] (%p2977_p5)   ;;  %v7909_v61 = vld [vmem:[#allocation25 + $0xd0] ss:$8 sps:$4 sm:$0xff] (%p2977_p5)  }
 0x616   : > { %7006 = vmatprep.subr.bf16.mxu0 (%p2977_p5), %v7870_v49  ;;  %v5089_v54 = vld [vmem:[#allocation2 + $0x10] sm:$0xff] (%p2977_p5)  ;;  %5546 = vmatprep.subr.bf16.mxu1 (%p2977_p5), %v7889_v31  ;;  %v7912_v0 = vld [vmem:[#allocation25 + $0xc0] ss:$8 sps:$4 sm:$0xff] (%p2977_p5)   ;;  %v7916_v62 = vld [vmem:[#allocation25 + $0xa4] ss:$8 sps:$4 sm:$0xff] (%p2977_p5)  }
 0x617   : >> { %5085 = vst [vmem:[#allocation2 + $0x38] sm:$0xff] %v5077_v51  ;;  %v5075_v12 = vadd.f32 %v7868_v57, %v5067_v37  ;;  %v5095_v1 = vpack.c.bf16 (%p2977_p5), %v5089_v54, %v5088_v27  ;;  %v7913_v6 = vld [vmem:[#allocation25 + $0xb4] ss:$8 sps:$4 sm:$0xff] (%p2977_p5)   ;;  %v7915_v23 = vld [vmem:[#allocation25 + $0xb0] ss:$8 sps:$4 sm:$0xff] (%p2977_p5)  }
 0x618   : > { %v5087_v24 = vld [vmem:[#allocation2] sm:$0xff] (%p2977_p5)  ;;  %v7919_v63 = vld [vmem:[#allocation25 + $0x94] ss:$8 sps:$4 sm:$0xff] (%p2977_p5)   ;;  %v7921_v4 = vld [vmem:[#allocation25 + $0x90] ss:$8 sps:$4 sm:$0xff] (%p2977_p5)  }
 0x619   : >> { %5083 = vst [vmem:[#allocation2 + $0x20] sm:$0xff] %v5075_v12  ;;  %2979 = sbr.rel (!%p2977_p5) target bundleno = 938 (0x3aa), region = 183  ;;  %7007 = vmatpush3.bf16.msra.mxu0 (%p2977_p5), %v7870_v49  ;;  %v5094_v17 = vpack.c.bf16 (%p2977_p5), %v5087_v24, %v5086_v20  ;;  %5547 = vmatpush1.bf16.msra.mxu1 (%p2977_p5), %v7891_v16  ;;  %v7918_v38 = vld [vmem:[#allocation25 + $0xa0] ss:$8 sps:$4 sm:$0xff] (%p2977_p5)   ;;  %v7922_v13 = vld [vmem:[#allocation25 + $0x84] ss:$8 sps:$4 sm:$0xff] (%p2977_p5)  }
 0x61a   : > { %7008 = vmatprep.subr.bf16.mxu0 (%p2977_p5), %v7871_v14  ;;  %v5092_v35 = vld [vmem:[#allocation2 + $0x28] sm:$0xff] (%p2977_p5)  ;;  %5548 = vmatprep.subr.bf16.mxu1 (%p2977_p5), %v7892_v39  ;;  %v7924_v46 = vld [vmem:[#allocation25 + $0x80] ss:$8 sps:$4 sm:$0xff] (%p2977_p5)   ;;  %v6533_v45 = vld [vmem:[#allocation23] ss:$0 sm:$0xff] (%p2977_p5) }
 0x61b   : > { %7020 = vmatprep.mubr.bf16.mxu0 (%p2977_p5), %v5094_v17 }
 0x61c   : > { %v5090_v60 = vld [vmem:[#allocation2 + $0x8] sm:$0xff] (%p2977_p5) }
 0x61d   : > { %7009 = vmatpush3.bf16.msra.mxu0 (%p2977_p5), %v7871_v14  ;;  %5549 = vmatpush1.bf16.msra.mxu1 (%p2977_p5), %v7894_v26 }
 0x61e   : > { %7010 = vmatprep.subr.bf16.mxu0 %v7872_v7  ;;  %v5093_v28 = vld [vmem:[#allocation2 + $0x38] sm:$0xff]  ;;  %5550 = vmatprep.subr.bf16.mxu1 %v7895_v15 }
 0x61f   : > { %v5097_v43 = vpack.c.bf16 %v5093_v28, %v5092_v35 }
 0x620   : > { %v5091_v18 = vld [vmem:[#allocation2 + $0x20] sm:$0xff] }
 0x621   : > { %7011 = vmatpush3.bf16.msra.mxu0 %v7872_v7  ;;  %v5096_v25 = vpack.c.bf16 %v5091_v18, %v5090_v60  ;;  %5551 = vmatpush1.bf16.msra.mxu1 %v7897_v47 }
 0x622   : > { %7012 = vmatprep.subr.bf16.mxu0 %v7873_v53  ;;  %5552 = vmatprep.subr.bf16.mxu1 %v7898_v52 }
 0x625   : > { %7013 = vmatpush3.bf16.msra.mxu0 %v7873_v53  ;;  %5553 = vmatpush1.bf16.msra.mxu1 %v7900_v30 }
 0x626   : > { %7014 = vmatprep.subr.bf16.mxu0 %v7874_v50  ;;  %5554 = vmatprep.subr.bf16.mxu1 %v7901_v33 }
 0x629   : > { %7015 = vmatpush3.bf16.msra.mxu0 %v7874_v50  ;;  %5555 = vmatpush2.bf16.msra.mxu1 %v7903_v34 }
 0x62a   : > { %7016 = vmatprep.subr.bf16.mxu0 %v7875_v5  ;;  %5556 = vmatprep.subr.bf16.mxu1 %v7904_v29 }
 0x62d   : > { %7017 = vmatpush3.bf16.msra.mxu0 %v7875_v5  ;;  %5557 = vmatpush2.bf16.msra.mxu1 %v7906_v55 }
 0x62e   : > { %7018 = vmatprep.subr.bf16.mxu0 %v7876_v8  ;;  %5558 = vmatprep.subr.bf16.mxu1 %v7907_v10 }
 0x631   : > { %7019 = vmatpush3.bf16.msra.mxu0 %v7876_v8  ;;  %5559 = vmatpush2.bf16.msra.mxu1 %v7909_v61 }
 0x632   : > { %5560 = vmatprep.subr.bf16.mxu1 %v7910_v40 }
 0x634   : > { %7021 = vmatmul.mubr.bf16.vlgmr.msra.gmra.mxu0 %v5095_v1 }
 0x635   : > { %7024 = vmatprep.mubr.bf16.mxu0 %v5096_v25  ;;  %5561 = vmatpush2.bf16.msra.mxu1 %v7912_v0 }
 0x636   : > { %5562 = vmatprep.subr.bf16.mxu1 %v7913_v6 }
 0x639   : > { %5563 = vmatpush2.bf16.msra.mxu1 %v7915_v23 }
 0x63a   : > { %5564 = vmatprep.subr.bf16.mxu1 %v7916_v62 }
 0x63c   : > { %7025 = vmatmul.mubr.bf16.gmra.mxu0 %v5097_v43 }
 0x63d   : > { %5565 = vmatpush2.bf16.msra.mxu1 %v7918_v38 }
 0x63e   : > { %5566 = vmatprep.subr.bf16.mxu1 %v7919_v63 }
 0x641   : > { %5567 = vmatpush2.bf16.msra.mxu1 %v7921_v4 }
 0x642   : > { %5568 = vmatprep.subr.bf16.mxu1 %v7922_v13 }
 0x645   : > { %5569 = vmatpush2.bf16.msra.mxu1 %v7924_v46 }
 0x6f4   : > { %v7022_v32 = vpop.f32.mrf.mxu0 }
 0x6f5   : > { %v9875_v19 = vadd.f32 %v7022_v32, %v6533_v45 }
 0x6f6   : > { %v5203_v56 = vpop.f32.mrf.mxu0 }
 0x6f7   : > { %v5236_v51 = vmin.f32 %v9875_v19, 20.0  ;;  %v9878_v41 = vadd.f32 %v6533_v45, %v5203_v56  ;;  %vm5276_vm6 = vcmp.gt.f32.partialorder %v9875_v19, 20.0 }
 0x6f8   : > { %v7023_v37 = vpop.f32.mrf.mxu0 }
 0x6f9   : > { %v5246_v57 = vmul.f32 1.442695, %v5236_v51  ;;  %v5234_v12 = vmin.f32 %v9878_v41, 20.0  ;;  %v9881_v44 = vadd.f32 %v7023_v37, %v6533_v45  ;;  %vm5274_vm14 = vcmp.gt.f32.partialorder %v9878_v41, 20.0 }
 0x6fa   : > { %v5206_v36 = vpop.f32.mrf.mxu0 }
 0x6fb   : > { %v5242_v21 = vmul.f32 1.442695, %v5234_v12  ;;  %v5237_v48 = vmin.f32 %v9881_v44, 20.0  ;;  %7925 = vpow2.f32 %v5246_v57  ;;  %v9884_v49 = vadd.f32 %v6533_v45, %v5206_v36 }
 0x6fc   : > { %v7026_v14 = vpop.f32.mrf.mxu0  ;;  %vm5277_vm2 = vcmp.gt.f32.partialorder %v9881_v44, 20.0 }
 0x6fd   : > { %7927 = vpow2.f32 %v5242_v21  ;;  %v5248_v7 = vmul.f32 1.442695, %v5237_v48  ;;  %v5235_v20 = vmin.f32 %v9884_v49, 20.0  ;;  %v9889_v22 = vadd.f32 %v7026_v14, %v6533_v45 }
 0x6fe   : > { %v5219_v24 = vpop.f32.mrf.mxu0  ;;  %vm5275_vm15 = vcmp.gt.f32.partialorder %v9884_v49, 20.0 }
 0x6ff   : > { %7929 = vpow2.f32 %v5248_v7  ;;  %v9887_v17 = vadd.f32 %v6533_v45, %v5219_v24  ;;  %v5244_v53 = vmul.f32 1.442695, %v5235_v20  ;;  %v5240_v5 = vmin.f32 %v9889_v22, 20.0 }
 0x700   : > { %v7027_v9 = vpop.f32.mrf.mxu0  ;;  %vm5280_vm9 = vcmp.gt.f32.partialorder %v9889_v22, 20.0 }
 0x701   : > { %v5238_v58 = vmin.f32 %v9887_v17, 20.0  ;;  %v9892_v50 = vadd.f32 %v7027_v9, %v6533_v45  ;;  %7931 = vpow2.f32 %v5244_v53  ;;  %v5254_v60 = vmul.f32 1.442695, %v5240_v5 }
 0x702   : > { %v5222_v59 = vpop.f32.mrf.mxu0  ;;  %vm5278_vm13 = vcmp.gt.f32.partialorder %v9887_v17, 20.0 }
 0x703   : > { %v5250_v42 = vmul.f32 1.442695, %v5238_v58  ;;  %v5241_v11 = vmin.f32 %v9892_v50, 20.0  ;;  %v9896_v8 = vadd.f32 %v6533_v45, %v5222_v59  ;;  %vm5281_vm3 = vcmp.gt.f32.partialorder %v9892_v50, 20.0 }
 0x705   : > { %7933 = vpow2.f32 %v5250_v42  ;;  %v5256_v27 = vmul.f32 1.442695, %v5241_v11  ;;  %v5239_v54 = vmin.f32 %v9896_v8, 20.0  ;;  %vm5279_vm12 = vcmp.gt.f32.partialorder %v9896_v8, 20.0 }
 0x707   : > { %v5252_v18 = vmul.f32 1.442695, %v5239_v54  ;;  %7935 = vpow2.f32 %v5256_v27  ;;  %v10319_v54 = vld [vmem:[#allocation45_spill] sm:$0xff] }
 0x708   : > { %v7926_v1 = vpop.eup %7925 }
 0x709   : > { %7937 = vpow2.f32 %v5252_v18  ;;  %v5260_v43 = vadd.f32 1.0, %v7926_v1 }
 0x70a   : > { %v7928_v25 = vpop.eup %7927  ;;  %7939 = vpow2.f32 %v5254_v60  ;;  %v10320_v60 = vld [vmem:[#allocation44_spill] sm:$0xff] }
 0x70b   : > { %v5258_v35 = vadd.f32 1.0, %v7928_v25  ;;  %v5268_v26 = vmul.f32 %v5260_v43, %v5260_v43  ;;  %v10321_v18 = vpack.c.bf16 %v10319_v54, %v10320_v60 }
 0x70c   : > { %v7930_v28 = vpop.eup %7929 }
 0x70d   : > { %v5266_v3 = vmul.f32 %v5258_v35, %v5258_v35  ;;  %v5261_v2 = vadd.f32 1.0, %v7930_v28  ;;  %v5292_v33 = vadd.f32 1.0, %v5268_v26  ;;  %v6544_v7 = vadd.f32 -1.0, %v5268_v26  ;;  %v10323_v26 = vld [vmem:[#allocation46_spill] sm:$0xff] }
 0x70e   : > { %v7932_v31 = vpop.eup %7931 }
 0x70f   : > { %v5290_v16 = vadd.f32 1.0, %v5266_v3  ;;  %v5269_v39 = vmul.f32 %v5261_v2, %v5261_v2  ;;  %v5259_v15 = vadd.f32 1.0, %v7932_v31  ;;  %v6542_v13 = vadd.f32 -1.0, %v5266_v3 }
 0x711   : > { %7941 = vrcp.f32 %v5290_v16  ;;  %v5293_v47 = vadd.f32 1.0, %v5269_v39  ;;  %v5267_v30 = vmul.f32 %v5259_v15, %v5259_v15  ;;  %v6545_v36 = vadd.f32 -1.0, %v5269_v39  ;;  %v10322_v39 = vld [vmem:[#allocation47_spill] sm:$0xff] }
 0x712   : > { %v7934_v52 = vpop.eup %7933  ;;  %v10324_v15 = vpack.c.bf16 %v10322_v39, %v10323_v26 }
 0x713   : > { %v5291_v34 = vadd.f32 1.0, %v5267_v30  ;;  %v5262_v29 = vadd.f32 1.0, %v7934_v52  ;;  %7943 = vrcp.f32 %v5293_v47  ;;  %v6543_v51 = vadd.f32 -1.0, %v5267_v30 }
 0x714   : > { %v7936_v55 = vpop.eup %7935 }
 0x715   : > { %7945 = vrcp.f32 %v5291_v34  ;;  %v5270_v61 = vmul.f32 %v5262_v29, %v5262_v29  ;;  %v5265_v6 = vadd.f32 1.0, %v7936_v55 }
 0x716   : > { %v7938_v10 = vpop.eup %7937  ;;  %7947 = vrcp.f32 %v5292_v33 }
 0x717   : > { %v5263_v40 = vadd.f32 1.0, %v7938_v10  ;;  %v7940_v0 = vpop.eup %7939  ;;  %v5294_v38 = vadd.f32 1.0, %v5270_v61  ;;  %v5273_v46 = vmul.f32 %v5265_v6, %v5265_v6  ;;  %v10325_v10 = vld [vmem:[#allocation49_spill] sm:$0xff] }
 0x718   : > { %v5264_v62 = vadd.f32 1.0, %v7940_v0 }
 0x719   : > { %v5271_v23 = vmul.f32 %v5263_v40, %v5263_v40  ;;  %v5297_v37 = vadd.f32 1.0, %v5273_v46  ;;  %v6549_v16 = vadd.f32 -1.0, %v5273_v46 }
 0x71a   : > { %v5272_v32 = vmul.f32 %v5264_v62, %v5264_v62 }
 0x71b   : > { %v5295_v63 = vadd.f32 1.0, %v5271_v23  ;;  %v6547_v27 = vadd.f32 -1.0, %v5271_v23  ;;  %v10328_v23 = vld [vmem:[#allocation59_spill] sm:$0xff] }
 0x71c   : > { %v5296_v48 = vadd.f32 1.0, %v5272_v32  ;;  %v6548_v52 = vadd.f32 -1.0, %v5272_v32  ;;  %v10329_v62 = vsub.s32 0, %v10328_v23 }
 0x71d   : > { %7949 = vrcp.f32 %v5295_v63  ;;  %v10330_v63 = vsub.s32 1, %v10328_v23 }
 0x71e   : > { %v7942_v4 = vpop.eup %7941  ;;  %7951 = vrcp.f32 %v5294_v38 }
 0x71f   : > { %v5306_v45 = vmul.f32 %v7942_v4, %v6542_v13  ;;  %7953 = vrcp.f32 %v5297_v37 }
 0x720   : > { %v7944_v56 = vpop.eup %7943  ;;  %7955 = vrcp.f32 %v5296_v48 }
 0x721   : > { %v5314_v12 = vsel %vm5274_vm14, 1.0, %v5306_v45  ;;  %v5309_v20 = vmul.f32 %v7944_v56, %v6545_v36 }
 0x722   : > { %v7946_v57 = vpop.eup %7945  ;;  %v5322_v53 = vmul.f32 %v5314_v12, %v9878_v41 }
 0x723   : > { %v5307_v21 = vmul.f32 %v7946_v57, %v6543_v51  ;;  %v7948_v14 = vpop.eup %7947  ;;  %v5317_v42 = vsel %vm5277_vm2, 1.0, %v5309_v20 }
 0x724   : > { %v5308_v58 = vmul.f32 %v7948_v14, %v6544_v7  ;;  %v5325_v41 = vmul.f32 %v5317_v42, %v9881_v44 }
 0x725   : > { %v5315_v24 = vsel %vm5275_vm15, 1.0, %v5307_v21 }
 0x726   : > { %v5323_v9 = vmul.f32 %v5315_v24, %v9884_v49  ;;  %v5316_v5 = vsel %vm5276_vm6, 1.0, %v5308_v58  ;;  %v6546_v49 = vadd.f32 -1.0, %v5270_v61  ;;  %v10326_v61 = vld [vmem:[#allocation48_spill] sm:$0xff] }
 0x727   : > { %v5324_v35 = vmul.f32 %v5316_v5, %v9875_v19  ;;  %v10327_v40 = vpack.c.bf16 %v10325_v10, %v10326_v61 }
 0x728   : > { %v5330_v59 = vpack.c.bf16 %v5323_v9, %v5322_v53 }
 0x729   : > { %v5331_v43 = vpack.c.bf16 %v5325_v41, %v5324_v35 }
 0x72a   : > { %v7950_v11 = vpop.eup %7949  ;;  %5571 = vmatmul.mubr.bf16.vlgmr.msra.gmra.mxu1 %v5330_v59 }
 0x72b   : > { %5580 = vmatprep.mubr.bf16.mxu1 %v10321_v18  ;;  %v7952_v1 = vpop.eup %7951  ;;  %v5311_v25 = vmul.f32 %v7950_v11, %v6547_v27 }
 0x72c   : > { %v5310_v28 = vmul.f32 %v7952_v1, %v6546_v49  ;;  %v7954_v2 = vpop.eup %7953 }
 0x72d   : > { %v5319_v3 = vsel %vm5279_vm12, 1.0, %v5311_v25  ;;  %v7956_v44 = vpop.eup %7955  ;;  %v5313_v19 = vmul.f32 %v7954_v2, %v6549_v16 }
 0x72e   : > { %v5318_v31 = vsel %vm5278_vm13, 1.0, %v5310_v28  ;;  %v5327_v47 = vmul.f32 %v5319_v3, %v9896_v8  ;;  %v5312_v33 = vmul.f32 %v7956_v44, %v6548_v52 }
 0x72f   : > { %v5326_v30 = vmul.f32 %v5318_v31, %v9887_v17  ;;  %v5321_v29 = vsel %vm5281_vm3, 1.0, %v5313_v19  ;;  %v5366_v17 = vld [vmem:[#allocation26] sm:$0x3] }
 0x730   : > { %v5320_v55 = vsel %vm5280_vm9, 1.0, %v5312_v33  ;;  %v5329_v0 = vmul.f32 %v5321_v29, %v9892_v50  ;;  %v9926_v38 = vrot.slane %v5366_v17, %v10329_v62  ;;  %v9930_v4 = vrot.slane %v5366_v17, %v10330_v63 }
 0x731   : > { %v5332_v34 = vpack.c.bf16 %v5327_v47, %v5326_v30  ;;  %v5328_v8 = vmul.f32 %v5320_v55, %v9889_v22 }
 0x732   : > { %5581 = vmatmul.mubr.bf16.gmra.mxu1 %v5331_v43 }
 0x733   : > { %5590 = vmatprep.mubr.bf16.mxu1 %v10324_v15  ;;  %v5333_v6 = vpack.c.bf16 %v5329_v0, %v5328_v8 }
 0x73a   : > { %5591 = vmatmul.mubr.bf16.gmra.mxu1 %v5332_v34 }
 0x73b   : > { %5600 = vmatprep.mubr.bf16.mxu1 %v10327_v40 }
 0x742   : > { %5601 = vmatmul.mubr.bf16.gmra.mxu1 %v5333_v6 }
 0x7ea   : > { %v5572_v13 = vpop.f32.mrf.mxu1 }
 0x7eb   : > { %v9933_v46 = vadd.f32 %v5572_v13, %v9926_v38 }
 0x7ec   : > { %v5574_v45 = vpop.f32.mrf.mxu1 }
 0x7ed   : > { %v5611_v50 = vmin.f32 %v9933_v46, 20.0  ;;  %v9937_v22 = vadd.f32 %v5574_v45, %v9930_v4  ;;  %vm5691_vm0 = vcmp.gt.f32.partialorder %v9933_v46, 20.0 }
 0x7ee   : > { %v5576_v32 = vpop.f32.mrf.mxu1 }
 0x7ef   : > { %v5627_v56 = vmul.f32 1.442695, %v5611_v50  ;;  %v5612_v51 = vmin.f32 %v9937_v22, 20.0  ;;  %v9941_v37 = vadd.f32 %v5576_v32, %v9926_v38  ;;  %vm5692_vm1 = vcmp.gt.f32.partialorder %v9937_v22, 20.0 }
 0x7f0   : > { %v5578_v57 = vpop.f32.mrf.mxu1 }
 0x7f1   : > { %7957 = vpow2.f32 %v5627_v56  ;;  %v5629_v12 = vmul.f32 1.442695, %v5612_v51  ;;  %v5613_v36 = vmin.f32 %v9941_v37, 20.0  ;;  %v9945_v21 = vadd.f32 %v5578_v57, %v9930_v4 }
 0x7f2   : > { %v5582_v48 = vpop.f32.mrf.mxu1  ;;  %vm5693_vm4 = vcmp.gt.f32.partialorder %v9941_v37, 20.0 }
 0x7f3   : > { %7959 = vpow2.f32 %v5629_v12  ;;  %v5631_v14 = vmul.f32 1.442695, %v5613_v36  ;;  %v9948_v7 = vadd.f32 %v5582_v48, %v9926_v38  ;;  %v5614_v20 = vmin.f32 %v9945_v21, 20.0 }
 0x7f4   : > { %v5584_v24 = vpop.f32.mrf.mxu1  ;;  %vm5694_vm5 = vcmp.gt.f32.partialorder %v9945_v21, 20.0 }
 0x7f5   : > { %7961 = vpow2.f32 %v5631_v14  ;;  %v5615_v53 = vmin.f32 %v9948_v7, 20.0  ;;  %v9953_v9 = vadd.f32 %v5584_v24, %v9930_v4  ;;  %v5633_v58 = vmul.f32 1.442695, %v5614_v20 }
 0x7f6   : > { %v5586_v59 = vpop.f32.mrf.mxu1  ;;  %vm5695_vm7 = vcmp.gt.f32.partialorder %v9948_v7, 20.0 }
 0x7f7   : > { %v5635_v42 = vmul.f32 1.442695, %v5615_v53  ;;  %v5616_v11 = vmin.f32 %v9953_v9, 20.0  ;;  %v9957_v5 = vadd.f32 %v5586_v59, %v9926_v38  ;;  %7963 = vpow2.f32 %v5633_v58 }
 0x7f8   : > { %v5588_v27 = vpop.f32.mrf.mxu1  ;;  %vm5696_vm8 = vcmp.gt.f32.partialorder %v9953_v9, 20.0 }
 0x7f9   : > { %7965 = vpow2.f32 %v5635_v42  ;;  %v5637_v54 = vmul.f32 1.442695, %v5616_v11  ;;  %v5617_v60 = vmin.f32 %v9957_v5, 20.0  ;;  %v9961_v18 = vadd.f32 %v5588_v27, %v9930_v4 }
 0x7fa   : > { %v5592_v1 = vpop.f32.mrf.mxu1  ;;  %vm5697_vm10 = vcmp.gt.f32.partialorder %v9957_v5, 20.0 }
 0x7fb   : > { %7967 = vpow2.f32 %v5637_v54  ;;  %v5639_v41 = vmul.f32 1.442695, %v5617_v60  ;;  %v9964_v49 = vadd.f32 %v5592_v1, %v9926_v38  ;;  %v5618_v25 = vmin.f32 %v9961_v18, 20.0 }
 0x7fc   : > { %v5594_v35 = vpop.f32.mrf.mxu1  ;;  %vm5698_vm11 = vcmp.gt.f32.partialorder %v9961_v18, 20.0 }
 0x7fd   : > { %7969 = vpow2.f32 %v5639_v41  ;;  %v5619_v28 = vmin.f32 %v9964_v49, 20.0  ;;  %v9969_v43 = vadd.f32 %v5594_v35, %v9930_v4  ;;  %v5641_v2 = vmul.f32 1.442695, %v5618_v25 }
 0x7fe   : > { %v7958_v3 = vpop.eup %7957  ;;  %v5596_v31 = vpop.f32.mrf.mxu1  ;;  %vm5699_vm14 = vcmp.gt.f32.partialorder %v9964_v49, 20.0 }
 0x7ff   : > { %v5659_v16 = vadd.f32 1.0, %v7958_v3  ;;  %v5643_v39 = vmul.f32 1.442695, %v5619_v28  ;;  %v5620_v26 = vmin.f32 %v9969_v43, 20.0  ;;  %7971 = vpow2.f32 %v5641_v2 }
 0x800   : > { %v7960_v15 = vpop.eup %7959  ;;  %v9973_v44 = vadd.f32 %v5596_v31, %v9926_v38  ;;  %v5598_v47 = vpop.f32.mrf.mxu1  ;;  %vm5700_vm15 = vcmp.gt.f32.partialorder %v9969_v43, 20.0 }
 0x801   : > { %v9975_v52 = vmul.f32 %v5659_v16, %v5659_v16  ;;  %v5660_v19 = vadd.f32 1.0, %v7960_v15  ;;  %7973 = vpow2.f32 %v5643_v39  ;;  %v5645_v30 = vmul.f32 1.442695, %v5620_v26 }
 0x802   : > { %v7962_v33 = vpop.eup %7961  ;;  %v5621_v34 = vmin.f32 %v9973_v44, 20.0  ;;  %v9979_v29 = vadd.f32 %v5598_v47, %v9930_v4  ;;  %v5602_v55 = vpop.f32.mrf.mxu1  ;;  %vm5701_vm2 = vcmp.gt.f32.partialorder %v9973_v44, 20.0 }
 0x803   : > { %v5723_v10 = vadd.f32 1.0, %v9975_v52  ;;  %v9982_v61 = vmul.f32 %v5660_v19, %v5660_v19  ;;  %v5661_v40 = vadd.f32 1.0, %v7962_v33  ;;  %7975 = vpow2.f32 %v5645_v30 }
 0x804   : > { %v5647_v0 = vmul.f32 1.442695, %v5621_v34  ;;  %v5622_v8 = vmin.f32 %v9979_v29, 20.0  ;;  %v5604_v6 = vpop.f32.mrf.mxu1  ;;  %v7964_v17 = vpop.eup %7963  ;;  %v9987_v50 = vadd.f32 %v5602_v55, %v9926_v38  ;;  %v6582_v47 = vadd.f32 -1.0, %v9975_v52 }
 0x805   : > { %7977 = vrcp.f32 %v5723_v10  ;;  %v5724_v23 = vadd.f32 1.0, %v9982_v61  ;;  %v5677_v62 = vmul.f32 %v5661_v40, %v5661_v40  ;;  %v5662_v13 = vadd.f32 1.0, %v7964_v17 }
 0x806   : > { %v7966_v63 = vpop.eup %7965  ;;  %7979 = vpow2.f32 %v5647_v0  ;;  %v5649_v45 = vmul.f32 1.442695, %v5622_v8  ;;  %v5606_v51 = vpop.f32.mrf.mxu1  ;;  %v5623_v36 = vmin.f32 %v9987_v50, 20.0  ;;  %v9995_v20 = vadd.f32 %v5604_v6, %v9930_v4 }
 0x807   : > { %7981 = vrcp.f32 %v5724_v23  ;;  %v5725_v32 = vadd.f32 1.0, %v5677_v62  ;;  %v5663_v56 = vadd.f32 1.0, %v7966_v63  ;;  %v9989_v12 = vmul.f32 %v5662_v13, %v5662_v13 }
 0x808   : > { %v7968_v57 = vpop.eup %7967  ;;  %7983 = vpow2.f32 %v5649_v45  ;;  %v5651_v58 = vmul.f32 1.442695, %v5623_v36  ;;  %v9999_v59 = vadd.f32 %v5606_v51, %v9926_v38  ;;  %v5624_v54 = vmin.f32 %v9995_v20, 20.0  ;;  %v5608_v35 = vpop.f32.mrf.mxu1 }
 0x809   : > { %7985 = vrcp.f32 %v5725_v32  ;;  %v9992_v48 = vmul.f32 %v5663_v56, %v5663_v56  ;;  %v5664_v14 = vadd.f32 1.0, %v7968_v57  ;;  %v5726_v53 = vadd.f32 1.0, %v9989_v12 }
 0x80a   : > { %v7970_v24 = vpop.eup %7969  ;;  %v5625_v60 = vmin.f32 %v9999_v59, 20.0  ;;  %v5653_v3 = vmul.f32 1.442695, %v5624_v54  ;;  %v10013_v26 = vadd.f32 %v5608_v35, %v9930_v4  ;;  %v6583_v4 = vadd.f32 -1.0, %v9982_v61 }
 0x80b   : > { %v5727_v42 = vadd.f32 1.0, %v9992_v48  ;;  %v10002_v11 = vmul.f32 %v5664_v14, %v5664_v14  ;;  %v5665_v27 = vadd.f32 1.0, %v7970_v24  ;;  %7987 = vrcp.f32 %v5726_v53 }
 0x80c   : > { %v7972_v1 = vpop.eup %7971  ;;  %v5655_v2 = vmul.f32 1.442695, %v5625_v60  ;;  %v5626_v0 = vmin.f32 %v10013_v26, 20.0  ;;  %v6584_v52 = vadd.f32 -1.0, %v5677_v62  ;;  %v6585_v24 = vadd.f32 -1.0, %v9989_v12 }
 0x80d   : > { %7989 = vrcp.f32 %v5727_v42  ;;  %v5728_v41 = vadd.f32 1.0, %v10002_v11  ;;  %v10007_v25 = vmul.f32 %v5665_v27, %v5665_v27  ;;  %v5666_v38 = vadd.f32 1.0, %v7972_v1 }
 0x80e   : > { %v7974_v28 = vpop.eup %7973  ;;  %7991 = vpow2.f32 %v5651_v58  ;;  %v5657_v45 = vmul.f32 1.442695, %v5626_v0  ;;  %v6586_v42 = vadd.f32 -1.0, %v9992_v48  ;;  %v6587_v12 = vadd.f32 -1.0, %v10002_v11 }
 0x80f   : > { %7993 = vrcp.f32 %v5728_v41  ;;  %v5729_v31 = vadd.f32 1.0, %v10007_v25  ;;  %v5667_v16 = vadd.f32 1.0, %v7974_v28  ;;  %v10010_v39 = vmul.f32 %v5666_v38, %v5666_v38 }
 0x810   : > { %7995 = vpow2.f32 %v5653_v3  ;;  %v7976_v15 = vpop.eup %7975  ;;  %v6588_v38 = vadd.f32 -1.0, %v10007_v25  ;;  %vm5702_vm6 = vcmp.gt.f32.partialorder %v9979_v29, 20.0  ;;  %vm5703_vm12 = vcmp.gt.f32.partialorder %v9987_v50, 20.0 }
 0x811   : > { %7997 = vrcp.f32 %v5729_v31  ;;  %v10017_v19 = vmul.f32 %v5667_v16, %v5667_v16  ;;  %v5730_v33 = vadd.f32 1.0, %v10010_v39  ;;  %v5668_v34 = vadd.f32 1.0, %v7976_v15 }
 0x812   : > { %v7978_v30 = vpop.eup %7977  ;;  %7999 = vpow2.f32 %v5655_v2  ;;  %vm5704_vm13 = vcmp.gt.f32.partialorder %v9995_v20, 20.0  ;;  %vm5705_vm3 = vcmp.gt.f32.partialorder %v9999_v59, 20.0  ;;  %vm5706_vm9 = vcmp.gt.f32.partialorder %v10013_v26, 20.0 }
 0x813   : > { %v7980_v55 = vpop.eup %7979  ;;  %v5755_v10 = vmul.f32 %v7978_v30, %v6582_v47  ;;  %v5731_v40 = vadd.f32 1.0, %v10017_v19  ;;  %8001 = vrcp.f32 %v5730_v33  ;;  %v10024_v6 = vmul.f32 %v5668_v34, %v5668_v34 }
 0x814   : > { %v7982_v8 = vpop.eup %7981  ;;  %v5669_v17 = vadd.f32 1.0, %v7980_v55  ;;  %v6589_v55 = vadd.f32 -1.0, %v10010_v39  ;;  %v6590_v0 = vadd.f32 -1.0, %v10017_v19 }
 0x815   : > { %v7984_v23 = vpop.eup %7983  ;;  %v5771_v63 = vsel %vm5691_vm0, 1.0, %v5755_v10  ;;  %v5756_v13 = vmul.f32 %v7982_v8, %v6583_v4  ;;  %8003 = vrcp.f32 %v5731_v40  ;;  %v5732_v56 = vadd.f32 1.0, %v10024_v6 }
 0x816   : > { %v7986_v32 = vpop.eup %7985  ;;  %v5787_v61 = vmul.f32 %v5771_v63, %v9933_v46  ;;  %v10031_v62 = vmul.f32 %v5669_v17, %v5669_v17  ;;  %v5670_v36 = vadd.f32 1.0, %v7984_v23  ;;  %8005 = vpow2.f32 %v5657_v45 }
 0x817   : > { %v5772_v51 = vsel %vm5692_vm1, 1.0, %v5756_v13  ;;  %v5757_v57 = vmul.f32 %v7986_v32, %v6584_v52  ;;  %8007 = vrcp.f32 %v5732_v56  ;;  %v6591_v19 = vadd.f32 -1.0, %v10024_v6 }
 0x818   : > { %5803 = vst [vmem:[%s9377_s18] sm:$0xff] %v5787_v61  ;;  %v5788_v14 = vmul.f32 %v5772_v51, %v9937_v22  ;;  %v5733_v46 = vadd.f32 1.0, %v10031_v62  ;;  %v7988_v53 = vpop.eup %7987  ;;  %v10040_v27 = vmul.f32 %v5670_v36, %v5670_v36  ;;  %v6592_v56 = vadd.f32 -1.0, %v10031_v62 }
 0x819   : > { %v5773_v58 = vsel %vm5693_vm4, 1.0, %v5757_v57  ;;  %v5758_v1 = vmul.f32 %v7988_v53, %v6585_v24 }
 0x81a   : > { %v7990_v54 = vpop.eup %7989  ;;  %5804 = vst [vmem:[%s9377_s18 + $0x8] sm:$0xff] %v5788_v14  ;;  %v5789_v60 = vmul.f32 %v5773_v58, %v9941_v37  ;;  %8009 = vrcp.f32 %v5733_v46  ;;  %v5734_v35 = vadd.f32 1.0, %v10040_v27 }
 0x81b   : > { %v7992_v41 = vpop.eup %7991  ;;  %v5759_v22 = vmul.f32 %v7990_v54, %v6586_v42  ;;  %v5774_v48 = vsel %vm5694_vm5, 1.0, %v5758_v1 }
 0x81c   : > { %v7994_v28 = vpop.eup %7993  ;;  %5805 = vst [vmem:[%s9377_s18 + $0x10] sm:$0xff] %v5789_v60  ;;  %v5671_v3 = vadd.f32 1.0, %v7992_v41  ;;  %v5790_v2 = vmul.f32 %v5774_v48, %v9945_v21  ;;  %8011 = vrcp.f32 %v5734_v35 }
 0x81d   : > { %v7996_v37 = vpop.eup %7995  ;;  %v5775_v31 = vsel %vm5695_vm7, 1.0, %v5759_v22  ;;  %v5760_v16 = vmul.f32 %v7994_v28, %v6587_v12 }
 0x81e   : > { %v7998_v15 = vpop.eup %7997  ;;  %v5791_v11 = vmul.f32 %v5775_v31, %v9948_v7  ;;  %v5687_v47 = vmul.f32 %v5671_v3, %v5671_v3  ;;  %v5672_v30 = vadd.f32 1.0, %v7996_v37  ;;  %5806 = vst [vmem:[%s9377_s18 + $0x18] sm:$0xff] %v5790_v2 }
 0x81f   : > { %v8000_v33 = vpop.eup %7999  ;;  %v5776_v34 = vsel %vm5696_vm8, 1.0, %v5760_v16  ;;  %v5761_v25 = vmul.f32 %v7998_v15, %v6588_v38 }
 0x820   : > { %5807 = vst [vmem:[%s9377_s18 + $0x20] sm:$0xff] %v5791_v11  ;;  %v5792_v21 = vmul.f32 %v5776_v34, %v9953_v9  ;;  %v5735_v10 = vadd.f32 1.0, %v5687_v47  ;;  %v5688_v4 = vmul.f32 %v5672_v30, %v5672_v30  ;;  %v8002_v7 = vpop.eup %8001  ;;  %v5673_v8 = vadd.f32 1.0, %v8000_v33 }
 0x821   : > { %v5777_v40 = vsel %vm5697_vm10, 1.0, %v5761_v25  ;;  %v5762_v23 = vmul.f32 %v8002_v7, %v6589_v55  ;;  %v6594_v41 = vadd.f32 -1.0, %v5687_v47 }
 0x822   : > { %v8004_v52 = vpop.eup %8003  ;;  %5808 = vst [vmem:[%s9377_s18 + $0x28] sm:$0xff] %v5792_v21  ;;  %v5793_v17 = vmul.f32 %v5777_v40, %v9957_v5  ;;  %8013 = vrcp.f32 %v5735_v10  ;;  %v5736_v9 = vadd.f32 1.0, %v5688_v4  ;;  %v5689_v13 = vmul.f32 %v5673_v8, %v5673_v8 }
 0x823   : > { %v5763_v63 = vmul.f32 %v8004_v52, %v6590_v0  ;;  %v8006_v39 = vpop.eup %8005  ;;  %v5778_v45 = vsel %vm5698_vm11, 1.0, %v5762_v23  ;;  %v6595_v12 = vadd.f32 -1.0, %v5688_v4 }
 0x824   : > { %5809 = vst [vmem:[%s9377_s18 + $0x30] sm:$0xff] %v5793_v17  ;;  %v8008_v32 = vpop.eup %8007  ;;  %v5794_v61 = vmul.f32 %v5778_v45, %v9961_v18  ;;  %8015 = vrcp.f32 %v5736_v9  ;;  %v5737_v36 = vadd.f32 1.0, %v5689_v13  ;;  %v5674_v14 = vadd.f32 1.0, %v8006_v39 }
 0x825   : > { %v5779_v5 = vsel %vm5699_vm14, 1.0, %v5763_v63  ;;  %v5764_v57 = vmul.f32 %v8008_v32, %v6591_v19  ;;  %v6596_v38 = vadd.f32 -1.0, %v5689_v13 }
 0x826   : > { %v5795_v51 = vmul.f32 %v5779_v5, %v9964_v49  ;;  %5810 = vst [vmem:[%s9377_s18 + $0x38] sm:$0xff] %v5794_v61  ;;  %8017 = vrcp.f32 %v5737_v36  ;;  %v5690_v18 = vmul.f32 %v5674_v14, %v5674_v14  ;;  %v6593_v49 = vadd.f32 -1.0, %v10040_v27 }
 0x827   : > { %v8010_v24 = vpop.eup %8009  ;;  %v5780_v6 = vsel %vm5700_vm15, 1.0, %v5764_v57 }
 0x828   : > { %5811 = vst [vmem:[%s9377_s18 + $0x40] sm:$0xff] %v5795_v51  ;;  %v5765_v46 = vmul.f32 %v8010_v24, %v6592_v56  ;;  %v5796_v53 = vmul.f32 %v5780_v6, %v9969_v43  ;;  %v5738_v42 = vadd.f32 1.0, %v5690_v18  ;;  %v6597_v16 = vadd.f32 -1.0, %v5690_v18 }
 0x829   : > { %v8012_v62 = vpop.eup %8011 }
 0x82a   : > { %v5781_v58 = vsel %vm5701_vm2, 1.0, %v5765_v46  ;;  %5812 = vst [vmem:[%s9377_s18 + $0x48] sm:$0xff] %v5796_v53  ;;  %v5766_v60 = vmul.f32 %v8012_v62, %v6593_v49  ;;  %8019 = vrcp.f32 %v5738_v42 }
 0x82b   : > { %v5797_v54 = vmul.f32 %v5781_v58, %v9973_v44 }
 0x82c   : > { %v5782_v1 = vsel %vm5702_vm6, 1.0, %v5766_v60 }
 0x82d   : > { %5813 = vst [vmem:[%s9377_s18 + $0x50] sm:$0xff] %v5797_v54  ;;  %v5798_v43 = vmul.f32 %v5782_v1, %v9979_v29 }
 0x82f   : > { %v8014_v22 = vpop.eup %8013  ;;  %5814 = vst [vmem:[%s9377_s18 + $0x58] sm:$0xff] %v5798_v43 }
 0x830   : > { %v5767_v27 = vmul.f32 %v8014_v22, %v6594_v41 }
 0x831   : > { %v8016_v35 = vpop.eup %8015 }
 0x832   : > { %v5783_v28 = vsel %vm5703_vm12, 1.0, %v5767_v27  ;;  %v5768_v48 = vmul.f32 %v8016_v35, %v6595_v12 }
 0x833   : > { %v5799_v44 = vmul.f32 %v5783_v28, %v9987_v50  ;;  %v8018_v29 = vpop.eup %8017 }
 0x834   : > { %v5784_v3 = vsel %vm5704_vm13, 1.0, %v5768_v48  ;;  %v5769_v2 = vmul.f32 %v8018_v29, %v6596_v38 }
 0x835   : > { %5815 = vst [vmem:[%s9377_s18 + $0x60] sm:$0xff] %v5799_v44  ;;  %v5800_v37 = vmul.f32 %v5784_v3, %v9995_v20 }
 0x836   : > { %v5785_v31 = vsel %vm5705_vm3, 1.0, %v5769_v2 }
 0x837   : > { %5816 = vst [vmem:[%s9377_s18 + $0x68] sm:$0xff] %v5800_v37  ;;  %v8020_v50 = vpop.eup %8019  ;;  %v5801_v15 = vmul.f32 %v5785_v31, %v9999_v59 }
 0x838   : > { %v5770_v11 = vmul.f32 %v8020_v50, %v6597_v16 }
 0x839   : > { %5817 = vst [vmem:[%s9377_s18 + $0x70] sm:$0xff] %v5801_v15 }
 0x83a   : > { %v5786_v47 = vsel %vm5706_vm9, 1.0, %v5770_v11 }
 0x83b   : > { %v5802_v20 = vmul.f32 %v5786_v47, %v10013_v26 }
 0x83d   : > { %5818 = vst [vmem:[%s9377_s18 + $0x78] sm:$0xff] %v5802_v20 }
 0x83e   : > { %8398 = shalt.err (!%p8395_p0)
}
 0x83f   : > { %s8399_s24 = scalar_lea.hbm %s10095_s2, 2048  ;;  %s8403_s4 = scalar_lea.hbm %s10158_s15, 4096 }
 0x840   : > { %p8400_p1 = scmp.ne.s32.totalorder %s10095_s2, %s8399_s24  ;;  %p8404_p13 = scmp.lt.s32.totalorder %s10095_s2, %s10158_s15 }
 0x841   : > { %p8405_p3 = scmp.lt.s32.totalorder %s8403_s4, %s8399_s24 }
 0x842   : > { %p8401_p2 = pnand %p8400_p1, %p10331_p12 }
 0x843   : > { %p8406_p5 = por %p8405_p3, %p8404_p13 }
 0x844   : > { %p8402_p9 = pneg %p8401_p2 }
 0x846   : > { %p8407_p6 = pnand %p8406_p5, %p8402_p9 }
 0x848   : > { %8410 = shalt.err (!%p8407_p6)
}
 0x849   : > { %s8510_s17 = smov 256   ;;  %s8511_s29 = smov 16  }
 0x84a   : > { %7101 = dma.vmem_to_hbm [thread:$0]  (%p10331_p12), %s10097_s23, 2048, %s10095_s2, %s10103_s22, %s8510_s17, %s8510_s17, %s8511_s29  }
 0x84b PF: > { %s10332_s21 = sld [smem:[#allocation40_spill]] }
 0x84c   : > { %s10333_s25 = sld [smem:[#allocation38_spill]] }
 0x84d   : > { %s10334_s16 = sld [smem:[#allocation43_spill]] }
 0x851   : > { %p7178_p10 = scmp.ge.s32.totalorder %s10332_s21, 2 }
 0x852   : > { %s5849_s27 = sand.u32 1, %s10333_s25  }
 0x853   : > { %p10335_p4 = scmp.ne.s32.totalorder %s10334_s16, 0  ;;  %s5850_s24 = scalar_lea.sflag [#allocation7], %s5849_s27 }
 0x855   : > { %p7147_p7 = pnand %p7178_p10, %p10335_p4 }
 0x857   : > { %p7148_p8 = pneg %p7147_p7 }
 0x859   : > { %8464 = dma.done.wait (%p7148_p8), %s5850_s24, 2048  }
 0x85a   : > { %8466 = vsyncadd (%p7148_p8), %s5850_s24, 4294965248  ;;  %s10336_s21 = sld [smem:[#allocation41_spill]]  ;;  %s10339_s18 = smov %s8473_s19 }
 0x85b   : > { %s10337_s20 = sld [smem:[#allocation39_spill]] }
 0x85c   : > { %s10338_s4 = sld [smem:[#allocation42_spill]] }
 0x860   : > { %p33_p11 = scmp.ge.s32.totalorder %s10336_s21, 4  }
 0x861   : > { %s10340_s19 = smov %s10337_s20 }
 0x862   : > { %s10341_s20 = smov %s10338_s4  ;;  %35 = sbr.rel (!%p33_p11) target bundleno = 14 (0xe), region = 194 }
 0x867   :  { %5855 = vsyncpa [#allocation6], 1 }
 0x868   :  { %5857 = vsyncpa [#allocation6 + $0x1], 1 }
 0x869   :  { %5858 = vsyncpa [#allocation9], 1 }
 0x86a   :  { %5859 = vsyncpa [#allocation12], 1 }
 0x86b   :  { %5860 = vsyncpa [#allocation15], 1 }
 0x86c   :  { %5861 = vsyncpa [#allocation18], 1 }
 0x86d   :  { %5862 = vsyncpa [#allocation21], 1 }
 0x86e   :  { %5863 = vsyncpa [#allocation24], 1 }
 0x86f   :  { %5864 = vsyncpa [#allocation27], 1 }
 0x870   :  { %5865 = vsyncpa [#allocation7], 1 }
 0x871   :  { %5867 = vsyncpa [#allocation7 + $0x1], 1 }

</bundles_post_ra>
